<compile_context>
chip_gen: v6e
topology: v6e:2x2x1
jax: 0.10.0
libtpu: 0.0.40
codegen_flags: <defaults>
</compile_context>

<pallas_src>
import jax
import jax.numpy as jnp
from jax import lax
from jax.experimental import pallas as pl
from jax.experimental.pallas import tpu as pltpu


_VMEM_LIMIT_BYTES = 32 * 1024 * 1024   # generous cap; actual fused footprint < 1 MiB


def _to_gemm_weights(w_oihw):
    """PyTorch (Cout, Cin, 3, 3) -> (Cout, 9*Cin) bf16 with K index t*Cin + cin, t=dy*3+dx."""
    O, I, _, _ = w_oihw.shape
    return jnp.transpose(w_oihw, (0, 2, 3, 1)).reshape(O, 9 * I).astype(jnp.bfloat16)


def _to_vpu_weights(w_oihw):
    """PyTorch (1, Cin, 3, 3) -> (9, Cin, 1) f32 (bf16-rounded), tap index t = dy*3+dx."""
    _, I, _, _ = w_oihw.shape
    w = jnp.transpose(w_oihw, (2, 3, 1, 0)).reshape(9, I, 1)
    return w.astype(jnp.bfloat16).astype(jnp.float32)


def tail_forward(params, x_nchw):
    """Tail.forward: 4 stacked 3x3 convs (C->C->C/2->C/2->1) with ReLU in between."""
    B, C, H, W = x_nchw.shape
    Ch = C // 2
    Wp, Hp = W + 2, H + 3
    Lflat, Ltap = Hp * Wp, H * Wp
    base = Wp + 1                      # flat index of pixel (0, 0) in the padded layout

    # One-time zero-halo pad + flatten + bf16 cast; everything else happens in-kernel.
    xp = jnp.pad(x_nchw, ((0, 0), (0, 0), (1, 2), (1, 1))).astype(jnp.bfloat16)
    x_flat = xp.reshape(B, C, Lflat)

    w1 = _to_gemm_weights(params["w1"])          # (C , 9*C )
    w2 = _to_gemm_weights(params["w2"])          # (Ch, 9*C )
    w3 = _to_gemm_weights(params["w3"])          # (Ch, 9*Ch)
    w4 = _to_vpu_weights(params["w4"])           # (9, Ch, 1) f32 (final layer -> VPU)
    b1 = params["b1"].reshape(C, 1).astype(jnp.float32)
    b2 = params["b2"].reshape(Ch, 1).astype(jnp.float32)
    b3 = params["b3"].reshape(Ch, 1).astype(jnp.float32)
    b4 = params["b4"].reshape(1, 1).astype(jnp.float32)

    def kernel(x_ref, w1_ref, b1_ref, w2_ref, b2_ref, w3_ref, b3_ref,
               w4_ref, b4_ref, o_ref, col_ref, a1_ref, a2_ref, a3_ref):
        # Junk-column mask: lanes whose column index inside a padded row is >= W; they
        # land exactly on the next layer's zero-halo columns.  Generated in-kernel
        # (iota + compare is free VPU filler, no extra operand).
        lane = lax.broadcasted_iota(jnp.int32, (1, Ltap), 1)
        col_ok = (lane % Wp) < W

        def stage(read_slice, cin):
            # Build the (9*cin, Ltap) bf16 im2col tile: 9 contiguous lane-shifted slices
            # of the zero-halo'd flat activation, one sublane block per 3x3 tap.
            for t in range(9):
                dy, dx = divmod(t, 3)
                col_ref[t * cin:(t + 1) * cin, :] = read_slice(dy * Wp + dx)

        def conv_mxu(w_ref_, b_ref_, cin, relu):
            # Single K = 9*cin bf16 MXU GEMM, f32 accumulation, fused bias (+ReLU) + mask.
            acc = jnp.dot(w_ref_[...], col_ref[0:9 * cin, :],
                          preferred_element_type=jnp.float32)
            acc = acc + b_ref_[...]
            if relu:
                acc = jnp.maximum(acc, 0.0)
            return jnp.where(col_ok, acc, 0.0)

        def store_padded(a_ref_, win):
            # Keep the zero-halo flat layout so the next conv reads its 9 tap slices
            # directly.  VMEM-only; intermediates never round-trip through HBM.
            cout = win.shape[0]
            a_ref_[:, 0:base] = jnp.zeros((cout, base), jnp.bfloat16)
            a_ref_[:, base + Ltap:Lflat] = jnp.zeros((cout, Lflat - base - Ltap),
                                                     jnp.bfloat16)
            a_ref_[:, base:base + Ltap] = win

        # ---- conv1: C -> C, ReLU (MXU, K = 9*C) ----
        stage(lambda off: x_ref[0, :, off:off + Ltap], C)
        store_padded(a1_ref, conv_mxu(w1_ref, b1_ref, C, True).astype(jnp.bfloat16))
        # ---- conv2: C -> C/2, ReLU (MXU, K = 9*C) ----
        stage(lambda off: a1_ref[:, off:off + Ltap], C)
        store_padded(a2_ref, conv_mxu(w2_ref, b2_ref, C, True).astype(jnp.bfloat16))
        # ---- conv3: C/2 -> C/2, ReLU (MXU, K = 9*C/2) ----
        stage(lambda off: a2_ref[:, off:off + Ltap], Ch)
        store_padded(a3_ref, conv_mxu(w3_ref, b3_ref, Ch, True).astype(jnp.bfloat16))
        # ---- conv4: C/2 -> 1, no ReLU: VPU broadcast MACs + one sublane reduce ----
        acc4 = jnp.zeros((Ch, Ltap), jnp.float32)
        for t in range(9):
            dy, dx = divmod(t, 3)
            off = dy * Wp + dx
            acc4 = acc4 + w4_ref[t] * a3_ref[:, off:off + Ltap].astype(jnp.float32)
        out = jnp.sum(acc4, axis=0, keepdims=True) + b4_ref[...]
        # Single lane-aligned, unmasked HBM store (junk lanes stripped in the wrapper).
        o_ref[0, :, :] = out

    out_win = pl.pallas_call(
        kernel,
        out_shape=jax.ShapeDtypeStruct((B, 1, Ltap), jnp.float32),
        grid=(B,),
        in_specs=[
            pl.BlockSpec((1, C, Lflat), lambda b: (b, 0, 0)),      # image (read once)
            pl.BlockSpec((C, 9 * C), lambda b: (0, 0)),            # w1 (VMEM-resident)
            pl.BlockSpec((C, 1), lambda b: (0, 0)),                # b1
            pl.BlockSpec((Ch, 9 * C), lambda b: (0, 0)),           # w2
            pl.BlockSpec((Ch, 1), lambda b: (0, 0)),               # b2
            pl.BlockSpec((Ch, 9 * Ch), lambda b: (0, 0)),          # w3
            pl.BlockSpec((Ch, 1), lambda b: (0, 0)),               # b3
            pl.BlockSpec((9, Ch, 1), lambda b: (0, 0, 0)),         # w4 (VPU path)
            pl.BlockSpec((1, 1), lambda b: (0, 0)),                # b4
        ],
        out_specs=pl.BlockSpec((1, 1, Ltap), lambda b: (b, 0, 0)),
        scratch_shapes=[
            pltpu.VMEM((9 * C, Ltap), jnp.bfloat16),   # im2col tile (shared by all convs)
            pltpu.VMEM((C, Lflat), jnp.bfloat16),      # activation after conv1
            pltpu.VMEM((Ch, Lflat), jnp.bfloat16),     # activation after conv2
            pltpu.VMEM((Ch, Lflat), jnp.bfloat16),     # activation after conv3
        ],
        compiler_params=pltpu.CompilerParams(
            dimension_semantics=("parallel",),         # batch axis -> both v7x cores
            vmem_limit_bytes=_VMEM_LIMIT_BYTES,
        ),
    )(x_flat, w1, b1, w2, b2, w3, b3, w4, b4)

    # (B, 1, H*Wp) window layout -> NCHW (B, 1, H, W): drop the 2 junk lanes per row.
    return out_win.reshape(B, 1, H, Wp)[:, :, :, :W]


def tail_reference(params, x_nchw):
    """Pure-XLA reference with the same bf16-input / f32-accumulate precision policy."""
    def conv(x, w, b, relu):
        xb = x.astype(jnp.bfloat16).astype(jnp.float32)
        wb = w.astype(jnp.bfloat16).astype(jnp.float32)
        y = lax.conv_general_dilated(
            xb, wb, window_strides=(1, 1), padding=((1, 1), (1, 1)),
            dimension_numbers=("NCHW", "OIHW", "NCHW"),
            precision=lax.Precision.HIGHEST)
        y = y + b.reshape(1, -1, 1, 1)
        return jnp.maximum(y, 0.0) if relu else y

    y = conv(x_nchw.astype(jnp.float32), params["w1"], params["b1"], True)
    y = conv(y, params["w2"], params["b2"], True)
    y = conv(y, params["w3"], params["b3"], True)
    y = conv(y, params["w4"], params["b4"], False)
    return y


def init_tail_params(key, embed_dim=24):
    def conv_init(k, cin, cout):
        kw, kb = jax.random.split(k)
        bound = 1.0 / (cin * 9) ** 0.5          # PyTorch-style uniform fan-in init
        w = jax.random.uniform(kw, (cout, cin, 3, 3), jnp.float32, -bound, bound)
        b = jax.random.uniform(kb, (cout,), jnp.float32, -bound, bound)
        return w, b

    k1, k2, k3, k4 = jax.random.split(key, 4)
    c, h = embed_dim, embed_dim // 2
    w1, b1 = conv_init(k1, c, c)
    w2, b2 = conv_init(k2, c, h)
    w3, b3 = conv_init(k3, h, h)
    w4, b4 = conv_init(k4, h, 1)
    return dict(w1=w1, b1=b1, w2=w2, b2=b2, w3=w3, b3=b3, w4=w4, b4=b4)


if __name__ == "__main__":
    embed_dim = 24
    B, H, W = 2, 16, 16

    root = jax.random.PRNGKey(0)
    kp, kx = jax.random.split(root)
    params = init_tail_params(kp, embed_dim)
    x = jax.random.normal(kx, (B, embed_dim, H, W), jnp.float32)

    out = jax.jit(tail_forward)(params, x)
    out = jax.block_until_ready(out)
    assert out.shape == (B, 1, H, W), out.shape
    assert bool(jnp.all(jnp.isfinite(out)))

    ref = tail_reference(params, x)
    assert bool(jnp.allclose(out, ref, rtol=2e-2, atol=5e-3)), \
        float(jnp.max(jnp.abs(out - ref)))

    print("KERNEL_OK")
</pallas_src>

<mosaic_0001>
module attributes {stable_mosaic.version = 11 : i64} {
  func.func @kernel(%arg0: i32, %arg1: memref<1x24x342xbf16, #tpu.memory_space<vmem>>, %arg2: memref<24x216xbf16, #tpu.memory_space<vmem>>, %arg3: memref<24x1xf32, #tpu.memory_space<vmem>>, %arg4: memref<12x216xbf16, #tpu.memory_space<vmem>>, %arg5: memref<12x1xf32, #tpu.memory_space<vmem>>, %arg6: memref<12x108xbf16, #tpu.memory_space<vmem>>, %arg7: memref<12x1xf32, #tpu.memory_space<vmem>>, %arg8: memref<9x12x1xf32, #tpu.memory_space<vmem>>, %arg9: memref<1x1xf32, #tpu.memory_space<vmem>>, %arg10: memref<1x1x288xf32, #tpu.memory_space<vmem>>, %arg11: memref<216x288xbf16, #tpu.memory_space<vmem>>, %arg12: memref<24x342xbf16, #tpu.memory_space<vmem>>, %arg13: memref<12x342xbf16, #tpu.memory_space<vmem>>, %arg14: memref<12x342xbf16, #tpu.memory_space<vmem>>) attributes {dimension_semantics = [#tpu.dimension_semantics<parallel>], iteration_bounds = array<i64: 2>, scalar_prefetch = 0 : i64, scratch_operands = 4 : i64, tpu.core_type = #tpu.core_type<tc>, window_params = [{transform_indices = @transform_0, window_bounds = array<i64: 1, 24, 342>}, {pipeline_mode = #tpu.pipeline_mode<synchronous>, transform_indices = @transform_1, window_bounds = array<i64: 24, 216>}, {pipeline_mode = #tpu.pipeline_mode<synchronous>, transform_indices = @transform_2, window_bounds = array<i64: 24, 1>}, {pipeline_mode = #tpu.pipeline_mode<synchronous>, transform_indices = @transform_3, window_bounds = array<i64: 12, 216>}, {pipeline_mode = #tpu.pipeline_mode<synchronous>, transform_indices = @transform_4, window_bounds = array<i64: 12, 1>}, {pipeline_mode = #tpu.pipeline_mode<synchronous>, transform_indices = @transform_5, window_bounds = array<i64: 12, 108>}, {pipeline_mode = #tpu.pipeline_mode<synchronous>, transform_indices = @transform_6, window_bounds = array<i64: 12, 1>}, {pipeline_mode = #tpu.pipeline_mode<synchronous>, transform_indices = @transform_7, window_bounds = array<i64: 9, 12, 1>}, {pipeline_mode = #tpu.pipeline_mode<synchronous>, transform_indices = @transform_8, window_bounds = array<i64: 1, 1>}, {transform_indices = @transform_9, window_bounds = array<i64: 1, 1, 288>}]} {
    %0 = tpu.iota {dimensions = array<i32: 1>} : vector<1x288xi32>
    %c18_i32 = arith.constant 18 : i32
    %c0_i32 = arith.constant 0 : i32
    %1 = arith.cmpi eq, %c18_i32, %c0_i32 : i32
    %c1_i32 = arith.constant 1 : i32
    %2 = arith.select %1, %c1_i32, %c18_i32 : i32
    %3 = vector.broadcast %2 : i32 to vector<1x288xi32>
    %4 = arith.remsi %0, %3 : vector<1x288xi32>
    %c0_i32_0 = arith.constant 0 : i32
    %5 = vector.broadcast %c0_i32_0 : i32 to vector<1x288xi32>
    %6 = arith.cmpi ne, %4, %5 : vector<1x288xi32>
    %c0_i32_1 = arith.constant 0 : i32
    %7 = vector.broadcast %c0_i32_1 : i32 to vector<1x288xi32>
    %8 = arith.cmpi slt, %4, %7 : vector<1x288xi32>
    %c0_i32_2 = arith.constant 0 : i32
    %9 = arith.cmpi slt, %2, %c0_i32_2 : i32
    %10 = vector.broadcast %9 : i1 to vector<1x288xi1>
    %11 = vector.broadcast %10 : vector<1x288xi1> to vector<1x288xi1>
    %12 = arith.xori %8, %11 : vector<1x288xi1>
    %13 = arith.andi %12, %6 : vector<1x288xi1>
    %14 = vector.broadcast %2 : i32 to vector<1x288xi32>
    %15 = arith.addi %4, %14 : vector<1x288xi32>
    %16 = arith.select %13, %15, %4 : vector<1x288xi1>, vector<1x288xi32>
    %c16_i32 = arith.constant 16 : i32
    %17 = vector.broadcast %c16_i32 : i32 to vector<1x288xi32>
    %18 = arith.cmpi slt, %16, %17 : vector<1x288xi32>
    %c0 = arith.constant 0 : index
    %c0_3 = arith.constant 0 : index
    %c0_4 = arith.constant 0 : index
    %19 = vector.load %arg1[%c0, %c0_3, %c0_4] : memref<1x24x342xbf16, #tpu.memory_space<vmem>>, vector<1x24x288xbf16>
    %20 = vector.shape_cast %19 : vector<1x24x288xbf16> to vector<24x288xbf16>
    %c0_5 = arith.constant 0 : index
    %c0_6 = arith.constant 0 : index
    %21 = vector.load %arg11[%c0_5, %c0_6] : memref<216x288xbf16, #tpu.memory_space<vmem>>, vector<24x288xbf16>
    tpu.vector_store %arg11[%c0_5, %c0_6], %20 {strides = array<i32>} : memref<216x288xbf16, #tpu.memory_space<vmem>>, vector<24x288xbf16>,
    %c0_7 = arith.constant 0 : index
    %c0_8 = arith.constant 0 : index
    %c1 = arith.constant 1 : index
    %22 = vector.load %arg1[%c0_7, %c0_8, %c1] : memref<1x24x342xbf16, #tpu.memory_space<vmem>>, vector<1x24x288xbf16>
    %23 = vector.shape_cast %22 : vector<1x24x288xbf16> to vector<24x288xbf16>
    %c24 = arith.constant 24 : index
    %c0_9 = arith.constant 0 : index
    %24 = vector.load %arg11[%c24, %c0_9] : memref<216x288xbf16, #tpu.memory_space<vmem>>, vector<24x288xbf16>
    tpu.vector_store %arg11[%c24, %c0_9], %23 {strides = array<i32>} : memref<216x288xbf16, #tpu.memory_space<vmem>>, vector<24x288xbf16>,
    %c0_10 = arith.constant 0 : index
    %c0_11 = arith.constant 0 : index
    %c2 = arith.constant 2 : index
    %25 = vector.load %arg1[%c0_10, %c0_11, %c2] : memref<1x24x342xbf16, #tpu.memory_space<vmem>>, vector<1x24x288xbf16>
    %26 = vector.shape_cast %25 : vector<1x24x288xbf16> to vector<24x288xbf16>
    %c48 = arith.constant 48 : index
    %c0_12 = arith.constant 0 : index
    %27 = vector.load %arg11[%c48, %c0_12] : memref<216x288xbf16, #tpu.memory_space<vmem>>, vector<24x288xbf16>
    tpu.vector_store %arg11[%c48, %c0_12], %26 {strides = array<i32>} : memref<216x288xbf16, #tpu.memory_space<vmem>>, vector<24x288xbf16>,
    %c0_13 = arith.constant 0 : index
    %c0_14 = arith.constant 0 : index
    %c18 = arith.constant 18 : index
    %28 = vector.load %arg1[%c0_13, %c0_14, %c18] : memref<1x24x342xbf16, #tpu.memory_space<vmem>>, vector<1x24x288xbf16>
    %29 = vector.shape_cast %28 : vector<1x24x288xbf16> to vector<24x288xbf16>
    %c72 = arith.constant 72 : index
    %c0_15 = arith.constant 0 : index
    %30 = vector.load %arg11[%c72, %c0_15] : memref<216x288xbf16, #tpu.memory_space<vmem>>, vector<24x288xbf16>
    tpu.vector_store %arg11[%c72, %c0_15], %29 {strides = array<i32>} : memref<216x288xbf16, #tpu.memory_space<vmem>>, vector<24x288xbf16>,
    %c0_16 = arith.constant 0 : index
    %c0_17 = arith.constant 0 : index
    %c19 = arith.constant 19 : index
    %31 = vector.load %arg1[%c0_16, %c0_17, %c19] : memref<1x24x342xbf16, #tpu.memory_space<vmem>>, vector<1x24x288xbf16>
    %32 = vector.shape_cast %31 : vector<1x24x288xbf16> to vector<24x288xbf16>
    %c96 = arith.constant 96 : index
    %c0_18 = arith.constant 0 : index
    %33 = vector.load %arg11[%c96, %c0_18] : memref<216x288xbf16, #tpu.memory_space<vmem>>, vector<24x288xbf16>
    tpu.vector_store %arg11[%c96, %c0_18], %32 {strides = array<i32>} : memref<216x288xbf16, #tpu.memory_space<vmem>>, vector<24x288xbf16>,
    %c0_19 = arith.constant 0 : index
    %c0_20 = arith.constant 0 : index
    %c20 = arith.constant 20 : index
    %34 = vector.load %arg1[%c0_19, %c0_20, %c20] : memref<1x24x342xbf16, #tpu.memory_space<vmem>>, vector<1x24x288xbf16>
    %35 = vector.shape_cast %34 : vector<1x24x288xbf16> to vector<24x288xbf16>
    %c120 = arith.constant 120 : index
    %c0_21 = arith.constant 0 : index
    %36 = vector.load %arg11[%c120, %c0_21] : memref<216x288xbf16, #tpu.memory_space<vmem>>, vector<24x288xbf16>
    tpu.vector_store %arg11[%c120, %c0_21], %35 {strides = array<i32>} : memref<216x288xbf16, #tpu.memory_space<vmem>>, vector<24x288xbf16>,
    %c0_22 = arith.constant 0 : index
    %c0_23 = arith.constant 0 : index
    %c36 = arith.constant 36 : index
    %37 = vector.load %arg1[%c0_22, %c0_23, %c36] : memref<1x24x342xbf16, #tpu.memory_space<vmem>>, vector<1x24x288xbf16>
    %38 = vector.shape_cast %37 : vector<1x24x288xbf16> to vector<24x288xbf16>
    %c144 = arith.constant 144 : index
    %c0_24 = arith.constant 0 : index
    %39 = vector.load %arg11[%c144, %c0_24] : memref<216x288xbf16, #tpu.memory_space<vmem>>, vector<24x288xbf16>
    tpu.vector_store %arg11[%c144, %c0_24], %38 {strides = array<i32>} : memref<216x288xbf16, #tpu.memory_space<vmem>>, vector<24x288xbf16>,
    %c0_25 = arith.constant 0 : index
    %c0_26 = arith.constant 0 : index
    %c37 = arith.constant 37 : index
    %40 = vector.load %arg1[%c0_25, %c0_26, %c37] : memref<1x24x342xbf16, #tpu.memory_space<vmem>>, vector<1x24x288xbf16>
    %41 = vector.shape_cast %40 : vector<1x24x288xbf16> to vector<24x288xbf16>
    %c168 = arith.constant 168 : index
    %c0_27 = arith.constant 0 : index
    %42 = vector.load %arg11[%c168, %c0_27] : memref<216x288xbf16, #tpu.memory_space<vmem>>, vector<24x288xbf16>
    tpu.vector_store %arg11[%c168, %c0_27], %41 {strides = array<i32>} : memref<216x288xbf16, #tpu.memory_space<vmem>>, vector<24x288xbf16>,
    %c0_28 = arith.constant 0 : index
    %c0_29 = arith.constant 0 : index
    %c38 = arith.constant 38 : index
    %43 = vector.load %arg1[%c0_28, %c0_29, %c38] : memref<1x24x342xbf16, #tpu.memory_space<vmem>>, vector<1x24x288xbf16>
    %44 = vector.shape_cast %43 : vector<1x24x288xbf16> to vector<24x288xbf16>
    %c192 = arith.constant 192 : index
    %c0_30 = arith.constant 0 : index
    %45 = vector.load %arg11[%c192, %c0_30] : memref<216x288xbf16, #tpu.memory_space<vmem>>, vector<24x288xbf16>
    tpu.vector_store %arg11[%c192, %c0_30], %44 {strides = array<i32>} : memref<216x288xbf16, #tpu.memory_space<vmem>>, vector<24x288xbf16>,
    %c0_31 = arith.constant 0 : index
    %c0_32 = arith.constant 0 : index
    %46 = vector.load %arg2[%c0_31, %c0_32] : memref<24x216xbf16, #tpu.memory_space<vmem>>, vector<24x216xbf16>
    %c0_33 = arith.constant 0 : index
    %c0_34 = arith.constant 0 : index
    %47 = vector.load %arg11[%c0_33, %c0_34] : memref<216x288xbf16, #tpu.memory_space<vmem>>, vector<216x288xbf16>
    %cst = arith.constant dense<0.000000e+00> : vector<24x288xf32>
    %48 = tpu.matmul %46, %47, %cst {dimension_numbers = #tpu.dot_dimension_numbers<[1], [0], [0], [1], [0, 0, 1, 1], [], []>} : vector<24x216xbf16>, vector<216x288xbf16>, vector<24x288xf32> -> vector<24x288xf32>
    %c0_35 = arith.constant 0 : index
    %c0_36 = arith.constant 0 : index
    %49 = vector.load %arg3[%c0_35, %c0_36] : memref<24x1xf32, #tpu.memory_space<vmem>>, vector<24x1xf32>
    %50 = vector.broadcast %49 : vector<24x1xf32> to vector<24x288xf32>
    %51 = arith.addf %48, %50 : vector<24x288xf32>
    %cst_37 = arith.constant 0.000000e+00 : f32
    %52 = vector.broadcast %cst_37 : f32 to vector<24x288xf32>
    %53 = arith.maximumf %51, %52 : vector<24x288xf32>
    %cst_38 = arith.constant 0.000000e+00 : f32
    %54 = vector.shape_cast %18 : vector<1x288xi1> to vector<1x288xi1>
    %55 = vector.broadcast %54 : vector<1x288xi1> to vector<24x288xi1>
    %56 = vector.broadcast %cst_38 : f32 to vector<24x288xf32>
    %57 = arith.select %55, %53, %56 : vector<24x288xi1>, vector<24x288xf32>
    %58 = arith.truncf %57 : vector<24x288xf32> to vector<24x288xbf16>
    %cst_39 = arith.constant 0.000000e+00 : bf16
    %59 = vector.broadcast %cst_39 : bf16 to vector<24x19xbf16>
    %c0_40 = arith.constant 0 : index
    %c0_41 = arith.constant 0 : index
    %60 = vector.load %arg12[%c0_40, %c0_41] : memref<24x342xbf16, #tpu.memory_space<vmem>>, vector<24x19xbf16>
    tpu.vector_store %arg12[%c0_40, %c0_41], %59 {strides = array<i32>} : memref<24x342xbf16, #tpu.memory_space<vmem>>, vector<24x19xbf16>,
    %cst_42 = arith.constant 0.000000e+00 : bf16
    %61 = vector.broadcast %cst_42 : bf16 to vector<24x35xbf16>
    %c0_43 = arith.constant 0 : index
    %c307 = arith.constant 307 : index
    %62 = vector.load %arg12[%c0_43, %c307] : memref<24x342xbf16, #tpu.memory_space<vmem>>, vector<24x35xbf16>
    tpu.vector_store %arg12[%c0_43, %c307], %61 {strides = array<i32>} : memref<24x342xbf16, #tpu.memory_space<vmem>>, vector<24x35xbf16>,
    %c0_44 = arith.constant 0 : index
    %c19_45 = arith.constant 19 : index
    %63 = vector.load %arg12[%c0_44, %c19_45] : memref<24x342xbf16, #tpu.memory_space<vmem>>, vector<24x288xbf16>
    tpu.vector_store %arg12[%c0_44, %c19_45], %58 {strides = array<i32>} : memref<24x342xbf16, #tpu.memory_space<vmem>>, vector<24x288xbf16>,
    %c0_46 = arith.constant 0 : index
    %c0_47 = arith.constant 0 : index
    %64 = vector.load %arg12[%c0_46, %c0_47] : memref<24x342xbf16, #tpu.memory_space<vmem>>, vector<24x288xbf16>
    %c0_48 = arith.constant 0 : index
    %c0_49 = arith.constant 0 : index
    %65 = vector.load %arg11[%c0_48, %c0_49] : memref<216x288xbf16, #tpu.memory_space<vmem>>, vector<24x288xbf16>
    tpu.vector_store %arg11[%c0_48, %c0_49], %64 {strides = array<i32>} : memref<216x288xbf16, #tpu.memory_space<vmem>>, vector<24x288xbf16>,
    %c0_50 = arith.constant 0 : index
    %c1_51 = arith.constant 1 : index
    %66 = vector.load %arg12[%c0_50, %c1_51] : memref<24x342xbf16, #tpu.memory_space<vmem>>, vector<24x288xbf16>
    %c24_52 = arith.constant 24 : index
    %c0_53 = arith.constant 0 : index
    %67 = vector.load %arg11[%c24_52, %c0_53] : memref<216x288xbf16, #tpu.memory_space<vmem>>, vector<24x288xbf16>
    tpu.vector_store %arg11[%c24_52, %c0_53], %66 {strides = array<i32>} : memref<216x288xbf16, #tpu.memory_space<vmem>>, vector<24x288xbf16>,
    %c0_54 = arith.constant 0 : index
    %c2_55 = arith.constant 2 : index
    %68 = vector.load %arg12[%c0_54, %c2_55] : memref<24x342xbf16, #tpu.memory_space<vmem>>, vector<24x288xbf16>
    %c48_56 = arith.constant 48 : index
    %c0_57 = arith.constant 0 : index
    %69 = vector.load %arg11[%c48_56, %c0_57] : memref<216x288xbf16, #tpu.memory_space<vmem>>, vector<24x288xbf16>
    tpu.vector_store %arg11[%c48_56, %c0_57], %68 {strides = array<i32>} : memref<216x288xbf16, #tpu.memory_space<vmem>>, vector<24x288xbf16>,
    %c0_58 = arith.constant 0 : index
    %c18_59 = arith.constant 18 : index
    %70 = vector.load %arg12[%c0_58, %c18_59] : memref<24x342xbf16, #tpu.memory_space<vmem>>, vector<24x288xbf16>
    %c72_60 = arith.constant 72 : index
    %c0_61 = arith.constant 0 : index
    %71 = vector.load %arg11[%c72_60, %c0_61] : memref<216x288xbf16, #tpu.memory_space<vmem>>, vector<24x288xbf16>
    tpu.vector_store %arg11[%c72_60, %c0_61], %70 {strides = array<i32>} : memref<216x288xbf16, #tpu.memory_space<vmem>>, vector<24x288xbf16>,
    %c0_62 = arith.constant 0 : index
    %c19_63 = arith.constant 19 : index
    %72 = vector.load %arg12[%c0_62, %c19_63] : memref<24x342xbf16, #tpu.memory_space<vmem>>, vector<24x288xbf16>
    %c96_64 = arith.constant 96 : index
    %c0_65 = arith.constant 0 : index
    %73 = vector.load %arg11[%c96_64, %c0_65] : memref<216x288xbf16, #tpu.memory_space<vmem>>, vector<24x288xbf16>
    tpu.vector_store %arg11[%c96_64, %c0_65], %72 {strides = array<i32>} : memref<216x288xbf16, #tpu.memory_space<vmem>>, vector<24x288xbf16>,
    %c0_66 = arith.constant 0 : index
    %c20_67 = arith.constant 20 : index
    %74 = vector.load %arg12[%c0_66, %c20_67] : memref<24x342xbf16, #tpu.memory_space<vmem>>, vector<24x288xbf16>
    %c120_68 = arith.constant 120 : index
    %c0_69 = arith.constant 0 : index
    %75 = vector.load %arg11[%c120_68, %c0_69] : memref<216x288xbf16, #tpu.memory_space<vmem>>, vector<24x288xbf16>
    tpu.vector_store %arg11[%c120_68, %c0_69], %74 {strides = array<i32>} : memref<216x288xbf16, #tpu.memory_space<vmem>>, vector<24x288xbf16>,
    %c0_70 = arith.constant 0 : index
    %c36_71 = arith.constant 36 : index
    %76 = vector.load %arg12[%c0_70, %c36_71] : memref<24x342xbf16, #tpu.memory_space<vmem>>, vector<24x288xbf16>
    %c144_72 = arith.constant 144 : index
    %c0_73 = arith.constant 0 : index
    %77 = vector.load %arg11[%c144_72, %c0_73] : memref<216x288xbf16, #tpu.memory_space<vmem>>, vector<24x288xbf16>
    tpu.vector_store %arg11[%c144_72, %c0_73], %76 {strides = array<i32>} : memref<216x288xbf16, #tpu.memory_space<vmem>>, vector<24x288xbf16>,
    %c0_74 = arith.constant 0 : index
    %c37_75 = arith.constant 37 : index
    %78 = vector.load %arg12[%c0_74, %c37_75] : memref<24x342xbf16, #tpu.memory_space<vmem>>, vector<24x288xbf16>
    %c168_76 = arith.constant 168 : index
    %c0_77 = arith.constant 0 : index
    %79 = vector.load %arg11[%c168_76, %c0_77] : memref<216x288xbf16, #tpu.memory_space<vmem>>, vector<24x288xbf16>
    tpu.vector_store %arg11[%c168_76, %c0_77], %78 {strides = array<i32>} : memref<216x288xbf16, #tpu.memory_space<vmem>>, vector<24x288xbf16>,
    %c0_78 = arith.constant 0 : index
    %c38_79 = arith.constant 38 : index
    %80 = vector.load %arg12[%c0_78, %c38_79] : memref<24x342xbf16, #tpu.memory_space<vmem>>, vector<24x288xbf16>
    %c192_80 = arith.constant 192 : index
    %c0_81 = arith.constant 0 : index
    %81 = vector.load %arg11[%c192_80, %c0_81] : memref<216x288xbf16, #tpu.memory_space<vmem>>, vector<24x288xbf16>
    tpu.vector_store %arg11[%c192_80, %c0_81], %80 {strides = array<i32>} : memref<216x288xbf16, #tpu.memory_space<vmem>>, vector<24x288xbf16>,
    %c0_82 = arith.constant 0 : index
    %c0_83 = arith.constant 0 : index
    %82 = vector.load %arg4[%c0_82, %c0_83] : memref<12x216xbf16, #tpu.memory_space<vmem>>, vector<12x216xbf16>
    %c0_84 = arith.constant 0 : index
    %c0_85 = arith.constant 0 : index
    %83 = vector.load %arg11[%c0_84, %c0_85] : memref<216x288xbf16, #tpu.memory_space<vmem>>, vector<216x288xbf16>
    %cst_86 = arith.constant dense<0.000000e+00> : vector<12x288xf32>
    %84 = tpu.matmul %82, %83, %cst_86 {dimension_numbers = #tpu.dot_dimension_numbers<[1], [0], [0], [1], [0, 0, 1, 1], [], []>} : vector<12x216xbf16>, vector<216x288xbf16>, vector<12x288xf32> -> vector<12x288xf32>
    %c0_87 = arith.constant 0 : index
    %c0_88 = arith.constant 0 : index
    %85 = vector.load %arg5[%c0_87, %c0_88] : memref<12x1xf32, #tpu.memory_space<vmem>>, vector<12x1xf32>
    %86 = vector.broadcast %85 : vector<12x1xf32> to vector<12x288xf32>
    %87 = arith.addf %84, %86 : vector<12x288xf32>
    %cst_89 = arith.constant 0.000000e+00 : f32
    %88 = vector.broadcast %cst_89 : f32 to vector<12x288xf32>
    %89 = arith.maximumf %87, %88 : vector<12x288xf32>
    %cst_90 = arith.constant 0.000000e+00 : f32
    %90 = vector.shape_cast %18 : vector<1x288xi1> to vector<1x288xi1>
    %91 = vector.broadcast %90 : vector<1x288xi1> to vector<12x288xi1>
    %92 = vector.broadcast %cst_90 : f32 to vector<12x288xf32>
    %93 = arith.select %91, %89, %92 : vector<12x288xi1>, vector<12x288xf32>
    %94 = arith.truncf %93 : vector<12x288xf32> to vector<12x288xbf16>
    %cst_91 = arith.constant 0.000000e+00 : bf16
    %95 = vector.broadcast %cst_91 : bf16 to vector<12x19xbf16>
    %c0_92 = arith.constant 0 : index
    %c0_93 = arith.constant 0 : index
    %96 = vector.load %arg13[%c0_92, %c0_93] : memref<12x342xbf16, #tpu.memory_space<vmem>>, vector<12x19xbf16>
    tpu.vector_store %arg13[%c0_92, %c0_93], %95 {strides = array<i32>} : memref<12x342xbf16, #tpu.memory_space<vmem>>, vector<12x19xbf16>,
    %cst_94 = arith.constant 0.000000e+00 : bf16
    %97 = vector.broadcast %cst_94 : bf16 to vector<12x35xbf16>
    %c0_95 = arith.constant 0 : index
    %c307_96 = arith.constant 307 : index
    %98 = vector.load %arg13[%c0_95, %c307_96] : memref<12x342xbf16, #tpu.memory_space<vmem>>, vector<12x35xbf16>
    tpu.vector_store %arg13[%c0_95, %c307_96], %97 {strides = array<i32>} : memref<12x342xbf16, #tpu.memory_space<vmem>>, vector<12x35xbf16>,
    %c0_97 = arith.constant 0 : index
    %c19_98 = arith.constant 19 : index
    %99 = vector.load %arg13[%c0_97, %c19_98] : memref<12x342xbf16, #tpu.memory_space<vmem>>, vector<12x288xbf16>
    tpu.vector_store %arg13[%c0_97, %c19_98], %94 {strides = array<i32>} : memref<12x342xbf16, #tpu.memory_space<vmem>>, vector<12x288xbf16>,
    %c0_99 = arith.constant 0 : index
    %c0_100 = arith.constant 0 : index
    %100 = vector.load %arg13[%c0_99, %c0_100] : memref<12x342xbf16, #tpu.memory_space<vmem>>, vector<12x288xbf16>
    %c0_101 = arith.constant 0 : index
    %c0_102 = arith.constant 0 : index
    %101 = vector.load %arg11[%c0_101, %c0_102] : memref<216x288xbf16, #tpu.memory_space<vmem>>, vector<12x288xbf16>
    tpu.vector_store %arg11[%c0_101, %c0_102], %100 {strides = array<i32>} : memref<216x288xbf16, #tpu.memory_space<vmem>>, vector<12x288xbf16>,
    %c0_103 = arith.constant 0 : index
    %c1_104 = arith.constant 1 : index
    %102 = vector.load %arg13[%c0_103, %c1_104] : memref<12x342xbf16, #tpu.memory_space<vmem>>, vector<12x288xbf16>
    %c12 = arith.constant 12 : index
    %c0_105 = arith.constant 0 : index
    %103 = vector.load %arg11[%c12, %c0_105] : memref<216x288xbf16, #tpu.memory_space<vmem>>, vector<12x288xbf16>
    tpu.vector_store %arg11[%c12, %c0_105], %102 {strides = array<i32>} : memref<216x288xbf16, #tpu.memory_space<vmem>>, vector<12x288xbf16>,
    %c0_106 = arith.constant 0 : index
    %c2_107 = arith.constant 2 : index
    %104 = vector.load %arg13[%c0_106, %c2_107] : memref<12x342xbf16, #tpu.memory_space<vmem>>, vector<12x288xbf16>
    %c24_108 = arith.constant 24 : index
    %c0_109 = arith.constant 0 : index
    %105 = vector.load %arg11[%c24_108, %c0_109] : memref<216x288xbf16, #tpu.memory_space<vmem>>, vector<12x288xbf16>
    tpu.vector_store %arg11[%c24_108, %c0_109], %104 {strides = array<i32>} : memref<216x288xbf16, #tpu.memory_space<vmem>>, vector<12x288xbf16>,
    %c0_110 = arith.constant 0 : index
    %c18_111 = arith.constant 18 : index
    %106 = vector.load %arg13[%c0_110, %c18_111] : memref<12x342xbf16, #tpu.memory_space<vmem>>, vector<12x288xbf16>
    %c36_112 = arith.constant 36 : index
    %c0_113 = arith.constant 0 : index
    %107 = vector.load %arg11[%c36_112, %c0_113] : memref<216x288xbf16, #tpu.memory_space<vmem>>, vector<12x288xbf16>
    tpu.vector_store %arg11[%c36_112, %c0_113], %106 {strides = array<i32>} : memref<216x288xbf16, #tpu.memory_space<vmem>>, vector<12x288xbf16>,
    %c0_114 = arith.constant 0 : index
    %c19_115 = arith.constant 19 : index
    %108 = vector.load %arg13[%c0_114, %c19_115] : memref<12x342xbf16, #tpu.memory_space<vmem>>, vector<12x288xbf16>
    %c48_116 = arith.constant 48 : index
    %c0_117 = arith.constant 0 : index
    %109 = vector.load %arg11[%c48_116, %c0_117] : memref<216x288xbf16, #tpu.memory_space<vmem>>, vector<12x288xbf16>
    tpu.vector_store %arg11[%c48_116, %c0_117], %108 {strides = array<i32>} : memref<216x288xbf16, #tpu.memory_space<vmem>>, vector<12x288xbf16>,
    %c0_118 = arith.constant 0 : index
    %c20_119 = arith.constant 20 : index
    %110 = vector.load %arg13[%c0_118, %c20_119] : memref<12x342xbf16, #tpu.memory_space<vmem>>, vector<12x288xbf16>
    %c60 = arith.constant 60 : index
    %c0_120 = arith.constant 0 : index
    %111 = vector.load %arg11[%c60, %c0_120] : memref<216x288xbf16, #tpu.memory_space<vmem>>, vector<12x288xbf16>
    tpu.vector_store %arg11[%c60, %c0_120], %110 {strides = array<i32>} : memref<216x288xbf16, #tpu.memory_space<vmem>>, vector<12x288xbf16>,
    %c0_121 = arith.constant 0 : index
    %c36_122 = arith.constant 36 : index
    %112 = vector.load %arg13[%c0_121, %c36_122] : memref<12x342xbf16, #tpu.memory_space<vmem>>, vector<12x288xbf16>
    %c72_123 = arith.constant 72 : index
    %c0_124 = arith.constant 0 : index
    %113 = vector.load %arg11[%c72_123, %c0_124] : memref<216x288xbf16, #tpu.memory_space<vmem>>, vector<12x288xbf16>
    tpu.vector_store %arg11[%c72_123, %c0_124], %112 {strides = array<i32>} : memref<216x288xbf16, #tpu.memory_space<vmem>>, vector<12x288xbf16>,
    %c0_125 = arith.constant 0 : index
    %c37_126 = arith.constant 37 : index
    %114 = vector.load %arg13[%c0_125, %c37_126] : memref<12x342xbf16, #tpu.memory_space<vmem>>, vector<12x288xbf16>
    %c84 = arith.constant 84 : index
    %c0_127 = arith.constant 0 : index
    %115 = vector.load %arg11[%c84, %c0_127] : memref<216x288xbf16, #tpu.memory_space<vmem>>, vector<12x288xbf16>
    tpu.vector_store %arg11[%c84, %c0_127], %114 {strides = array<i32>} : memref<216x288xbf16, #tpu.memory_space<vmem>>, vector<12x288xbf16>,
    %c0_128 = arith.constant 0 : index
    %c38_129 = arith.constant 38 : index
    %116 = vector.load %arg13[%c0_128, %c38_129] : memref<12x342xbf16, #tpu.memory_space<vmem>>, vector<12x288xbf16>
    %c96_130 = arith.constant 96 : index
    %c0_131 = arith.constant 0 : index
    %117 = vector.load %arg11[%c96_130, %c0_131] : memref<216x288xbf16, #tpu.memory_space<vmem>>, vector<12x288xbf16>
    tpu.vector_store %arg11[%c96_130, %c0_131], %116 {strides = array<i32>} : memref<216x288xbf16, #tpu.memory_space<vmem>>, vector<12x288xbf16>,
    %c0_132 = arith.constant 0 : index
    %c0_133 = arith.constant 0 : index
    %118 = vector.load %arg6[%c0_132, %c0_133] : memref<12x108xbf16, #tpu.memory_space<vmem>>, vector<12x108xbf16>
    %c0_134 = arith.constant 0 : index
    %c0_135 = arith.constant 0 : index
    %119 = vector.load %arg11[%c0_134, %c0_135] : memref<216x288xbf16, #tpu.memory_space<vmem>>, vector<108x288xbf16>
    %cst_136 = arith.constant dense<0.000000e+00> : vector<12x288xf32>
    %120 = tpu.matmul %118, %119, %cst_136 {dimension_numbers = #tpu.dot_dimension_numbers<[1], [0], [0], [1], [0, 0, 1, 1], [], []>} : vector<12x108xbf16>, vector<108x288xbf16>, vector<12x288xf32> -> vector<12x288xf32>
    %c0_137 = arith.constant 0 : index
    %c0_138 = arith.constant 0 : index
    %121 = vector.load %arg7[%c0_137, %c0_138] : memref<12x1xf32, #tpu.memory_space<vmem>>, vector<12x1xf32>
    %122 = vector.broadcast %121 : vector<12x1xf32> to vector<12x288xf32>
    %123 = arith.addf %120, %122 : vector<12x288xf32>
    %cst_139 = arith.constant 0.000000e+00 : f32
    %124 = vector.broadcast %cst_139 : f32 to vector<12x288xf32>
    %125 = arith.maximumf %123, %124 : vector<12x288xf32>
    %cst_140 = arith.constant 0.000000e+00 : f32
    %126 = vector.shape_cast %18 : vector<1x288xi1> to vector<1x288xi1>
    %127 = vector.broadcast %126 : vector<1x288xi1> to vector<12x288xi1>
    %128 = vector.broadcast %cst_140 : f32 to vector<12x288xf32>
    %129 = arith.select %127, %125, %128 : vector<12x288xi1>, vector<12x288xf32>
    %130 = arith.truncf %129 : vector<12x288xf32> to vector<12x288xbf16>
    %cst_141 = arith.constant 0.000000e+00 : bf16
    %131 = vector.broadcast %cst_141 : bf16 to vector<12x19xbf16>
    %c0_142 = arith.constant 0 : index
    %c0_143 = arith.constant 0 : index
    %132 = vector.load %arg14[%c0_142, %c0_143] : memref<12x342xbf16, #tpu.memory_space<vmem>>, vector<12x19xbf16>
    tpu.vector_store %arg14[%c0_142, %c0_143], %131 {strides = array<i32>} : memref<12x342xbf16, #tpu.memory_space<vmem>>, vector<12x19xbf16>,
    %cst_144 = arith.constant 0.000000e+00 : bf16
    %133 = vector.broadcast %cst_144 : bf16 to vector<12x35xbf16>
    %c0_145 = arith.constant 0 : index
    %c307_146 = arith.constant 307 : index
    %134 = vector.load %arg14[%c0_145, %c307_146] : memref<12x342xbf16, #tpu.memory_space<vmem>>, vector<12x35xbf16>
    tpu.vector_store %arg14[%c0_145, %c307_146], %133 {strides = array<i32>} : memref<12x342xbf16, #tpu.memory_space<vmem>>, vector<12x35xbf16>,
    %c0_147 = arith.constant 0 : index
    %c19_148 = arith.constant 19 : index
    %135 = vector.load %arg14[%c0_147, %c19_148] : memref<12x342xbf16, #tpu.memory_space<vmem>>, vector<12x288xbf16>
    tpu.vector_store %arg14[%c0_147, %c19_148], %130 {strides = array<i32>} : memref<12x342xbf16, #tpu.memory_space<vmem>>, vector<12x288xbf16>,
    %cst_149 = arith.constant 0.000000e+00 : f32
    %136 = vector.broadcast %cst_149 : f32 to vector<12x288xf32>
    %c0_150 = arith.constant 0 : index
    %c0_151 = arith.constant 0 : index
    %c0_152 = arith.constant 0 : index
    %137 = vector.load %arg8[%c0_150, %c0_151, %c0_152] : memref<9x12x1xf32, #tpu.memory_space<vmem>>, vector<1x12x1xf32>
    %138 = vector.shape_cast %137 : vector<1x12x1xf32> to vector<12x1xf32>
    %c0_153 = arith.constant 0 : index
    %c0_154 = arith.constant 0 : index
    %139 = vector.load %arg14[%c0_153, %c0_154] : memref<12x342xbf16, #tpu.memory_space<vmem>>, vector<12x288xbf16>
    %140 = arith.extf %139 : vector<12x288xbf16> to vector<12x288xf32>
    %141 = vector.broadcast %138 : vector<12x1xf32> to vector<12x288xf32>
    %142 = arith.mulf %141, %140 : vector<12x288xf32>
    %143 = arith.addf %136, %142 : vector<12x288xf32>
    %c1_155 = arith.constant 1 : index
    %c0_156 = arith.constant 0 : index
    %c0_157 = arith.constant 0 : index
    %144 = vector.load %arg8[%c1_155, %c0_156, %c0_157] : memref<9x12x1xf32, #tpu.memory_space<vmem>>, vector<1x12x1xf32>
    %145 = vector.shape_cast %144 : vector<1x12x1xf32> to vector<12x1xf32>
    %c0_158 = arith.constant 0 : index
    %c1_159 = arith.constant 1 : index
    %146 = vector.load %arg14[%c0_158, %c1_159] : memref<12x342xbf16, #tpu.memory_space<vmem>>, vector<12x288xbf16>
    %147 = arith.extf %146 : vector<12x288xbf16> to vector<12x288xf32>
    %148 = vector.broadcast %145 : vector<12x1xf32> to vector<12x288xf32>
    %149 = arith.mulf %148, %147 : vector<12x288xf32>
    %150 = arith.addf %143, %149 : vector<12x288xf32>
    %c2_160 = arith.constant 2 : index
    %c0_161 = arith.constant 0 : index
    %c0_162 = arith.constant 0 : index
    %151 = vector.load %arg8[%c2_160, %c0_161, %c0_162] : memref<9x12x1xf32, #tpu.memory_space<vmem>>, vector<1x12x1xf32>
    %152 = vector.shape_cast %151 : vector<1x12x1xf32> to vector<12x1xf32>
    %c0_163 = arith.constant 0 : index
    %c2_164 = arith.constant 2 : index
    %153 = vector.load %arg14[%c0_163, %c2_164] : memref<12x342xbf16, #tpu.memory_space<vmem>>, vector<12x288xbf16>
    %154 = arith.extf %153 : vector<12x288xbf16> to vector<12x288xf32>
    %155 = vector.broadcast %152 : vector<12x1xf32> to vector<12x288xf32>
    %156 = arith.mulf %155, %154 : vector<12x288xf32>
    %157 = arith.addf %150, %156 : vector<12x288xf32>
    %c3 = arith.constant 3 : index
    %c0_165 = arith.constant 0 : index
    %c0_166 = arith.constant 0 : index
    %158 = vector.load %arg8[%c3, %c0_165, %c0_166] : memref<9x12x1xf32, #tpu.memory_space<vmem>>, vector<1x12x1xf32>
    %159 = vector.shape_cast %158 : vector<1x12x1xf32> to vector<12x1xf32>
    %c0_167 = arith.constant 0 : index
    %c18_168 = arith.constant 18 : index
    %160 = vector.load %arg14[%c0_167, %c18_168] : memref<12x342xbf16, #tpu.memory_space<vmem>>, vector<12x288xbf16>
    %161 = arith.extf %160 : vector<12x288xbf16> to vector<12x288xf32>
    %162 = vector.broadcast %159 : vector<12x1xf32> to vector<12x288xf32>
    %163 = arith.mulf %162, %161 : vector<12x288xf32>
    %164 = arith.addf %157, %163 : vector<12x288xf32>
    %c4 = arith.constant 4 : index
    %c0_169 = arith.constant 0 : index
    %c0_170 = arith.constant 0 : index
    %165 = vector.load %arg8[%c4, %c0_169, %c0_170] : memref<9x12x1xf32, #tpu.memory_space<vmem>>, vector<1x12x1xf32>
    %166 = vector.shape_cast %165 : vector<1x12x1xf32> to vector<12x1xf32>
    %c0_171 = arith.constant 0 : index
    %c19_172 = arith.constant 19 : index
    %167 = vector.load %arg14[%c0_171, %c19_172] : memref<12x342xbf16, #tpu.memory_space<vmem>>, vector<12x288xbf16>
    %168 = arith.extf %167 : vector<12x288xbf16> to vector<12x288xf32>
    %169 = vector.broadcast %166 : vector<12x1xf32> to vector<12x288xf32>
    %170 = arith.mulf %169, %168 : vector<12x288xf32>
    %171 = arith.addf %164, %170 : vector<12x288xf32>
    %c5 = arith.constant 5 : index
    %c0_173 = arith.constant 0 : index
    %c0_174 = arith.constant 0 : index
    %172 = vector.load %arg8[%c5, %c0_173, %c0_174] : memref<9x12x1xf32, #tpu.memory_space<vmem>>, vector<1x12x1xf32>
    %173 = vector.shape_cast %172 : vector<1x12x1xf32> to vector<12x1xf32>
    %c0_175 = arith.constant 0 : index
    %c20_176 = arith.constant 20 : index
    %174 = vector.load %arg14[%c0_175, %c20_176] : memref<12x342xbf16, #tpu.memory_space<vmem>>, vector<12x288xbf16>
    %175 = arith.extf %174 : vector<12x288xbf16> to vector<12x288xf32>
    %176 = vector.broadcast %173 : vector<12x1xf32> to vector<12x288xf32>
    %177 = arith.mulf %176, %175 : vector<12x288xf32>
    %178 = arith.addf %171, %177 : vector<12x288xf32>
    %c6 = arith.constant 6 : index
    %c0_177 = arith.constant 0 : index
    %c0_178 = arith.constant 0 : index
    %179 = vector.load %arg8[%c6, %c0_177, %c0_178] : memref<9x12x1xf32, #tpu.memory_space<vmem>>, vector<1x12x1xf32>
    %180 = vector.shape_cast %179 : vector<1x12x1xf32> to vector<12x1xf32>
    %c0_179 = arith.constant 0 : index
    %c36_180 = arith.constant 36 : index
    %181 = vector.load %arg14[%c0_179, %c36_180] : memref<12x342xbf16, #tpu.memory_space<vmem>>, vector<12x288xbf16>
    %182 = arith.extf %181 : vector<12x288xbf16> to vector<12x288xf32>
    %183 = vector.broadcast %180 : vector<12x1xf32> to vector<12x288xf32>
    %184 = arith.mulf %183, %182 : vector<12x288xf32>
    %185 = arith.addf %178, %184 : vector<12x288xf32>
    %c7 = arith.constant 7 : index
    %c0_181 = arith.constant 0 : index
    %c0_182 = arith.constant 0 : index
    %186 = vector.load %arg8[%c7, %c0_181, %c0_182] : memref<9x12x1xf32, #tpu.memory_space<vmem>>, vector<1x12x1xf32>
    %187 = vector.shape_cast %186 : vector<1x12x1xf32> to vector<12x1xf32>
    %c0_183 = arith.constant 0 : index
    %c37_184 = arith.constant 37 : index
    %188 = vector.load %arg14[%c0_183, %c37_184] : memref<12x342xbf16, #tpu.memory_space<vmem>>, vector<12x288xbf16>
    %189 = arith.extf %188 : vector<12x288xbf16> to vector<12x288xf32>
    %190 = vector.broadcast %187 : vector<12x1xf32> to vector<12x288xf32>
    %191 = arith.mulf %190, %189 : vector<12x288xf32>
    %192 = arith.addf %185, %191 : vector<12x288xf32>
    %c8 = arith.constant 8 : index
    %c0_185 = arith.constant 0 : index
    %c0_186 = arith.constant 0 : index
    %193 = vector.load %arg8[%c8, %c0_185, %c0_186] : memref<9x12x1xf32, #tpu.memory_space<vmem>>, vector<1x12x1xf32>
    %194 = vector.shape_cast %193 : vector<1x12x1xf32> to vector<12x1xf32>
    %c0_187 = arith.constant 0 : index
    %c38_188 = arith.constant 38 : index
    %195 = vector.load %arg14[%c0_187, %c38_188] : memref<12x342xbf16, #tpu.memory_space<vmem>>, vector<12x288xbf16>
    %196 = arith.extf %195 : vector<12x288xbf16> to vector<12x288xf32>
    %197 = vector.broadcast %194 : vector<12x1xf32> to vector<12x288xf32>
    %198 = arith.mulf %197, %196 : vector<12x288xf32>
    %199 = arith.addf %192, %198 : vector<12x288xf32>
    %cst_189 = arith.constant dense<0.000000e+00> : vector<288xf32>
    %200 = vector.multi_reduction <add>, %199, %cst_189 [0] : vector<12x288xf32> to vector<288xf32>
    %201 = vector.shape_cast %200 : vector<288xf32> to vector<1x288xf32>
    %c0_190 = arith.constant 0 : index
    %c0_191 = arith.constant 0 : index
    %202 = vector.load %arg9[%c0_190, %c0_191] : memref<1x1xf32, #tpu.memory_space<vmem>>, vector<1x1xf32>
    %203 = vector.broadcast %202 : vector<1x1xf32> to vector<1x288xf32>
    %204 = arith.addf %201, %203 : vector<1x288xf32>
    %c0_192 = arith.constant 0 : index
    %c0_193 = arith.constant 0 : index
    %c0_194 = arith.constant 0 : index
    %205 = vector.load %arg10[%c0_192, %c0_193, %c0_194] : memref<1x1x288xf32, #tpu.memory_space<vmem>>, vector<1x1x288xf32>
    %206 = vector.shape_cast %205 : vector<1x1x288xf32> to vector<1x288xf32>
    %207 = vector.shape_cast %204 : vector<1x288xf32> to vector<1x1x288xf32>
    tpu.vector_store %arg10[%c0_192, %c0_193, %c0_194], %207 {strides = array<i32>} : memref<1x1x288xf32, #tpu.memory_space<vmem>>, vector<1x1x288xf32>,
    return
  }
  func.func @transform_0(%arg0: i32) -> (i32, i32, i32) {
    %c0_i32 = arith.constant 0 : i32
    %c0_i32_0 = arith.constant 0 : i32
    %c0_i32_1 = arith.constant 0 : i32
    return %arg0, %c0_i32, %c0_i32_0 : i32, i32, i32
  }
  func.func @transform_1(%arg0: i32) -> (i32, i32) {
    %c0_i32 = arith.constant 0 : i32
    %c0_i32_0 = arith.constant 0 : i32
    %c0_i32_1 = arith.constant 0 : i32
    return %c0_i32, %c0_i32_0 : i32, i32
  }
  func.func @transform_2(%arg0: i32) -> (i32, i32) {
    %c0_i32 = arith.constant 0 : i32
    %c0_i32_0 = arith.constant 0 : i32
    %c0_i32_1 = arith.constant 0 : i32
    return %c0_i32, %c0_i32_0 : i32, i32
  }
  func.func @transform_3(%arg0: i32) -> (i32, i32) {
    %c0_i32 = arith.constant 0 : i32
    %c0_i32_0 = arith.constant 0 : i32
    %c0_i32_1 = arith.constant 0 : i32
    return %c0_i32, %c0_i32_0 : i32, i32
  }
  func.func @transform_4(%arg0: i32) -> (i32, i32) {
    %c0_i32 = arith.constant 0 : i32
    %c0_i32_0 = arith.constant 0 : i32
    %c0_i32_1 = arith.constant 0 : i32
    return %c0_i32, %c0_i32_0 : i32, i32
  }
  func.func @transform_5(%arg0: i32) -> (i32, i32) {
    %c0_i32 = arith.constant 0 : i32
    %c0_i32_0 = arith.constant 0 : i32
    %c0_i32_1 = arith.constant 0 : i32
    return %c0_i32, %c0_i32_0 : i32, i32
  }
  func.func @transform_6(%arg0: i32) -> (i32, i32) {
    %c0_i32 = arith.constant 0 : i32
    %c0_i32_0 = arith.constant 0 : i32
    %c0_i32_1 = arith.constant 0 : i32
    return %c0_i32, %c0_i32_0 : i32, i32
  }
  func.func @transform_7(%arg0: i32) -> (i32, i32, i32) {
    %c0_i32 = arith.constant 0 : i32
    %c0_i32_0 = arith.constant 0 : i32
    %c0_i32_1 = arith.constant 0 : i32
    %c0_i32_2 = arith.constant 0 : i32
    return %c0_i32, %c0_i32_0, %c0_i32_1 : i32, i32, i32
  }
  func.func @transform_8(%arg0: i32) -> (i32, i32) {
    %c0_i32 = arith.constant 0 : i32
    %c0_i32_0 = arith.constant 0 : i32
    %c0_i32_1 = arith.constant 0 : i32
    return %c0_i32, %c0_i32_0 : i32, i32
  }
  func.func @transform_9(%arg0: i32) -> (i32, i32, i32) {
    %c0_i32 = arith.constant 0 : i32
    %c0_i32_0 = arith.constant 0 : i32
    %c0_i32_1 = arith.constant 0 : i32
    return %arg0, %c0_i32, %c0_i32_0 : i32, i32, i32
  }
}

</mosaic_0001>

<bundles_post_ra>
// kernel: tail_forward.1
= control target key start
LH: loop header
LB: loop body
LE: loop exit
PB: predicated region body
PF: predicated region fallthrough
CT: control target
= control target key end

     0   :  { %s3707_s11 = smov 0   ;;  %s4849_s0 = inlined_call_operand.vmem [shape: bf16[2,24,342], index: 0, kind: input, shape index: {}]   ;;  %s4850_s1 = inlined_call_operand.vmem [shape: bf16[24,216], index: 1, kind: input, shape index: {}]   ;;  %s4851_s2 = inlined_call_operand.vmem [shape: f32[24,1], index: 2, kind: input, shape index: {}]   ;;  %s4852_s3 = inlined_call_operand.vmem [shape: bf16[12,216], index: 3, kind: input, shape index: {}]   ;;  %s4853_s4 = inlined_call_operand.vmem [shape: f32[12,1], index: 4, kind: input, shape index: {}]   ;;  %s4854_s5 = inlined_call_operand.vmem [shape: bf16[12,108], index: 5, kind: input, shape index: {}]   ;;  %s4855_s6 = inlined_call_operand.vmem [shape: f32[12,1], index: 6, kind: input, shape index: {}]   ;;  %s4856_s7 = inlined_call_operand.vmem [shape: f32[9,12,1], index: 7, kind: input, shape index: {}]   ;;  %s4857_s8 = inlined_call_operand.<no memory space> [shape: f32[1,1], index: 8, kind: input, shape index: {}]   ;;  %s4858_s9 = inlined_call_operand.vmem [shape: f32[2,1,288], index: 9, kind: output, shape index: {}]  }
   0x1   :  { %v14_v0 = vstv %s4857_s8 }
   0x2   :  { %15 = vst [vmem:[#allocation6] sm:$0x1] %v14_v0 }
   0x3 LB: > { %s3357_s12 = sadd.s32 4294967295, %s3639_s11   ;;  %p3361_p0 = scmp.ge.s32.totalorder %s3639_s11, 1  ;;  %s3639_s11 = sphi %s3707_s11, %s21_s11  }
   0x4   : > { %p289_p1 = scmp.lt.s32.totalorder %s3639_s11, 3 }
   0x6   : > { %p290_p2 = pnand %p3361_p0, %p289_p1 }
   0x7   : > { %p324_p3 = scmp.lt.s32.totalorder (!%p290_p2), %s3357_s12, 1  ;;  %s3642_s16 = smov (!%p290_p2), 108  }
   0x8   : > { %293 = sbr.rel (%p290_p2) target bundleno = 1876 (0x754), region = 56  ;;  %s3643_s17 = smov (!%p290_p2), 109  }
   0x9   : > { %s3644_s18 = smov (!%p290_p2), 110   ;;  %s3645_s19 = smov (!%p290_p2), 126  }
   0xa   : > { %s3646_s20 = smov (!%p290_p2), 127   ;;  %s3647_s21 = smov (!%p290_p2), 90  }
   0xb   : > { %s3648_s22 = smov (!%p290_p2), 91   ;;  %s3649_s23 = smov (!%p290_p2), 92  }
   0xc   : > { %s3650_s24 = smov (!%p290_p2), 19  }
   0xd   : > { %s4929_s12 = smov (!%p324_p3, %s3357_s12), 1  ;;  %v3641_v3 = vmov 0   ;;  %vm396_vm0 = vcmask 257024   ;;  %v3605_v31 = vld [vmem:[%s4850_s1 + $0x4] ss:$8 sps:$4 sm:$0xff]   ;;  %vm1101_vm1 = vcmask 719872  }
   0xe   : > { %s3558_s8 = smul.u32 36, %s4929_s12  ;;  %1169 = vmatprep.subr.bf16.mxu1 %v3641_v3  ;;  %3588 = vset.pattern.permute.xlu1 %v3641_v3  ;;  %v854_v33 = vld [vmem:[%s4851_s2 + $0x10] sm:$0xff]  ;;  %v852_v34 = vld [vmem:[%s4851_s2] sm:$0xff]  ;;  %v853_v35 = vld [vmem:[%s4851_s2 + $0x8] sm:$0xff]  ;;  %vm432_vm2 = vcmask 1043456   ;;  %vm630_vm3 = vcmask 883712  }
   0xf   : > { %3587 = vset.pattern.permute.xlu0 %v3641_v3  ;;  %3412 = vmatprep.mubr.msk.bf16.mxu1 %vm1101_vm1, %v3605_v31  ;;  %vm581_vm4 = vcmask 891904   ;;  %vm4863_vm5 = vcmask 900096   ;;  %vm4862_vm6 = vcmask 1031168   ;;  %vm4861_vm7 = vcmask 1039360  }
  0x10   : > { %s3721_s15 = scalar_lea.vmem %s4849_s0, %s3558_s8  ;;  %3410 = vmatprep.mubr.msk.bf16.mxu0 %vm1101_vm1, %v3605_v31  ;;  %vm777_vm8 = vcmask 736256   ;;  %vm4860_vm9 = vcmask 744448   ;;  %vm4859_vm10 = vcmask 752640   ;;  %vm1247_vm15 = vcmask 150528  }
  0x11   : > { %v3724_v1 = vld [vmem:[%s3721_s15] sm:$0xff]  ;;  %v3727_v2 = vld [vmem:[%s3721_s15 + $0x18] sm:$0xff]  ;;  %v600_v4 = vld [vmem:[%s3721_s15 + $0x8] sm:$0xf]  ;;  %1248 = vst.msk [vmem:[#allocation3] sm:$0xf] %vm1247_vm15, %v3641_v3 }
  0x12   : > { %611 = vrot.lane.b32.xlu1 %v3724_v1, %s3642_s16  ;;  %570 = vrot.lane.b32.xlu0 %v3727_v2, %s3643_s17  ;;  %v555_v5 = vld [vmem:[%s3721_s15 + $0x20] sm:$0xf]  ;;  %v551_v6 = vld [vmem:[%s3721_s15 + $0x8] sm:$0xf]  ;;  %1249 = vst.msk [vmem:[#allocation3 + $0xc] sm:$0xf] %vm1247_vm15, %v3641_v3 }
  0x13   : > { %v553_v7 = vld [vmem:[%s3721_s15 + $0x14] sm:$0xf]  ;;  %v3746_v8 = vld [vmem:[%s3721_s15 + $0xc] sm:$0xff]  ;;  %v506_v10 = vld [vmem:[%s3721_s15 + $0x20] sm:$0xf] }
  0x14   : > { %v504_v9 = vld [vmem:[%s3721_s15 + $0x14] sm:$0xf]  ;;  %v457_v11 = vld [vmem:[%s3721_s15 + $0x20] sm:$0xf]  ;;  %v502_v12 = vld [vmem:[%s3721_s15 + $0x8] sm:$0xf] }
  0x15   : > { %v453_v13 = vld [vmem:[%s3721_s15 + $0x8] sm:$0xf]  ;;  %v455_v14 = vld [vmem:[%s3721_s15 + $0x14] sm:$0xf]  ;;  %v394_v15 = vld [vmem:[%s3721_s15 + $0x20] sm:$0xf] }
  0x16   : > { %613 = vrot.lane.b32.xlu1 %v600_v4, %s3642_s16  ;;  %572 = vrot.lane.b32.xlu0 %v555_v5, %s3643_s17  ;;  %401 = vst.msk [vmem:[#allocation2 + $0x20] sm:$0xf] %vm396_vm0, %v394_v15  ;;  %v405_v16 = vld [vmem:[%s3721_s15 + $0x14] sm:$0xf]  ;;  %v390_v17 = vld [vmem:[%s3721_s15 + $0x8] sm:$0xf] }
  0x17   : > { %v392_v18 = vld [vmem:[%s3721_s15 + $0x14] sm:$0xf]  ;;  %397 = vst.msk [vmem:[#allocation2 + $0x8] sm:$0xf] %vm396_vm0, %v390_v17  ;;  %v407_v19 = vld [vmem:[%s3721_s15 + $0x20] sm:$0xf] }
  0x18   : > { %399 = vst.msk [vmem:[#allocation2 + $0x14] sm:$0xf] %vm396_vm0, %v392_v18  ;;  %v403_v20 = vld [vmem:[%s3721_s15 + $0x8] sm:$0xf]  ;;  %v751_v21 = vld [vmem:[%s3721_s15 + $0x20] sm:$0xf] }
  0x19   : > { %v747_v22 = vld [vmem:[%s3721_s15 + $0x8] sm:$0xf]  ;;  %v749_v23 = vld [vmem:[%s3721_s15 + $0x14] sm:$0xf]  ;;  %v702_v25 = vld [vmem:[%s3721_s15 + $0x20] sm:$0xf] }
  0x1a   : > { %564 = vrot.lane.b32.xlu1 %v551_v6, %s3643_s17  ;;  %562 = vrot.lane.b32.xlu0 %v3724_v1, %s3643_s17  ;;  %v700_v24 = vld [vmem:[%s3721_s15 + $0x14] sm:$0xf]  ;;  %v653_v26 = vld [vmem:[%s3721_s15 + $0x20] sm:$0xf]  ;;  %1250 = vst.msk [vmem:[#allocation3 + $0x18] sm:$0xf] %vm1247_vm15, %v3641_v3 }
  0x1b   : > { %v698_v27 = vld [vmem:[%s3721_s15 + $0x8] sm:$0xf]  ;;  %v651_v29 = vld [vmem:[%s3721_s15 + $0x14] sm:$0xf]  ;;  %v604_v32 = vld [vmem:[%s3721_s15 + $0x20] sm:$0xf] }
  0x1c   : > { %v649_v28 = vld [vmem:[%s3721_s15 + $0x8] sm:$0xf]  ;;  %v602_v30 = vld [vmem:[%s3721_s15 + $0x14] sm:$0xf]  ;;  %2114 = vst.msk [vmem:[#allocation4] sm:$0xf] %vm1247_vm15, %v3641_v3 }
  0x1d   : > { %2729 = vst.msk [vmem:[#allocation5] sm:$0xf] %vm1247_vm15, %v3641_v3 }
  0x1e   : > { %568 = vrot.lane.b32.xlu1 %v553_v7, %s3643_s17  ;;  %566 = vrot.lane.b32.xlu0 %v3746_v8, %s3643_s17 }
  0x22   : > { %519 = vrot.lane.b32.xlu1 %v504_v9, %s3644_s18  ;;  %517 = vrot.lane.b32.xlu0 %v3746_v8, %s3644_s18 }
  0x26   : > { %523 = vrot.lane.b32.xlu1 %v506_v10, %s3644_s18  ;;  %521 = vrot.lane.b32.xlu0 %v3727_v2, %s3644_s18 }
  0x2a   : > { %474 = vrot.lane.b32.xlu1 %v457_v11, %s3645_s19  ;;  %472 = vrot.lane.b32.xlu0 %v3727_v2, %s3645_s19 }
  0x2e   : > { %515 = vrot.lane.b32.xlu1 %v502_v12, %s3644_s18  ;;  %513 = vrot.lane.b32.xlu0 %v3724_v1, %s3644_s18 }
  0x32   : > { %466 = vrot.lane.b32.xlu1 %v453_v13, %s3645_s19  ;;  %464 = vrot.lane.b32.xlu0 %v3724_v1, %s3645_s19 }
  0x36   : > { %470 = vrot.lane.b32.xlu1 %v455_v14, %s3645_s19  ;;  %468 = vrot.lane.b32.xlu0 %v3746_v8, %s3645_s19 }
  0x3a   : > { %420 = vrot.lane.b32.xlu1 %v405_v16, %s3646_s20  ;;  %418 = vrot.lane.b32.xlu0 %v3746_v8, %s3646_s20 }
  0x3e   : > { %424 = vrot.lane.b32.xlu1 %v407_v19, %s3646_s20  ;;  %422 = vrot.lane.b32.xlu0 %v3727_v2, %s3646_s20 }
  0x42   : > { %416 = vrot.lane.b32.xlu1 %v403_v20, %s3646_s20  ;;  %414 = vrot.lane.b32.xlu0 %v3724_v1, %s3646_s20 }
  0x46   : > { %768 = vrot.lane.b32.xlu1 %v751_v21, %s3647_s21  ;;  %766 = vrot.lane.b32.xlu0 %v3727_v2, %s3647_s21 }
  0x4a   : > { %760 = vrot.lane.b32.xlu1 %v747_v22, %s3647_s21  ;;  %758 = vrot.lane.b32.xlu0 %v3724_v1, %s3647_s21 }
  0x4e   : > { %764 = vrot.lane.b32.xlu1 %v749_v23, %s3647_s21  ;;  %762 = vrot.lane.b32.xlu0 %v3746_v8, %s3647_s21 }
  0x52   : > { %715 = vrot.lane.b32.xlu1 %v700_v24, %s3648_s22  ;;  %713 = vrot.lane.b32.xlu0 %v3746_v8, %s3648_s22 }
  0x56   : > { %719 = vrot.lane.b32.xlu1 %v702_v25, %s3648_s22  ;;  %717 = vrot.lane.b32.xlu0 %v3727_v2, %s3648_s22 }
  0x5a   : > { %670 = vrot.lane.b32.xlu1 %v653_v26, %s3649_s23  ;;  %668 = vrot.lane.b32.xlu0 %v3727_v2, %s3649_s23 }
  0x5e   : > { %711 = vrot.lane.b32.xlu1 %v698_v27, %s3648_s22  ;;  %709 = vrot.lane.b32.xlu0 %v3724_v1, %s3648_s22 }
  0x62   : > { %662 = vrot.lane.b32.xlu1 %v649_v28, %s3649_s23  ;;  %660 = vrot.lane.b32.xlu0 %v3724_v1, %s3649_s23 }
  0x66   : > { %666 = vrot.lane.b32.xlu1 %v651_v29, %s3649_s23  ;;  %664 = vrot.lane.b32.xlu0 %v3746_v8, %s3649_s23 }
  0x6a   : > { %617 = vrot.lane.b32.xlu1 %v602_v30, %s3642_s16  ;;  %615 = vrot.lane.b32.xlu0 %v3746_v8, %s3642_s16 }
  0x6e   : > { %621 = vrot.lane.b32.xlu1 %v604_v32, %s3642_s16  ;;  %619 = vrot.lane.b32.xlu0 %v3727_v2, %s3642_s16 }
  0x72   : > { %867 = vperm.xlu1 %3588, %v854_v33   ;;  %857 = vperm.xlu0 %3587, %v852_v34  }
  0x76   : > { %862 = vperm.xlu1 %3588, %v853_v35  }
  0x84   : > { %v612_v36 = vpop.permute.xlu1 %611  ;;  %v571_v37 = vpop.permute.xlu0 %570 }
  0x85   : > { %v578_v38 = vrot.slane %v571_v37, 4  ;;  %v623_v41 = vrot.slane %v612_v36, 4 }
  0x88   : > { %v614_v39 = vpop.permute.xlu1 %613  ;;  %v573_v40 = vpop.permute.xlu0 %572 }
  0x89   : > { %v624_v42 = vrot.slane %v614_v39, 4  ;;  %643 = vst.msk [vmem:[#allocation2 + $0xbc] sm:$0xf] %vm396_vm0, %v614_v39  ;;  %v579_v43 = vrot.slane %v573_v40, 4  ;;  %598 = vst.msk [vmem:[#allocation2 + $0xb0] sm:$0xf] %vm396_vm0, %v573_v40 }
  0x8b   : > { %v629_v44 = vsel %vm432_vm2, %v623_v41, %v624_v42  ;;  %v585_v45 = vsel %vm432_vm2, %v578_v38, %v579_v43 }
  0x8c   : > { %v631_v46 = vsel %vm630_vm3, %v612_v36, %v629_v44  ;;  %v586_v47 = vsel %vm581_vm4, %v571_v37, %v585_v45  ;;  %v565_v48 = vpop.permute.xlu1 %564  ;;  %v563_v49 = vpop.permute.xlu0 %562 }
  0x8d   : > { %v575_v50 = vrot.slane %v565_v48, 4  ;;  %594 = vst.msk [vmem:[#allocation2 + $0x98] sm:$0xf] %vm396_vm0, %v565_v48  ;;  %v574_v51 = vrot.slane %v563_v49, 4  ;;  %v3389_v52 = vcombine.high %v586_v47, %v631_v46  ;;  %v3388_v53 = vcombine.low %v586_v47, %v631_v46 }
  0x8f   : > { %1118 = vmatprep.subr.bf16.mxu0 %v3389_v52  ;;  %v580_v57 = vsel %vm432_vm2, %v574_v51, %v575_v50 }
  0x90   : > { %v569_v54 = vpop.permute.xlu1 %568  ;;  %v567_v55 = vpop.permute.xlu0 %566  ;;  %v3589_v56 = vld [vmem:[#allocation2 + $0xb0] ss:$12 sps:$4 sm:$0xff]   ;;  %1119 = vmatpush1.bf16.msra.mxu0 %v3388_v53  ;;  %v582_v61 = vsel %vm581_vm4, %v563_v49, %v580_v57 }
  0x91   : > { %v577_v58 = vrot.slane %v569_v54, 4  ;;  %596 = vst.msk [vmem:[#allocation2 + $0xa4] sm:$0xf] %vm396_vm0, %v569_v54  ;;  %v576_v59 = vrot.slane %v567_v55, 4  ;;  %1170 = vmatpush1.bf16.msra.mxu1 %v3589_v56 }
  0x92   : > { %1171 = vmatprep.subr.bf16.mxu1 %v3641_v3 }
  0x93   : > { %v583_v60 = vsel %vm432_vm2, %v576_v59, %v577_v58 }
  0x94   : > { %v584_v62 = vsel %vm581_vm4, %v567_v55, %v583_v60  ;;  %v520_v63 = vpop.permute.xlu1 %519  ;;  %v518_v0 = vpop.permute.xlu0 %517 }
  0x95   : > { %v528_v4 = vrot.slane %v520_v63, 4  ;;  %547 = vst.msk [vmem:[#allocation2 + $0x80] sm:$0xf] %vm396_vm0, %v520_v63  ;;  %v527_v5 = vrot.slane %v518_v0, 4  ;;  %v3386_v6 = vcombine.high %v582_v61, %v584_v62  ;;  %v3385_v7 = vcombine.low %v582_v61, %v584_v62 }
  0x97   : > { %1120 = vmatprep.subr.bf16.mxu0 %v3386_v6  ;;  %v534_v12 = vsel %vm432_vm2, %v527_v5, %v528_v4 }
  0x98   : > { %v524_v9 = vpop.permute.xlu1 %523  ;;  %v522_v10 = vpop.permute.xlu0 %521  ;;  %v3590_v11 = vld [vmem:[#allocation2 + $0x98] ss:$12 sps:$4 sm:$0xff]   ;;  %1121 = vmatpush1.bf16.msra.mxu0 %v3385_v7  ;;  %v535_v16 = vsel %vm4863_vm5, %v518_v0, %v534_v12 }
  0x99   : > { %v530_v13 = vrot.slane %v524_v9, 4  ;;  %549 = vst.msk [vmem:[#allocation2 + $0x8c] sm:$0xf] %vm396_vm0, %v524_v9  ;;  %v529_v14 = vrot.slane %v522_v10, 4  ;;  %1172 = vmatpush1.bf16.msra.mxu1 %v3590_v11 }
  0x9a   : > { %1173 = vmatprep.subr.bf16.mxu1 %v3641_v3 }
  0x9b   : > { %v536_v15 = vsel %vm432_vm2, %v529_v14, %v530_v13  ;;  %v3368_v14 = vcombine.high %v3724_v1, %v3746_v8 }
  0x9c   : > { %v537_v17 = vsel %vm4863_vm5, %v522_v10, %v536_v15  ;;  %v475_v18 = vpop.permute.xlu1 %474  ;;  %v473_v19 = vpop.permute.xlu0 %472 }
  0x9d   : > { %v481_v20 = vrot.slane %v475_v18, 4  ;;  %500 = vst.msk [vmem:[#allocation2 + $0x68] sm:$0xf] %vm396_vm0, %v475_v18  ;;  %v480_v21 = vrot.slane %v473_v19, 4  ;;  %v3383_v22 = vcombine.high %v535_v16, %v537_v17  ;;  %v3382_v23 = vcombine.low %v535_v16, %v537_v17 }
  0x9f   : > { %1122 = vmatprep.subr.bf16.mxu0 %v3383_v22  ;;  %v487_v27 = vsel %vm432_vm2, %v480_v21, %v481_v20 }
  0xa0   : > { %v516_v24 = vpop.permute.xlu1 %515  ;;  %v514_v25 = vpop.permute.xlu0 %513  ;;  %v3591_v26 = vld [vmem:[#allocation2 + $0x80] ss:$12 sps:$4 sm:$0xff]   ;;  %1123 = vmatpush1.bf16.msra.mxu0 %v3382_v23  ;;  %v488_v31 = vsel %vm4862_vm6, %v473_v19, %v487_v27 }
  0xa1   : > { %v526_v28 = vrot.slane %v516_v24, 4  ;;  %545 = vst.msk [vmem:[#allocation2 + $0x74] sm:$0xf] %vm396_vm0, %v516_v24  ;;  %v525_v29 = vrot.slane %v514_v25, 4  ;;  %1174 = vmatpush1.bf16.msra.mxu1 %v3591_v26  ;;  %v3367_v24 = vcombine.low %v3724_v1, %v3746_v8 }
  0xa2   : > { %1175 = vmatprep.subr.bf16.mxu1 %v3641_v3 }
  0xa3   : > { %v531_v30 = vsel %vm432_vm2, %v525_v29, %v526_v28 }
  0xa4   : > { %v533_v32 = vsel %vm4863_vm5, %v514_v25, %v531_v30  ;;  %v467_v33 = vpop.permute.xlu1 %466  ;;  %v465_v34 = vpop.permute.xlu0 %464 }
  0xa5   : > { %v477_v35 = vrot.slane %v467_v33, 4  ;;  %496 = vst.msk [vmem:[#allocation2 + $0x50] sm:$0xf] %vm396_vm0, %v467_v33  ;;  %v476_v36 = vrot.slane %v465_v34, 4  ;;  %v3380_v37 = vcombine.high %v488_v31, %v533_v32  ;;  %v3379_v38 = vcombine.low %v488_v31, %v533_v32 }
  0xa7   : > { %1124 = vmatprep.subr.bf16.mxu0 %v3380_v37  ;;  %v482_v42 = vsel %vm432_vm2, %v476_v36, %v477_v35 }
  0xa8   : > { %v471_v39 = vpop.permute.xlu1 %470  ;;  %v469_v40 = vpop.permute.xlu0 %468  ;;  %v3592_v41 = vld [vmem:[#allocation2 + $0x68] ss:$12 sps:$4 sm:$0xff]   ;;  %1125 = vmatpush1.bf16.msra.mxu0 %v3379_v38  ;;  %v484_v46 = vsel %vm4862_vm6, %v465_v34, %v482_v42 }
  0xa9   : > { %v479_v43 = vrot.slane %v471_v39, 4  ;;  %498 = vst.msk [vmem:[#allocation2 + $0x5c] sm:$0xf] %vm396_vm0, %v471_v39  ;;  %v478_v44 = vrot.slane %v469_v40, 4  ;;  %1176 = vmatpush1.bf16.msra.mxu1 %v3592_v41 }
  0xaa   : > { %1177 = vmatprep.subr.bf16.mxu1 %v3641_v3 }
  0xab   : > { %v485_v45 = vsel %vm432_vm2, %v478_v44, %v479_v43 }
  0xac   : > { %v486_v47 = vsel %vm4862_vm6, %v469_v40, %v485_v45  ;;  %v421_v48 = vpop.permute.xlu1 %420  ;;  %v419_v49 = vpop.permute.xlu0 %418 }
  0xad   : > { %v429_v50 = vrot.slane %v421_v48, 4  ;;  %449 = vst.msk [vmem:[#allocation2 + $0x38] sm:$0xf] %vm396_vm0, %v421_v48  ;;  %v428_v51 = vrot.slane %v419_v49, 4  ;;  %v3377_v52 = vcombine.high %v484_v46, %v486_v47  ;;  %v3376_v53 = vcombine.low %v484_v46, %v486_v47 }
  0xaf   : > { %1126 = vmatprep.subr.bf16.mxu0 %v3377_v52  ;;  %v436_v57 = vsel %vm432_vm2, %v428_v51, %v429_v50 }
  0xb0   : > { %v425_v54 = vpop.permute.xlu1 %424  ;;  %v423_v55 = vpop.permute.xlu0 %422  ;;  %v3593_v56 = vld [vmem:[#allocation2 + $0x50] ss:$12 sps:$4 sm:$0xff]   ;;  %1127 = vmatpush1.bf16.msra.mxu0 %v3376_v53  ;;  %v437_v61 = vsel %vm4861_vm7, %v419_v49, %v436_v57 }
  0xb1   : > { %v431_v58 = vrot.slane %v425_v54, 4  ;;  %451 = vst.msk [vmem:[#allocation2 + $0x44] sm:$0xf] %vm396_vm0, %v425_v54  ;;  %v430_v59 = vrot.slane %v423_v55, 4  ;;  %1178 = vmatpush1.bf16.msra.mxu1 %v3593_v56 }
  0xb2   : > { %1179 = vmatprep.subr.bf16.mxu1 %v3641_v3 }
  0xb3   : > { %v438_v60 = vsel %vm432_vm2, %v430_v59, %v431_v58 }
  0xb4   : > { %v439_v62 = vsel %vm4861_vm7, %v423_v55, %v438_v60  ;;  %v417_v63 = vpop.permute.xlu1 %416  ;;  %v415_v0 = vpop.permute.xlu0 %414 }
  0xb5   : > { %v427_v4 = vrot.slane %v417_v63, 4  ;;  %447 = vst.msk [vmem:[#allocation2 + $0x2c] sm:$0xf] %vm396_vm0, %v417_v63  ;;  %v426_v5 = vrot.slane %v415_v0, 4  ;;  %v3374_v6 = vcombine.high %v437_v61, %v439_v62  ;;  %v3373_v7 = vcombine.low %v437_v61, %v439_v62 }
  0xb7   : > { %v433_v9 = vsel %vm432_vm2, %v426_v5, %v427_v4  ;;  %1128 = vmatprep.subr.bf16.mxu0 %v3374_v6 }
  0xb8   : > { %v435_v10 = vsel %vm4861_vm7, %v415_v0, %v433_v9  ;;  %v769_v11 = vpop.permute.xlu1 %768  ;;  %v767_v12 = vpop.permute.xlu0 %766  ;;  %v3594_v13 = vld [vmem:[#allocation2 + $0x38] ss:$12 sps:$4 sm:$0xff]   ;;  %1129 = vmatpush1.bf16.msra.mxu0 %v3373_v7 }
  0xb9   : > { %v775_v15 = vrot.slane %v769_v11, 4  ;;  %794 = vst.msk [vmem:[#allocation2 + $0x140] sm:$0xf] %vm396_vm0, %v769_v11  ;;  %v774_v16 = vrot.slane %v767_v12, 4  ;;  %v3371_v17 = vcombine.high %v3727_v2, %v435_v10  ;;  %v3370_v18 = vcombine.low %v3727_v2, %v435_v10  ;;  %1180 = vmatpush1.bf16.msra.mxu1 %v3594_v13  ;;  %v3596_v2 = vld [vmem:[#allocation2 + $0x8] ss:$12 sps:$4 sm:$0xff]  }
  0xba   : > { %1181 = vmatprep.subr.bf16.mxu1 %v3641_v3 }
  0xbb   : > { %v781_v19 = vsel %vm432_vm2, %v774_v16, %v775_v15  ;;  %1130 = vmatprep.subr.bf16.mxu0 %v3371_v17 }
  0xbc   : > { %v782_v20 = vsel %vm777_vm8, %v767_v12, %v781_v19  ;;  %v761_v21 = vpop.permute.xlu1 %760  ;;  %v759_v22 = vpop.permute.xlu0 %758  ;;  %v3595_v23 = vld [vmem:[#allocation2 + $0x20] ss:$12 sps:$4 sm:$0xff]   ;;  %1131 = vmatpush1.bf16.msra.mxu0 %v3370_v18 }
  0xbd   : > { %v771_v25 = vrot.slane %v761_v21, 4  ;;  %790 = vst.msk [vmem:[#allocation2 + $0x128] sm:$0xf] %vm396_vm0, %v761_v21  ;;  %v770_v26 = vrot.slane %v759_v22, 4  ;;  %1132 = vmatprep.subr.bf16.mxu0 %v3368_v14  ;;  %1182 = vmatpush1.bf16.msra.mxu1 %v3595_v23  ;;  %v3407_v27 = vcombine.high %v782_v20, %v782_v20  ;;  %v3406_v28 = vcombine.low %v782_v20, %v782_v20 }
  0xbe   : > { %1183 = vmatprep.subr.bf16.mxu1 %v3641_v3 }
  0xbf   : > { %v776_v32 = vsel %vm432_vm2, %v770_v26, %v771_v25  ;;  %v1110_v34 = vsel %vm432_vm2, %v3406_v28, 0 }
  0xc0   : > { %v765_v29 = vpop.permute.xlu1 %764  ;;  %v763_v30 = vpop.permute.xlu0 %762  ;;  %v3597_v31 = vld [vmem:[#allocation2 + $0x140] ss:$0 sps:$4 sm:$0xff]   ;;  %1133 = vmatpush1.bf16.msra.mxu0 %v3367_v24  ;;  %v778_v35 = vsel %vm777_vm8, %v759_v22, %v776_v32 }
  0xc1   : > { %v773_v33 = vrot.slane %v765_v29, 4  ;;  %792 = vst.msk [vmem:[#allocation2 + $0x134] sm:$0xf] %vm396_vm0, %v765_v29  ;;  %v772_v1 = vrot.slane %v763_v30, 4  ;;  %3409 = vmatprep.subr.msk.bf16.mxu0 %vm432_vm2, %v3407_v27  ;;  %1184 = vmatpush1.bf16.msra.mxu1 %v3596_v2  ;;  %v1116_v39 = vsel %vm432_vm2, %v3597_v31, 0 }
  0xc2   : > { %1189 = vmatprep.subr.bf16.mxu1 %v3641_v3 }
  0xc3   : > { %v779_v8 = vsel %vm432_vm2, %v772_v1, %v773_v33 }
  0xc4   : > { %v780_v36 = vsel %vm777_vm8, %v763_v30, %v779_v8  ;;  %v716_v37 = vpop.permute.xlu1 %715  ;;  %v714_v38 = vpop.permute.xlu0 %713  ;;  %1139 = vmatpush2.bf16.msra.mxu0 %v1110_v34 }
  0xc5   : > { %v724_v40 = vrot.slane %v716_v37, 4  ;;  %743 = vst.msk [vmem:[#allocation2 + $0x110] sm:$0xf] %vm396_vm0, %v716_v37  ;;  %v723_v41 = vrot.slane %v714_v38, 4  ;;  %v3404_v42 = vcombine.high %v778_v35, %v780_v36  ;;  %v3403_v43 = vcombine.low %v778_v35, %v780_v36  ;;  %1190 = vmatpush2.bf16.msra.mxu1 %v1116_v39  ;;  %v797_v37 = vld [vmem:[%s4850_s1 + $0x10] sm:$0xff] }
  0xc6   : > { %1191 = vmatprep.subr.bf16.mxu1 %v3641_v3 }
  0xc7   : > { %1140 = vmatprep.subr.bf16.mxu0 %v3404_v42  ;;  %v730_v47 = vsel %vm432_vm2, %v723_v41, %v724_v40  ;;  %v3366_v40 = vcombine.high %v797_v37, %v797_v37  ;;  %v3365_v41 = vcombine.low %v797_v37, %v797_v37  ;;  %v334_v42 = vlaneseq }
  0xc8   : > { %v720_v44 = vpop.permute.xlu1 %719  ;;  %v718_v45 = vpop.permute.xlu0 %717  ;;  %v3598_v46 = vld [vmem:[#allocation2 + $0x128] ss:$12 sps:$4 sm:$0xff]   ;;  %1141 = vmatpush2.bf16.msra.mxu0 %v3403_v43  ;;  %v731_v51 = vsel %vm4860_vm9, %v714_v38, %v730_v47 }
  0xc9   : > { %v726_v48 = vrot.slane %v720_v44, 4  ;;  %745 = vst.msk [vmem:[#allocation2 + $0x11c] sm:$0xf] %vm396_vm0, %v720_v44  ;;  %v725_v49 = vrot.slane %v718_v45, 4  ;;  %1192 = vmatpush2.bf16.msra.mxu1 %v3598_v46  ;;  %v3603_v38 = vld [vmem:[%s4850_s1] ss:$8 sps:$4 sm:$0xff]  }
  0xca   : > { %1193 = vmatprep.subr.bf16.mxu1 %v3641_v3  ;;  %v335_v43 = vand.u32 127, %v334_v42 }
  0xcb   : > { %v732_v50 = vsel %vm432_vm2, %v725_v49, %v726_v48 }
  0xcc   : > { %v733_v52 = vsel %vm4860_vm9, %v718_v45, %v732_v50  ;;  %v671_v53 = vpop.permute.xlu1 %670  ;;  %v669_v54 = vpop.permute.xlu0 %668  ;;  %v337_v44 = vadd.s32 256, %v335_v43  ;;  %v336_v45 = vadd.s32 128, %v335_v43 }
  0xcd   : > { %v677_v55 = vrot.slane %v671_v53, 4  ;;  %696 = vst.msk [vmem:[#allocation2 + $0xf8] sm:$0xf] %vm396_vm0, %v671_v53  ;;  %v676_v56 = vrot.slane %v669_v54, 4  ;;  %v3401_v57 = vcombine.high %v731_v51, %v733_v52  ;;  %v3400_v58 = vcombine.low %v731_v51, %v733_v52 }
  0xce   : > { %v3955_v46 = vmul.u32.u64.low 3817748708, %v337_v44  ;;  %v3956_v47 = vmul.u32.u64.high 3817748708, %v337_v44, %v3955_v46  ;;  %v3958_v48 = vmul.u32.u64.low 3817748708, %v335_v43  ;;  %v3959_v49 = vmul.u32.u64.high 3817748708, %v335_v43, %v3958_v48 }
  0xcf   : > { %1142 = vmatprep.subr.bf16.mxu0 %v3401_v57  ;;  %v683_v62 = vsel %vm432_vm2, %v676_v56, %v677_v55  ;;  %v3961_v50 = vmul.u32.u64.low 3817748708, %v336_v45  ;;  %v3962_v51 = vmul.u32.u64.high 3817748708, %v336_v45, %v3961_v50 }
  0xd0   : > { %v712_v59 = vpop.permute.xlu1 %711  ;;  %v710_v60 = vpop.permute.xlu0 %709  ;;  %v3599_v61 = vld [vmem:[#allocation2 + $0x110] ss:$12 sps:$4 sm:$0xff]   ;;  %1143 = vmatpush2.bf16.msra.mxu0 %v3400_v58  ;;  %v684_v5 = vsel %vm4859_vm10, %v669_v54, %v683_v62  ;;  %v366_v52 = vshrl.u32 %v3956_v47, 4  ;;  %v344_v53 = vshrl.u32 %v3959_v49, 4 }
  0xd1   : > { %v722_v63 = vrot.slane %v712_v59, 4  ;;  %741 = vst.msk [vmem:[#allocation2 + $0x104] sm:$0xf] %vm396_vm0, %v712_v59  ;;  %v721_v0 = vrot.slane %v710_v60, 4  ;;  %1194 = vmatpush2.bf16.msra.mxu1 %v3599_v61  ;;  %v355_v54 = vshrl.u32 %v3962_v51, 4 }
  0xd2   : > { %1195 = vmatprep.subr.bf16.mxu1 %v3641_v3  ;;  %v367_v55 = vmul.u32 18, %v366_v52  ;;  %v345_v56 = vmul.u32 18, %v344_v53 }
  0xd3   : > { %v727_v4 = vsel %vm432_vm2, %v721_v0, %v722_v63  ;;  %v356_v57 = vmul.u32 18, %v355_v54 }
  0xd4   : > { %v729_v6 = vsel %vm4860_vm9, %v710_v60, %v727_v4  ;;  %v663_v7 = vpop.permute.xlu1 %662  ;;  %v661_v9 = vpop.permute.xlu0 %660  ;;  %v368_v58 = vsub.s32 %v337_v44, %v367_v55  ;;  %v346_v59 = vsub.s32 %v335_v43, %v345_v56 }
  0xd5   : > { %v673_v10 = vrot.slane %v663_v7, 4  ;;  %692 = vst.msk [vmem:[#allocation2 + $0xe0] sm:$0xf] %vm396_vm0, %v663_v7  ;;  %v672_v11 = vrot.slane %v661_v9, 4  ;;  %v3398_v12 = vcombine.high %v684_v5, %v729_v6  ;;  %v3397_v13 = vcombine.low %v684_v5, %v729_v6 }
  0xd6   : > { %v357_v60 = vsub.s32 %v336_v45, %v356_v57  ;;  %vm373_vm11 = vcmp.ne.s32.totalorder %v368_v58, 0  ;;  %vm376_vm12 = vcmp.lt.s32.totalorder %v368_v58, 0  ;;  %vm371_vm13 = vcmp.ne.s32.totalorder %v346_v59, 0 }
  0xd7   : > { %1144 = vmatprep.subr.bf16.mxu0 %v3398_v12  ;;  %v678_v17 = vsel %vm432_vm2, %v672_v11, %v673_v10  ;;  %vm374_vm14 = vcmp.lt.s32.totalorder %v346_v59, 0  ;;  %v382_v62 = vadd.s32 18, %v368_v58  ;;  %vm3979_vm6 = vmand %vm376_vm12, %vm373_vm11  ;;  %v380_v5 = vadd.s32 18, %v346_v59 }
  0xd8   : > { %v667_v14 = vpop.permute.xlu1 %666  ;;  %v665_v15 = vpop.permute.xlu0 %664  ;;  %v3600_v16 = vld [vmem:[#allocation2 + $0xf8] ss:$12 sps:$4 sm:$0xff]   ;;  %1145 = vmatpush2.bf16.msra.mxu0 %v3397_v13  ;;  %v680_v21 = vsel %vm4859_vm10, %v661_v9, %v678_v17  ;;  %vm372_vm9 = vcmp.ne.s32.totalorder %v357_v60, 0  ;;  %vm375_vm7 = vcmp.lt.s32.totalorder %v357_v60, 0  ;;  %vm3985_vm5 = vmand %vm374_vm14, %vm371_vm13  ;;  %v381_v6 = vadd.s32 18, %v357_v60 }
  0xd9   : > { %v675_v18 = vrot.slane %v667_v14, 4  ;;  %694 = vst.msk [vmem:[#allocation2 + $0xec] sm:$0xf] %vm396_vm0, %v667_v14  ;;  %v674_v19 = vrot.slane %v665_v15, 4  ;;  %1196 = vmatpush2.bf16.msra.mxu1 %v3600_v16  ;;  %vm3991_vm15 = vmand %vm375_vm7, %vm372_vm9  ;;  %v385_v10 = vsel %vm3979_vm6, %v382_v62, %v368_v58  ;;  %v383_v16 = vsel %vm3985_vm5, %v380_v5, %v346_v59 }
  0xda   : > { %1197 = vmatprep.subr.bf16.mxu1 %v3641_v3  ;;  %v384_v17 = vsel %vm3991_vm15, %v381_v6, %v357_v60  ;;  %vm4001_vm7 = vcmp.lt.s32.totalorder %v385_v10, 16  ;;  %vm4005_vm6 = vcmp.lt.s32.totalorder %v383_v16, 16  ;;  %vm1304_vm5 = vcmask 1043608  }
  0xdb   : > { %v681_v20 = vsel %vm432_vm2, %v674_v19, %v675_v18  ;;  %vm4009_vm9 = vcmp.lt.s32.totalorder %v384_v17, 16  ;;  %vm1291_vm11 = vcmask 154624   ;;  %vm1308_vm13 = vcmask 412672  }
  0xdc   : > { %v682_v22 = vsel %vm4859_vm10, %v665_v15, %v681_v20  ;;  %v618_v23 = vpop.permute.xlu1 %617  ;;  %v616_v24 = vpop.permute.xlu0 %615  ;;  %vm1251_vm10 = vcmask 699800   ;;  %vm4880_vm14 = vcmask 1031168   ;;  %vm4881_vm15 = vcmask 1039360  }
  0xdd   : > { %v626_v25 = vrot.slane %v618_v23, 4  ;;  %645 = vst.msk [vmem:[#allocation2 + $0xc8] sm:$0xf] %vm396_vm0, %v618_v23  ;;  %v625_v26 = vrot.slane %v616_v24, 4  ;;  %v3395_v2 = vcombine.high %v680_v21, %v682_v22  ;;  %v3394_v27 = vcombine.low %v680_v21, %v682_v22 }
  0xde   : > { %1252 = vst.msk [vmem:[#allocation3 + $0x8] sm:$0xf] %vm1251_vm10, %v3641_v3  ;;  %1253 = vst.msk [vmem:[#allocation3 + $0x14] sm:$0xf] %vm1251_vm10, %v3641_v3 }
  0xdf   : > { %1146 = vmatprep.subr.bf16.mxu0 %v3395_v2  ;;  %v632_v31 = vsel %vm432_vm2, %v625_v26, %v626_v25  ;;  %1254 = vst.msk [vmem:[#allocation3 + $0x20] sm:$0xf] %vm1251_vm10, %v3641_v3  ;;  %2117 = vst.msk [vmem:[#allocation4 + $0x8] sm:$0xf] %vm1251_vm10, %v3641_v3 }
  0xe0   : > { %v622_v28 = vpop.permute.xlu1 %621  ;;  %v620_v29 = vpop.permute.xlu0 %619  ;;  %v3601_v30 = vld [vmem:[#allocation2 + $0xe0] ss:$12 sps:$4 sm:$0xff]   ;;  %1147 = vmatpush2.bf16.msra.mxu0 %v3394_v27  ;;  %v633_v8 = vsel %vm630_vm3, %v616_v24, %v632_v31  ;;  %2731 = vst.msk [vmem:[#allocation5 + $0x8] sm:$0xf] %vm1251_vm10, %v3641_v3  ;;  %vm1305_vm10 = vcmask 1047556  }
  0xe1   : > { %v628_v32 = vrot.slane %v622_v28, 4  ;;  %647 = vst.msk [vmem:[#allocation2 + $0xd4] sm:$0xf] %vm396_vm0, %v622_v28  ;;  %v627_v33 = vrot.slane %v620_v29, 4  ;;  %1198 = vmatpush2.bf16.msra.mxu1 %v3601_v30  ;;  %vm4037_vm12 = vmor %vm1305_vm10, %vm1304_vm5 }
  0xe2   : > { %1199 = vmatprep.subr.bf16.mxu1 %v3641_v3 }
  0xe3   : > { %v634_v1 = vsel %vm432_vm2, %v627_v33, %v628_v32 }
  0xe4   : > { %v635_v34 = vsel %vm630_vm3, %v620_v29, %v634_v1 }
  0xe5   : > { %v3392_v35 = vcombine.high %v633_v8, %v635_v34  ;;  %v3391_v36 = vcombine.low %v633_v8, %v635_v34 }
  0xe7   : > { %1148 = vmatprep.subr.bf16.mxu0 %v3392_v35 }
  0xe8   : > { %v3602_v39 = vld [vmem:[#allocation2 + $0xc8] ss:$12 sps:$4 sm:$0xff]   ;;  %1149 = vmatpush2.bf16.msra.mxu0 %v3391_v36 }
  0xe9   : > { %1200 = vmatpush2.bf16.msra.mxu1 %v3602_v39 }
  0xea   : > { %2058 = vmatprep.subr.bf16.mxu1 %v3641_v3 }
  0xeb   : > { %1151 = vmatmul.mubr.bf16.vlgmr.msra.gmra.mxu0 %v3603_v38 }
  0xec   : > { %3411 = vmatprep.mubr.msk.bf16.mxu0 %vm1101_vm1, %v3366_v40  ;;  %1202 = vmatmul.mubr.bf16.vlgmr.msra.gmra.mxu1 %v3603_v38 }
  0xed   : > { %3413 = vmatprep.mubr.msk.bf16.mxu1 %vm1101_vm1, %v3366_v40  ;;  %v868_v61 = vpop.permute.xlu1 %867  ;;  %v858_v63 = vpop.permute.xlu0 %857 }
  0xf1   : > { %v863_v15 = vpop.permute.xlu1 %862 }
  0xf3   : > { %1161 = vmatmul.mubr.bf16.gmra.mxu0 %v3365_v41 }
  0xf4   : > { %1210 = vmatmul.mubr.bf16.gmra.mxu1 %v3365_v41 }
 0x1ab   : > { %v1152_v7 = vpop.f32.mrf.mxu0 }
 0x1ac   : > { %v1153_v11 = vadd.f32 %v1152_v7, %v858_v63  ;;  %v1203_v12 = vpop.f32.mrf.mxu1 }
 0x1ad   : > { %v1154_v13 = vpop.f32.mrf.mxu0  ;;  %v1204_v14 = vadd.f32 %v1203_v12, %v858_v63 }
 0x1ae   : > { %v1155_v18 = vadd.f32 %v1154_v13, %v858_v63  ;;  %v1205_v19 = vpop.f32.mrf.mxu1  ;;  %v1217_v22 = vmax.f32 %v1153_v11, 0.0 }
 0x1af   : > { %v1156_v21 = vpop.f32.mrf.mxu0  ;;  %v1219_v24 = vmax.f32 %v1204_v14, 0.0 }
 0x1b0   : > { %v1218_v23 = vmax.f32 %v1155_v18, 0.0  ;;  %v1206_v25 = vpop.f32.mrf.mxu1  ;;  %v1157_v28 = vadd.f32 %v1156_v21, %v863_v15  ;;  %v1232_v1 = vsel %vm4005_vm6, %v1217_v22, 0.0 }
 0x1b1   : > { %v1158_v27 = vpop.f32.mrf.mxu0  ;;  %v1234_v29 = vsel %vm4001_vm7, %v1219_v24, 0.0  ;;  %v1207_v43 = vadd.f32 %v1206_v25, %v863_v15 }
 0x1b2   : > { %v1208_v30 = vpop.f32.mrf.mxu1  ;;  %v3519_v31 = vpack.c.bf16 %v1234_v29, %v1234_v29  ;;  %v1159_v32 = vadd.f32 %v1158_v27, %v863_v15  ;;  %v1233_v8 = vsel %vm4009_vm9, %v1218_v23, 0.0  ;;  %v1220_v38 = vmax.f32 %v1157_v28, 0.0 }
 0x1b3   : > { %v1162_v33 = vpop.f32.mrf.mxu0  ;;  %v3518_v44 = vpack.c.bf16 %v1233_v8, %v1232_v1  ;;  %v1222_v59 = vmax.f32 %v1207_v43, 0.0 }
 0x1b4   : > { %v1163_v34 = vadd.f32 %v1162_v33, %v868_v61  ;;  %1278 = vrot.lane.b32.xlu0 %v3519_v31, %s3650_s24  ;;  %v1221_v35 = vmax.f32 %v1159_v32, 0.0  ;;  %v1211_v37 = vpop.f32.mrf.mxu1  ;;  %v1235_v53 = vsel %vm4005_vm6, %v1220_v38, 0.0 }
 0x1b5   : > { %v1164_v36 = vpop.f32.mrf.mxu0  ;;  %v1212_v41 = vadd.f32 %v1211_v37, %v868_v61 }
 0x1b6   : > { %v1223_v39 = vmax.f32 %v1163_v34, 0.0  ;;  %v1165_v40 = vadd.f32 %v1164_v36, %v868_v61  ;;  %v1213_v46 = vpop.f32.mrf.mxu1  ;;  %v1236_v47 = vsel %vm4009_vm9, %v1221_v35, 0.0  ;;  %v1237_v61 = vsel %vm4001_vm7, %v1222_v59, 0.0 }
 0x1b7   : > { %v1166_v45 = vpop.f32.mrf.mxu0  ;;  %v1225_v50 = vmax.f32 %v1212_v41, 0.0  ;;  %v3520_v56 = vpack.c.bf16 %v1236_v47, %v1235_v53  ;;  %v3521_v62 = vpack.c.bf16 %v1237_v61, %v1237_v61 }
 0x1b8   : > { %v1238_v48 = vsel %vm4005_vm6, %v1223_v39, 0.0  ;;  %v1224_v49 = vmax.f32 %v1165_v40, 0.0  ;;  %1276 = vrot.lane.b32.xlu0 %v3518_v44, %s3650_s24  ;;  %v1214_v52 = vpop.f32.mrf.mxu1 }
 0x1b9   : > { %v1167_v51 = vpop.f32.mrf.mxu0  ;;  %v1240_v55 = vsel %vm4001_vm7, %v1225_v50, 0.0  ;;  %v1766_v52 = vld [vmem:[%s4853_s4] sm:$0xff] }
 0x1ba   : > { %v1239_v54 = vsel %vm4009_vm9, %v1224_v49, 0.0  ;;  %v1215_v58 = vpop.f32.mrf.mxu1  ;;  %v3523_v60 = vpack.c.bf16 %v1240_v55, %v1240_v55  ;;  %v3624_v49 = vld [vmem:[%s4852_s3 + $0x4] ss:$8 sps:$4 sm:$0x3f]   ;;  %v1767_v51 = vld [vmem:[%s4853_s4 + $0x8] sm:$0xf] }
 0x1bb   : > { %v3522_v57 = vpack.c.bf16 %v1239_v54, %v1238_v48  ;;  %3466 = vmatprep.mubr.msk.bf16.mxu1 %vm1101_vm1, %v3624_v49  ;;  %3465 = vmatprep.mubr.msk.bf16.mxu0 %vm1101_vm1, %v3624_v49  ;;  %vm4879_vm1 = vcmask 900096  }
 0x1bc   : > { %1280 = vrot.lane.b32.xlu0 %v3520_v56, %s3650_s24  ;;  %vm4882_vm5 = vmmov %vm4879_vm1 }
 0x1bd   : > { %1284 = vrot.lane.b32.xlu1 %v3522_v57, %s3650_s24  ;;  %vm4883_vm10 = vmmov %vm4879_vm1 }
 0x1c1   : > { %1286 = vrot.lane.b32.xlu1 %v3523_v60, %s3650_s24 }
 0x1c5   : > { %1282 = vrot.lane.b32.xlu1 %v3521_v62, %s3650_s24 }
 0x226   : > { %v1279_v63 = vpop.permute.xlu0 %1278 }
 0x22a   : > { %v1277_v0 = vpop.permute.xlu0 %1276 }
 0x22b   : > { %v1288_v5 = vrot.slane %v1277_v0, 4 }
 0x22d   : > { %v1292_v6 = vsel %vm1291_vm11, %v1288_v5, %v1277_v0  ;;  %v1293_v7 = vsel %vm1291_vm11, %v1288_v5, %v1279_v63 }
 0x22e   : > { %1307 = vst.msk [vmem:[#allocation3] sm:$0xff] %vm4037_vm12, %v1292_v6  ;;  %v1281_v9 = vpop.permute.xlu0 %1280 }
 0x22f   : > { %1309 = vst.msk [vmem:[#allocation3 + $0x8] sm:$0xf] %vm1308_vm13, %v1293_v7  ;;  %v1285_v10 = vpop.permute.xlu1 %1284  ;;  %v1289_v11 = vrot.slane %v1281_v9, 4 }
 0x230   : > { %v1290_v12 = vrot.slane %v1285_v10, 4 }
 0x231   : > { %v1294_v13 = vsel %vm1291_vm11, %v1289_v11, %v1281_v9 }
 0x232   : > { %v1296_v14 = vsel %vm1291_vm11, %v1290_v12, %v1285_v10  ;;  %1310 = vst.msk [vmem:[#allocation3 + $0xc] sm:$0xff] %vm4037_vm12, %v1294_v13 }
 0x233   : > { %1312 = vst.msk [vmem:[#allocation3 + $0x18] sm:$0xff] %vm4037_vm12, %v1296_v14  ;;  %v1287_v15 = vpop.permute.xlu1 %1286 }
 0x234   : > { %v1297_v16 = vsel %vm1291_vm11, %v1290_v12, %v1287_v15 }
 0x235   : > { %1313 = vst.msk [vmem:[#allocation3 + $0x20] sm:$0xf] %vm1308_vm13, %v1297_v16  ;;  %v4054_v17 = vld [vmem:[#allocation3] sm:$0xff] }
 0x236   : > { %v1315_v18 = vld [vmem:[#allocation3 + $0x8] sm:$0xf]  ;;  %1530 = vrot.lane.b32.xlu0 %v4054_v17, %s3642_s16 }
 0x237   : > { %v1519_v19 = vld [vmem:[#allocation3 + $0x8] sm:$0xf]  ;;  %1321 = vst.msk [vmem:[#allocation2 + $0x8] sm:$0xf] %vm396_vm0, %v1315_v18  ;;  %v1283_v21 = vpop.permute.xlu1 %1282 }
 0x238   : > { %1532 = vrot.lane.b32.xlu1 %v1519_v19, %s3642_s16  ;;  %v1295_v22 = vsel %vm1291_vm11, %v1289_v11, %v1283_v21  ;;  %v1471_v24 = vld [vmem:[#allocation3 + $0x8] sm:$0xf] }
 0x239   : > { %1311 = vst.msk [vmem:[#allocation3 + $0x14] sm:$0xf] %vm1308_vm13, %v1295_v22  ;;  %v4062_v23 = vld [vmem:[#allocation3 + $0xc] sm:$0xff]  ;;  %v1423_v27 = vld [vmem:[#allocation3 + $0x8] sm:$0xf] }
 0x23a   : > { %1322 = vst [vmem:[#allocation2 + $0xc] sm:$0xff] %v4062_v23  ;;  %1482 = vrot.lane.b32.xlu0 %v4054_v17, %s3643_s17  ;;  %v1375_v29 = vld [vmem:[#allocation3 + $0x8] sm:$0xf]  ;;  %v4094_v34 = vld [vmem:[#allocation3 + $0x18] sm:$0xff] }
 0x23b   : > { %v1327_v30 = vld [vmem:[#allocation3 + $0x8] sm:$0xf] }
 0x23c   : > { %1484 = vrot.lane.b32.xlu1 %v1471_v24, %s3643_s17  ;;  %v1319_v25 = vld [vmem:[#allocation3 + $0x20] sm:$0xf]  ;;  %v1663_v31 = vld [vmem:[#allocation3 + $0x8] sm:$0xf] }
 0x23d   : > { %1325 = vst.msk [vmem:[#allocation2 + $0x20] sm:$0xf] %vm396_vm0, %v1319_v25  ;;  %v1475_v35 = vld [vmem:[#allocation3 + $0x20] sm:$0xf]  ;;  %v1615_v41 = vld [vmem:[#allocation3 + $0x8] sm:$0xf] }
 0x23e   : > { %1434 = vrot.lane.b32.xlu0 %v4054_v17, %s3644_s18  ;;  %v1427_v37 = vld [vmem:[#allocation3 + $0x20] sm:$0xf]  ;;  %v1567_v43 = vld [vmem:[#allocation3 + $0x8] sm:$0xf] }
 0x23f   : > { %v1379_v38 = vld [vmem:[#allocation3 + $0x20] sm:$0xf] }
 0x240   : > { %1436 = vrot.lane.b32.xlu1 %v1423_v27, %s3644_s18  ;;  %v1317_v28 = vld [vmem:[#allocation3 + $0x14] sm:$0xf]  ;;  %v1331_v40 = vld [vmem:[#allocation3 + $0x20] sm:$0xf] }
 0x241   : > { %1323 = vst.msk [vmem:[#allocation2 + $0x14] sm:$0xf] %vm396_vm0, %v1317_v28  ;;  %v1473_v32 = vld [vmem:[#allocation3 + $0x14] sm:$0xf]  ;;  %v1667_v44 = vld [vmem:[#allocation3 + $0x20] sm:$0xf] }
 0x242   : > { %1386 = vrot.lane.b32.xlu0 %v4054_v17, %s3645_s19  ;;  %v1425_v33 = vld [vmem:[#allocation3 + $0x14] sm:$0xf]  ;;  %v1619_v46 = vld [vmem:[#allocation3 + $0x20] sm:$0xf] }
 0x243   : > { %v1377_v1 = vld [vmem:[#allocation3 + $0x14] sm:$0xf]  ;;  %v1571_v47 = vld [vmem:[#allocation3 + $0x20] sm:$0xf] }
 0x244   : > { %1388 = vrot.lane.b32.xlu1 %v1375_v29, %s3645_s19  ;;  %v1329_v8 = vld [vmem:[#allocation3 + $0x14] sm:$0xf]  ;;  %v1523_v50 = vld [vmem:[#allocation3 + $0x20] sm:$0xf] }
 0x245   : > { %v1665_v36 = vld [vmem:[#allocation3 + $0x14] sm:$0xf] }
 0x246   : > { %1338 = vrot.lane.b32.xlu0 %v4054_v17, %s3646_s20  ;;  %v1617_v39 = vld [vmem:[#allocation3 + $0x14] sm:$0xf] }
 0x247   : > { %v1569_v45 = vld [vmem:[#allocation3 + $0x14] sm:$0xf] }
 0x248   : > { %1340 = vrot.lane.b32.xlu1 %v1327_v30, %s3646_s20  ;;  %v1521_v48 = vld [vmem:[#allocation3 + $0x14] sm:$0xf] }
 0x24a   : > { %1674 = vrot.lane.b32.xlu0 %v4054_v17, %s3647_s21 }
 0x24c   : > { %1676 = vrot.lane.b32.xlu1 %v1663_v31, %s3647_s21 }
 0x24e   : > { %1486 = vrot.lane.b32.xlu0 %v4062_v23, %s3643_s17 }
 0x250   : > { %1488 = vrot.lane.b32.xlu1 %v1473_v32, %s3643_s17 }
 0x252   : > { %1438 = vrot.lane.b32.xlu0 %v4062_v23, %s3644_s18 }
 0x254   : > { %1440 = vrot.lane.b32.xlu1 %v1425_v33, %s3644_s18 }
 0x256   : > { %1390 = vrot.lane.b32.xlu0 %v4062_v23, %s3645_s19 }
 0x258   : > { %1392 = vrot.lane.b32.xlu1 %v1377_v1, %s3645_s19 }
 0x25a   : > { %1342 = vrot.lane.b32.xlu0 %v4062_v23, %s3646_s20 }
 0x25c   : > { %1344 = vrot.lane.b32.xlu1 %v1329_v8, %s3646_s20 }
 0x25e   : > { %1490 = vrot.lane.b32.xlu0 %v4094_v34, %s3643_s17 }
 0x260   : > { %1492 = vrot.lane.b32.xlu1 %v1475_v35, %s3643_s17 }
 0x262   : > { %1678 = vrot.lane.b32.xlu0 %v4062_v23, %s3647_s21 }
 0x264   : > { %1680 = vrot.lane.b32.xlu1 %v1665_v36, %s3647_s21 }
 0x266   : > { %1442 = vrot.lane.b32.xlu0 %v4094_v34, %s3644_s18 }
 0x268   : > { %1444 = vrot.lane.b32.xlu1 %v1427_v37, %s3644_s18 }
 0x26a   : > { %1394 = vrot.lane.b32.xlu0 %v4094_v34, %s3645_s19 }
 0x26c   : > { %1396 = vrot.lane.b32.xlu1 %v1379_v38, %s3645_s19 }
 0x26e   : > { %1630 = vrot.lane.b32.xlu0 %v4062_v23, %s3648_s22 }
 0x270   : > { %1632 = vrot.lane.b32.xlu1 %v1617_v39, %s3648_s22 }
 0x272   : > { %1346 = vrot.lane.b32.xlu0 %v4094_v34, %s3646_s20 }
 0x274   : > { %1348 = vrot.lane.b32.xlu1 %v1331_v40, %s3646_s20 }
 0x276   : > { %1626 = vrot.lane.b32.xlu0 %v4054_v17, %s3648_s22 }
 0x278   : > { %1628 = vrot.lane.b32.xlu1 %v1615_v41, %s3648_s22 }
 0x27a   : > { %1578 = vrot.lane.b32.xlu0 %v4054_v17, %s3649_s23 }
 0x27c   : > { %1580 = vrot.lane.b32.xlu1 %v1567_v43, %s3649_s23 }
 0x27e   : > { %1682 = vrot.lane.b32.xlu0 %v4094_v34, %s3647_s21 }
 0x280   : > { %1684 = vrot.lane.b32.xlu1 %v1667_v44, %s3647_s21 }
 0x282   : > { %1582 = vrot.lane.b32.xlu0 %v4062_v23, %s3649_s23 }
 0x284   : > { %1584 = vrot.lane.b32.xlu1 %v1569_v45, %s3649_s23 }
 0x286   : > { %1634 = vrot.lane.b32.xlu0 %v4094_v34, %s3648_s22 }
 0x288   : > { %1636 = vrot.lane.b32.xlu1 %v1619_v46, %s3648_s22 }
 0x28a   : > { %1586 = vrot.lane.b32.xlu0 %v4094_v34, %s3649_s23 }
 0x28c   : > { %1588 = vrot.lane.b32.xlu1 %v1571_v47, %s3649_s23 }
 0x28e   : > { %1534 = vrot.lane.b32.xlu0 %v4062_v23, %s3642_s16 }
 0x290   : > { %1536 = vrot.lane.b32.xlu1 %v1521_v48, %s3642_s16 }
 0x292   : > { %1538 = vrot.lane.b32.xlu0 %v4094_v34, %s3642_s16 }
 0x294   : > { %1540 = vrot.lane.b32.xlu1 %v1523_v50, %s3642_s16 }
 0x296   : > { %1770 = vperm.xlu0 %3587, %v1766_v52  }
 0x298   : > { %1775 = vperm.xlu1 %3588, %v1767_v51  }
 0x2a8   : > { %v1531_v54 = vpop.permute.xlu0 %1530 }
 0x2a9   : > { %v1542_v56 = vrot.slane %v1531_v54, 4 }
 0x2aa   : > { %v1533_v53 = vpop.permute.xlu1 %1532 }
 0x2ab   : > { %v1543_v55 = vrot.slane %v1533_v53, 4  ;;  %1561 = vst.msk [vmem:[#allocation2 + $0xbc] sm:$0xf] %vm396_vm0, %v1533_v53 }
 0x2ac   : > { %v4154_v60 = vpop.permute.xlu0 %1482 }
 0x2ad   : > { %v1548_v57 = vsel %vm432_vm2, %v1542_v56, %v1543_v55  ;;  %v1494_v40 = vrot.slane %v4154_v60, 4 }
 0x2ae   : > { %v4152_v58 = vsel %vm630_vm3, %v1531_v54, %v1548_v57  ;;  %v1485_v59 = vpop.permute.xlu1 %1484 }
 0x2af   : > { %1513 = vst.msk [vmem:[#allocation2 + $0x98] sm:$0xf] %vm396_vm0, %v1485_v59  ;;  %v1495_v39 = vrot.slane %v1485_v59, 4 }
 0x2b0   : > { %v4159_v62 = vpop.permute.xlu0 %1434 }
 0x2b1   : > { %v1500_v48 = vsel %vm432_vm2, %v1494_v40, %v1495_v39 }
 0x2b2   : > { %v4157_v61 = vpop.permute.xlu1 %1436  ;;  %v1501_v57 = vsel %vm581_vm4, %v4154_v60, %v1500_v48 }
 0x2b3   : > { %1465 = vst.msk [vmem:[#allocation2 + $0x74] sm:$0xf] %vm396_vm0, %v4157_v61 }
 0x2b4   : > { %v4165_v0 = vpop.permute.xlu0 %1386 }
 0x2b6   : > { %v4163_v63 = vpop.permute.xlu1 %1388 }
 0x2b7   : > { %1417 = vst.msk [vmem:[#allocation2 + $0x50] sm:$0xf] %vm396_vm0, %v4163_v63 }
 0x2b8   : > { %v4171_v6 = vpop.permute.xlu0 %1338 }
 0x2ba   : > { %v4169_v5 = vpop.permute.xlu1 %1340 }
 0x2bb   : > { %1369 = vst.msk [vmem:[#allocation2 + $0x2c] sm:$0xf] %vm396_vm0, %v4169_v5 }
 0x2bc   : > { %v1675_v9 = vpop.permute.xlu0 %1674 }
 0x2bd   : > { %v1686_v11 = vrot.slane %v1675_v9, 4 }
 0x2be   : > { %v1677_v7 = vpop.permute.xlu1 %1676 }
 0x2bf   : > { %v1687_v10 = vrot.slane %v1677_v7, 4  ;;  %1705 = vst.msk [vmem:[#allocation2 + $0x128] sm:$0xf] %vm396_vm0, %v1677_v7 }
 0x2c0   : > { %v1487_v15 = vpop.permute.xlu0 %1486 }
 0x2c1   : > { %v1692_v12 = vsel %vm432_vm2, %v1686_v11, %v1687_v10  ;;  %v1496_v18 = vrot.slane %v1487_v15, 4  ;;  %v1446_v10 = vrot.slane %v4159_v62, 4 }
 0x2c2   : > { %v4178_v13 = vsel %vm777_vm8, %v1675_v9, %v1692_v12  ;;  %v1489_v14 = vpop.permute.xlu1 %1488  ;;  %v1447_v9 = vrot.slane %v4157_v61, 4  ;;  %v1398_v61 = vrot.slane %v4165_v0, 4 }
 0x2c3   : > { %v1497_v16 = vrot.slane %v1489_v14, 4  ;;  %1515 = vst.msk [vmem:[#allocation2 + $0xa4] sm:$0xf] %vm396_vm0, %v1489_v14 }
 0x2c4   : > { %v1439_v24 = vpop.permute.xlu0 %1438 }
 0x2c5   : > { %v1502_v19 = vsel %vm432_vm2, %v1496_v18, %v1497_v16  ;;  %v1448_v27 = vrot.slane %v1439_v24, 4  ;;  %v1399_v18 = vrot.slane %v4163_v63, 4 }
 0x2c6   : > { %v4183_v21 = vsel %vm581_vm4, %v1487_v15, %v1502_v19  ;;  %v1441_v22 = vpop.permute.xlu1 %1440 }
 0x2c7   : > { %1514 = vst [vmem:[#allocation2 + $0x9c] sm:$0xff] %v4183_v21  ;;  %v1449_v25 = vrot.slane %v1441_v22, 4  ;;  %1467 = vst.msk [vmem:[#allocation2 + $0x80] sm:$0xf] %vm396_vm0, %v1441_v22  ;;  %v3441_v7 = vcombine.high %v1501_v57, %v4183_v21  ;;  %v3440_v16 = vcombine.low %v1501_v57, %v4183_v21  ;;  %v1452_v22 = vsel %vm432_vm2, %v1446_v10, %v1447_v9 }
 0x2c8   : > { %v1391_v31 = vpop.permute.xlu0 %1390 }
 0x2c9   : > { %v1454_v28 = vsel %vm432_vm2, %v1448_v27, %v1449_v25  ;;  %v1400_v33 = vrot.slane %v1391_v31, 4 }
 0x2ca   : > { %v4189_v29 = vsel %vm4879_vm1, %v1439_v24, %v1454_v28  ;;  %v1393_v30 = vpop.permute.xlu1 %1392  ;;  %v3609_v28 = vld [vmem:[#allocation2 + $0x98] ss:$12 sps:$4 sm:$0xff]   ;;  %vm4884_vm1 = vmmov %vm4880_vm14 }
 0x2cb   : > { %1466 = vst [vmem:[#allocation2 + $0x78] sm:$0xff] %v4189_v29  ;;  %v1401_v32 = vrot.slane %v1393_v30, 4  ;;  %1419 = vst.msk [vmem:[#allocation2 + $0x5c] sm:$0xf] %vm396_vm0, %v1393_v30 }
 0x2cc   : > { %v1343_v36 = vpop.permute.xlu0 %1342 }
 0x2cd   : > { %v1406_v1 = vsel %vm432_vm2, %v1400_v33, %v1401_v32  ;;  %v1352_v38 = vrot.slane %v1343_v36, 4  ;;  %v1404_v32 = vsel %vm432_vm2, %v1398_v61, %v1399_v18 }
 0x2ce   : > { %v4195_v8 = vsel %vm4880_vm14, %v1391_v31, %v1406_v1  ;;  %v1345_v35 = vpop.permute.xlu1 %1344  ;;  %v1453_v1 = vsel %vm4883_vm10, %v4159_v62, %v1452_v22  ;;  %vm4885_vm14 = vmmov %vm4884_vm1  ;;  %v3423_v22 = vcombine.high %v4054_v17, %v4062_v23 }
 0x2cf   : > { %1418 = vst [vmem:[#allocation2 + $0x54] sm:$0xff] %v4195_v8  ;;  %v1353_v37 = vrot.slane %v1345_v35, 4  ;;  %1371 = vst.msk [vmem:[#allocation2 + $0x38] sm:$0xf] %vm396_vm0, %v1345_v35  ;;  %v1351_v35 = vrot.slane %v4169_v5, 4 }
 0x2d0   : > { %v1491_v45 = vpop.permute.xlu0 %1490 }
 0x2d1   : > { %v1358_v41 = vsel %vm432_vm2, %v1352_v38, %v1353_v37  ;;  %v1498_v47 = vrot.slane %v1491_v45, 4 }
 0x2d2   : > { %v4202_v43 = vsel %vm4881_vm15, %v1343_v36, %v1358_v41  ;;  %v1493_v44 = vpop.permute.xlu1 %1492  ;;  %v1350_v36 = vrot.slane %v4171_v6, 4  ;;  %vm4886_vm15 = vcmask 744448  }
 0x2d3   : > { %1370 = vst [vmem:[#allocation2 + $0x30] sm:$0xff] %v4202_v43  ;;  %v1499_v46 = vrot.slane %v1493_v44, 4  ;;  %1517 = vst.msk [vmem:[#allocation2 + $0xb0] sm:$0xf] %vm396_vm0, %v1493_v44 }
 0x2d4   : > { %v1679_v52 = vpop.permute.xlu0 %1678 }
 0x2d5   : > { %v1504_v49 = vsel %vm432_vm2, %v1498_v47, %v1499_v46  ;;  %v1688_v54 = vrot.slane %v1679_v52, 4  ;;  %v1405_v46 = vsel %vm4885_vm14, %v4165_v0, %v1404_v32  ;;  %vm4890_vm14 = vcmask 752640  }
 0x2d6   : > { %v1505_v50 = vsel %vm581_vm4, %v1491_v45, %v1504_v49  ;;  %v1681_v51 = vpop.permute.xlu1 %1680  ;;  %v3432_v5 = vcombine.high %v1405_v46, %v4195_v8 }
 0x2d7   : > { %v1689_v53 = vrot.slane %v1681_v51, 4  ;;  %1707 = vst.msk [vmem:[#allocation2 + $0x134] sm:$0xf] %vm396_vm0, %v1681_v51  ;;  %v3443_v55 = vcombine.low %v1505_v50, %v4152_v58  ;;  %v3444_v56 = vcombine.high %v1505_v50, %v4152_v58  ;;  %v1356_v51 = vsel %vm432_vm2, %v1350_v36, %v1351_v35 }
 0x2d8   : > { %v1443_v14 = vpop.permute.xlu0 %1442 }
 0x2d9   : > { %v1694_v59 = vsel %vm432_vm2, %v1688_v54, %v1689_v53  ;;  %2015 = vmatprep.subr.bf16.mxu0 %v3444_v56  ;;  %v1450_v60 = vrot.slane %v1443_v14, 4  ;;  %v3431_v53 = vcombine.low %v1405_v46, %v4195_v8 }
 0x2da   : > { %v4219_v11 = vsel %vm777_vm8, %v1679_v52, %v1694_v59  ;;  %v1445_v12 = vpop.permute.xlu1 %1444  ;;  %v3608_v15 = vld [vmem:[#allocation2 + $0xb0] ss:$12 sps:$4 sm:$0xff]   ;;  %2016 = vmatpush1.bf16.msra.mxu0 %v3443_v55 }
 0x2db   : > { %v1451_v58 = vrot.slane %v1445_v12, 4  ;;  %1469 = vst.msk [vmem:[#allocation2 + $0x8c] sm:$0xf] %vm396_vm0, %v1445_v12  ;;  %2017 = vmatprep.subr.bf16.mxu0 %v3441_v7  ;;  %2059 = vmatpush1.bf16.msra.mxu1 %v3608_v15  ;;  %v3612_v7 = vld [vmem:[#allocation2 + $0x50] ss:$12 sps:$4 sm:$0xff]  }
 0x2dc   : > { %2060 = vmatprep.subr.bf16.mxu1 %v3641_v3  ;;  %v1395_v27 = vpop.permute.xlu0 %1394 }
 0x2dd   : > { %v1456_v19 = vsel %vm432_vm2, %v1450_v60, %v1451_v58  ;;  %v1402_v21 = vrot.slane %v1395_v27, 4 }
 0x2de   : > { %v1457_v24 = vsel %vm4882_vm5, %v1443_v14, %v1456_v19  ;;  %v1397_v25 = vpop.permute.xlu1 %1396  ;;  %2018 = vmatpush1.bf16.msra.mxu0 %v3440_v16  ;;  %vm4887_vm5 = vcmask 1039360  }
 0x2df   : > { %v1403_v30 = vrot.slane %v1397_v25, 4  ;;  %1421 = vst.msk [vmem:[#allocation2 + $0x68] sm:$0xf] %vm396_vm0, %v1397_v25  ;;  %v3438_v63 = vcombine.high %v4189_v29, %v1457_v24  ;;  %v3437_v31 = vcombine.low %v4189_v29, %v1457_v24  ;;  %2061 = vmatpush1.bf16.msra.mxu1 %v3609_v28  ;;  %v1357_v55 = vsel %vm4887_vm5, %v4171_v6, %v1356_v51  ;;  %vm4888_vm10 = vmmov %vm4887_vm5  ;;  %v3614_v28 = vld [vmem:[#allocation2 + $0x20] ss:$12 sps:$4 sm:$0xff]  }
 0x2e0   : > { %2062 = vmatprep.subr.bf16.mxu1 %v3641_v3  ;;  %v1631_v39 = vpop.permute.xlu0 %1630  ;;  %v3426_v6 = vcombine.high %v4094_v34, %v1357_v55 }
 0x2e1   : > { %v1408_v33 = vsel %vm432_vm2, %v1402_v21, %v1403_v30  ;;  %2019 = vmatprep.subr.bf16.mxu0 %v3438_v63  ;;  %v1640_v41 = vrot.slane %v1631_v39, 4 }
 0x2e2   : > { %v1409_v37 = vsel %vm4884_vm1, %v1395_v27, %v1408_v33  ;;  %v1633_v38 = vpop.permute.xlu1 %1632  ;;  %v3610_v29 = vld [vmem:[#allocation2 + $0x80] ss:$12 sps:$4 sm:$0xff]   ;;  %2020 = vmatpush1.bf16.msra.mxu0 %v3437_v31  ;;  %vm4889_vm1 = vmmov %vm4886_vm15 }
 0x2e3   : > { %v1641_v40 = vrot.slane %v1633_v38, 4  ;;  %1659 = vst.msk [vmem:[#allocation2 + $0x110] sm:$0xf] %vm396_vm0, %v1633_v38  ;;  %v3435_v44 = vcombine.high %v1409_v37, %v1453_v1  ;;  %v3434_v45 = vcombine.low %v1409_v37, %v1453_v1  ;;  %2063 = vmatpush1.bf16.msra.mxu1 %v3610_v29  ;;  %v3615_v1 = vld [vmem:[#allocation2 + $0x8] ss:$12 sps:$4 sm:$0xff]   ;;  %vm4892_vm5 = vmmov %vm4889_vm1 }
 0x2e4   : > { %2064 = vmatprep.subr.bf16.mxu1 %v3641_v3  ;;  %v1347_v49 = vpop.permute.xlu0 %1346 }
 0x2e5   : > { %v1646_v62 = vsel %vm432_vm2, %v1640_v41, %v1641_v40  ;;  %2021 = vmatprep.subr.bf16.mxu0 %v3435_v44  ;;  %v1354_v0 = vrot.slane %v1347_v49, 4 }
 0x2e6   : > { %v4247_v47 = vsel %vm4886_vm15, %v1631_v39, %v1646_v62  ;;  %v1349_v48 = vpop.permute.xlu1 %1348  ;;  %v3611_v50 = vld [vmem:[#allocation2 + $0x68] ss:$12 sps:$4 sm:$0xff]   ;;  %2022 = vmatpush1.bf16.msra.mxu0 %v3434_v45  ;;  %vm4891_vm15 = vmmov %vm4890_vm14 }
 0x2e7   : > { %v1355_v52 = vrot.slane %v1349_v48, 4  ;;  %1373 = vst.msk [vmem:[#allocation2 + $0x44] sm:$0xf] %vm396_vm0, %v1349_v48  ;;  %2023 = vmatprep.subr.bf16.mxu0 %v3432_v5  ;;  %2065 = vmatpush1.bf16.msra.mxu1 %v3611_v50  ;;  %v3458_v5 = vcombine.low %v4178_v13, %v4219_v11 }
 0x2e8   : > { %2066 = vmatprep.subr.bf16.mxu1 %v3641_v3  ;;  %v1627_v59 = vpop.permute.xlu0 %1626 }
 0x2e9   : > { %v1360_v54 = vsel %vm432_vm2, %v1354_v0, %v1355_v52  ;;  %v1638_v10 = vrot.slane %v1627_v59, 4 }
 0x2ea   : > { %v1361_v56 = vsel %vm4888_vm10, %v1347_v49, %v1360_v54  ;;  %v1629_v57 = vpop.permute.xlu1 %1628  ;;  %2024 = vmatpush1.bf16.msra.mxu0 %v3431_v53  ;;  %v3617_v53 = vld [vmem:[#allocation2 + $0x128] ss:$12 sps:$4 sm:$0xff]   ;;  %vm4893_vm10 = vmmov %vm4890_vm14 }
 0x2eb   : > { %v1639_v9 = vrot.slane %v1629_v57, 4  ;;  %1657 = vst.msk [vmem:[#allocation2 + $0x104] sm:$0xf] %vm396_vm0, %v1629_v57  ;;  %v3429_v12 = vcombine.high %v4202_v43, %v1361_v56  ;;  %v3428_v8 = vcombine.low %v4202_v43, %v1361_v56  ;;  %2067 = vmatpush1.bf16.msra.mxu1 %v3612_v7  ;;  %v3425_v43 = vcombine.low %v4094_v34, %v1357_v55 }
 0x2ec   : > { %2068 = vmatprep.subr.bf16.mxu1 %v3641_v3  ;;  %v1579_v60 = vpop.permute.xlu0 %1578  ;;  %v3422_v34 = vcombine.low %v4054_v17, %v4062_v23  ;;  %v3459_v23 = vcombine.high %v4178_v13, %v4219_v11 }
 0x2ed   : > { %v1644_v14 = vsel %vm432_vm2, %v1638_v10, %v1639_v9  ;;  %2025 = vmatprep.subr.bf16.mxu0 %v3429_v12  ;;  %v1590_v61 = vrot.slane %v1579_v60, 4 }
 0x2ee   : > { %v4264_v15 = vsel %vm4889_vm1, %v1627_v59, %v1644_v14  ;;  %v1581_v58 = vpop.permute.xlu1 %1580  ;;  %v3613_v16 = vld [vmem:[#allocation2 + $0x38] ss:$12 sps:$4 sm:$0xff]   ;;  %2026 = vmatpush1.bf16.msra.mxu0 %v3428_v8  ;;  %vm2115_vm1 = vcmask 148480  }
 0x2ef   : > { %v1591_v18 = vrot.slane %v1581_v58, 4  ;;  %1609 = vst.msk [vmem:[#allocation2 + $0xe0] sm:$0xf] %vm396_vm0, %v1581_v58  ;;  %2027 = vmatprep.subr.bf16.mxu0 %v3426_v6  ;;  %2069 = vmatpush1.bf16.msra.mxu1 %v3613_v16 }
 0x2f0   : > { %2070 = vmatprep.subr.bf16.mxu1 %v3641_v3  ;;  %v1683_v27 = vpop.permute.xlu0 %1682  ;;  %2116 = vst.msk [vmem:[#allocation4 + $0xc] sm:$0x3] %vm2115_vm1, %v3641_v3  ;;  %2730 = vst.msk [vmem:[#allocation5 + $0xc] sm:$0x3] %vm2115_vm1, %v3641_v3  ;;  %vm4864_vm1 = vcmask 410624  }
 0x2f1   : > { %v1596_v19 = vsel %vm432_vm2, %v1590_v61, %v1591_v18  ;;  %v1690_v21 = vrot.slane %v1683_v27, 4 }
 0x2f2   : > { %v4273_v24 = vsel %vm4890_vm14, %v1579_v60, %v1596_v19  ;;  %v1685_v25 = vpop.permute.xlu1 %1684  ;;  %2028 = vmatpush1.bf16.msra.mxu0 %v3425_v43  ;;  %vm2118_vm14 = vcmask 697752  }
 0x2f3   : > { %v1691_v30 = vrot.slane %v1685_v25, 4  ;;  %1709 = vst.msk [vmem:[#allocation2 + $0x140] sm:$0xf] %vm396_vm0, %v1685_v25  ;;  %2029 = vmatprep.subr.bf16.mxu0 %v3423_v22  ;;  %2071 = vmatpush1.bf16.msra.mxu1 %v3614_v28 }
 0x2f4   : > { %2072 = vmatprep.subr.bf16.mxu1 %v3641_v3  ;;  %v1583_v33 = vpop.permute.xlu0 %1582  ;;  %2119 = vst.msk [vmem:[#allocation4 + $0x14] sm:$0x3] %vm2118_vm14, %v3641_v3  ;;  %2732 = vst.msk [vmem:[#allocation5 + $0x14] sm:$0x3] %vm2118_vm14, %v3641_v3  ;;  %vm2166_vm14 = vcmask 254976  }
 0x2f5   : > { %v1696_v63 = vsel %vm432_vm2, %v1690_v21, %v1691_v30  ;;  %v1592_v36 = vrot.slane %v1583_v33, 4 }
 0x2f6   : > { %v1697_v31 = vsel %vm777_vm8, %v1683_v27, %v1696_v63  ;;  %v1585_v32 = vpop.permute.xlu1 %1584  ;;  %2030 = vmatpush1.bf16.msra.mxu0 %v3422_v34  ;;  %v3622_v27 = vld [vmem:[%s4852_s3] ss:$8 sps:$4 sm:$0x3f]  }
 0x2f7   : > { %v1593_v35 = vrot.slane %v1585_v32, 4  ;;  %1611 = vst.msk [vmem:[#allocation2 + $0xec] sm:$0xf] %vm396_vm0, %v1585_v32  ;;  %v3462_v37 = vcombine.high %v1697_v31, %v1697_v31  ;;  %v3461_v38 = vcombine.low %v1697_v31, %v1697_v31  ;;  %2073 = vmatpush1.bf16.msra.mxu1 %v3615_v1 }
 0x2f8   : > { %2078 = vmatprep.subr.bf16.mxu1 %v3641_v3  ;;  %v1635_v41 = vpop.permute.xlu0 %1634 }
 0x2f9   : > { %v1598_v39 = vsel %vm432_vm2, %v1592_v36, %v1593_v35  ;;  %3464 = vmatprep.subr.msk.bf16.mxu0 %vm432_vm2, %v3462_v37  ;;  %v2007_v17 = vsel %vm432_vm2, %v3461_v38, 0  ;;  %v1642_v46 = vrot.slane %v1635_v41, 4 }
 0x2fa   : > { %v1599_v29 = vsel %vm4891_vm15, %v1583_v33, %v1598_v39  ;;  %v1637_v40 = vpop.permute.xlu1 %1636  ;;  %v3616_v44 = vld [vmem:[#allocation2 + $0x140] ss:$0 sps:$4 sm:$0xff]   ;;  %2036 = vmatpush2.bf16.msra.mxu0 %v2007_v17  ;;  %vm2153_vm15 = vcmask 1041560  }
 0x2fb   : > { %v1643_v45 = vrot.slane %v1637_v40, 4  ;;  %1661 = vst.msk [vmem:[#allocation2 + $0x11c] sm:$0xf] %vm396_vm0, %v1637_v40  ;;  %2037 = vmatprep.subr.bf16.mxu0 %v3459_v23  ;;  %v2013_v62 = vsel %vm432_vm2, %v3616_v44, 0  ;;  %v3450_v8 = vcombine.high %v4273_v24, %v1599_v29 }
 0x2fc   : > { %2079 = vmatpush2.bf16.msra.mxu1 %v2013_v62  ;;  %v1587_v51 = vpop.permute.xlu0 %1586 }
 0x2fd   : > { %v1648_v48 = vsel %vm432_vm2, %v1642_v46, %v1643_v45  ;;  %2080 = vmatprep.subr.bf16.mxu1 %v3641_v3  ;;  %v1594_v0 = vrot.slane %v1587_v51, 4 }
 0x2fe   : > { %v1649_v49 = vsel %vm4892_vm5, %v1635_v41, %v1648_v48  ;;  %v1589_v50 = vpop.permute.xlu1 %1588  ;;  %2038 = vmatpush2.bf16.msra.mxu0 %v3458_v5  ;;  %v3620_v19 = vld [vmem:[#allocation2 + $0xe0] ss:$12 sps:$4 sm:$0xff]   ;;  %vm2154_vm5 = vcmask 1045508  }
 0x2ff   : > { %v1595_v52 = vrot.slane %v1589_v50, 4  ;;  %1613 = vst.msk [vmem:[#allocation2 + $0xf8] sm:$0xf] %vm396_vm0, %v1589_v50  ;;  %v3455_v54 = vcombine.low %v4247_v47, %v1649_v49  ;;  %v3456_v55 = vcombine.high %v4247_v47, %v1649_v49 }
 0x300   : > { %2081 = vmatpush2.bf16.msra.mxu1 %v3617_v53  ;;  %v1535_v57 = vpop.permute.xlu0 %1534 }
 0x301   : > { %v1600_v13 = vsel %vm432_vm2, %v1594_v0, %v1595_v52  ;;  %2039 = vmatprep.subr.bf16.mxu0 %v3456_v55  ;;  %2082 = vmatprep.subr.bf16.mxu1 %v3641_v3  ;;  %v1544_v9 = vrot.slane %v1535_v57, 4 }
 0x302   : > { %v1601_v11 = vsel %vm4893_vm10, %v1587_v51, %v1600_v13  ;;  %v1537_v56 = vpop.permute.xlu1 %1536  ;;  %v3618_v59 = vld [vmem:[#allocation2 + $0x110] ss:$12 sps:$4 sm:$0xff]   ;;  %2040 = vmatpush2.bf16.msra.mxu0 %v3455_v54  ;;  %vm4343_vm10 = vmor %vm2154_vm5, %vm2153_vm15  ;;  %vm2176_vm15 = vcmask 1041408  }
 0x303   : > { %v1545_v7 = vrot.slane %v1537_v56, 4  ;;  %1563 = vst.msk [vmem:[#allocation2 + $0xc8] sm:$0xf] %vm396_vm0, %v1537_v56  ;;  %v3452_v10 = vcombine.low %v1601_v11, %v4264_v15  ;;  %v3453_v47 = vcombine.high %v1601_v11, %v4264_v15  ;;  %v3449_v15 = vcombine.low %v4273_v24, %v1599_v29 }
 0x304   : > { %2083 = vmatpush2.bf16.msra.mxu1 %v3618_v59  ;;  %v1539_v58 = vpop.permute.xlu0 %1538 }
 0x305   : > { %v1550_v12 = vsel %vm432_vm2, %v1544_v9, %v1545_v7  ;;  %2041 = vmatprep.subr.bf16.mxu0 %v3453_v47  ;;  %2084 = vmatprep.subr.bf16.mxu1 %v3641_v3  ;;  %v1546_v18 = vrot.slane %v1539_v58, 4 }
 0x306   : > { %v1551_v14 = vsel %vm630_vm3, %v1535_v57, %v1550_v12  ;;  %v1541_v6 = vpop.permute.xlu1 %1540  ;;  %v3619_v60 = vld [vmem:[#allocation2 + $0xf8] ss:$12 sps:$4 sm:$0xff]   ;;  %2042 = vmatpush2.bf16.msra.mxu0 %v3452_v10 }
 0x307   : > { %v1547_v16 = vrot.slane %v1541_v6, 4  ;;  %1565 = vst.msk [vmem:[#allocation2 + $0xd4] sm:$0xf] %vm396_vm0, %v1541_v6  ;;  %2043 = vmatprep.subr.bf16.mxu0 %v3450_v8 }
 0x308   : > { %2085 = vmatpush2.bf16.msra.mxu1 %v3619_v60 }
 0x309   : > { %v1552_v61 = vsel %vm432_vm2, %v1546_v18, %v1547_v16  ;;  %2086 = vmatprep.subr.bf16.mxu1 %v3641_v3 }
 0x30a   : > { %v1553_v43 = vsel %vm630_vm3, %v1539_v58, %v1552_v61  ;;  %2044 = vmatpush2.bf16.msra.mxu0 %v3449_v15 }
 0x30b   : > { %v3446_v22 = vcombine.low %v1551_v14, %v1553_v43  ;;  %v3447_v25 = vcombine.high %v1551_v14, %v1553_v43 }
 0x30c   : > { %2087 = vmatpush2.bf16.msra.mxu1 %v3620_v19 }
 0x30d   : > { %2045 = vmatprep.subr.bf16.mxu0 %v3447_v25  ;;  %2088 = vmatprep.subr.bf16.mxu1 %v3641_v3 }
 0x30e   : > { %v3621_v24 = vld [vmem:[#allocation2 + $0xc8] ss:$12 sps:$4 sm:$0xff]   ;;  %2046 = vmatpush2.bf16.msra.mxu0 %v3446_v22 }
 0x310   : > { %2089 = vmatpush2.bf16.msra.mxu1 %v3621_v24 }
 0x311   : > { %2048 = vmatmul.mubr.bf16.vlgmr.msra.gmra.mxu0 %v3622_v27  ;;  %v1771_v28 = vpop.permute.xlu0 %1770 }
 0x312   : > { %2662 = vmatprep.mubr.bf16.mxu0 %v3641_v3 }
 0x313   : > { %2091 = vmatmul.mubr.bf16.vlgmr.msra.gmra.mxu1 %v3622_v27  ;;  %v1776_v33 = vpop.permute.xlu1 %1775 }
 0x3d1   : > { %v2049_v30 = vpop.f32.mrf.mxu0 }
 0x3d2   : > { %v2050_v21 = vadd.f32 %v2049_v30, %v1771_v28 }
 0x3d3   : > { %v2051_v34 = vpop.f32.mrf.mxu0  ;;  %v2092_v63 = vpop.f32.mrf.mxu1 }
 0x3d4   : > { %v2099_v31 = vmax.f32 %v2050_v21, 0.0  ;;  %v2052_v32 = vadd.f32 %v2051_v34, %v1771_v28  ;;  %v2093_v1 = vadd.f32 %v2092_v63, %v1771_v28  ;;  %v3651_v28 = vmov 0.0  }
 0x3d5   : > { %v2053_v35 = vpop.f32.mrf.mxu0  ;;  %v2094_v36 = vpop.f32.mrf.mxu1  ;;  %3540 = vmatprep.subr.bf16.mxu1 %v3651_v28 }
 0x3d6   : > { %v2100_v37 = vmax.f32 %v2052_v32, 0.0  ;;  %v2054_v38 = vadd.f32 %v2053_v35, %v1776_v33  ;;  %v2101_v39 = vmax.f32 %v2093_v1, 0.0  ;;  %v2105_v17 = vsel %vm4005_vm6, %v2099_v31, 0.0 }
 0x3d7   : > { %v2055_v23 = vpop.f32.mrf.mxu0  ;;  %v2095_v29 = vpop.f32.mrf.mxu1 }
 0x3d8   : > { %v2106_v40 = vsel %vm4009_vm9, %v2100_v37, 0.0  ;;  %v2102_v41 = vmax.f32 %v2054_v38, 0.0  ;;  %v2056_v44 = vadd.f32 %v2055_v23, %v1776_v33  ;;  %v2096_v45 = vadd.f32 %v2095_v29, %v1776_v33 }
 0x3d9   : > { %v3524_v46 = vpack.c.bf16 %v2106_v40, %v2105_v17  ;;  %v2107_v62 = vsel %vm4001_vm7, %v2101_v39, 0.0  ;;  %v2097_v48 = vpop.f32.mrf.mxu1 }
 0x3da   : > { %v2103_v5 = vmax.f32 %v2056_v44, 0.0  ;;  %v2104_v49 = vmax.f32 %v2096_v45, 0.0  ;;  %v2108_v50 = vsel %vm4005_vm6, %v2102_v41, 0.0  ;;  %v3525_v52 = vpack.c.bf16 %v2107_v62, %v2107_v62 }
 0x3db   : > { %2133 = vrot.lane.b32.xlu0 %v3524_v46, %s3650_s24 }
 0x3dc   : > { %v2109_v51 = vsel %vm4009_vm9, %v2103_v5, 0.0  ;;  %v2110_v53 = vsel %vm4001_vm7, %v2104_v49, 0.0 }
 0x3dd   : > { %v3526_v0 = vpack.c.bf16 %v2109_v51, %v2108_v50  ;;  %v3527_v3 = vpack.c.bf16 %v2110_v53, %v2110_v53 }
 0x3df   : > { %2137 = vrot.lane.b32.xlu1 %v3526_v0, %s3650_s24  ;;  %2135 = vrot.lane.b32.xlu0 %v3525_v52, %s3650_s24 }
 0x3e3   : > { %2139 = vrot.lane.b32.xlu1 %v3527_v3, %s3650_s24 }
 0x44d   : > { %v2134_v54 = vpop.permute.xlu0 %2133 }
 0x44e   : > { %v2141_v55 = vrot.slane %v2134_v54, 4 }
 0x450   : > { %v2143_v13 = vsel %vm1291_vm11, %v2141_v55, %v2134_v54 }
 0x451   : > { %2151 = vst.msk [vmem:[#allocation4] sm:$0xff] %vm4037_vm12, %v2143_v13  ;;  %v2138_v11 = vpop.permute.xlu1 %2137  ;;  %v2136_v56 = vpop.permute.xlu0 %2135 }
 0x452   : > { %v2142_v59 = vrot.slane %v2138_v11, 4  ;;  %v2144_v7 = vsel %vm1291_vm11, %v2141_v55, %v2136_v56 }
 0x453   : > { %2152 = vst.msk [vmem:[#allocation4 + $0x8] sm:$0xf] %vm1308_vm13, %v2144_v7 }
 0x454   : > { %v2145_v9 = vsel %vm1291_vm11, %v2142_v59, %v2138_v11 }
 0x455   : > { %2156 = vst.msk [vmem:[#allocation4 + $0xc] sm:$0x33] %vm4343_vm10, %v2145_v9  ;;  %v2140_v10 = vpop.permute.xlu1 %2139 }
 0x456   : > { %v2146_v47 = vsel %vm1291_vm11, %v2142_v59, %v2140_v10  ;;  %v2491_v10 = vld [vmem:[%s4855_s6 + $0x8] sm:$0xf] }
 0x457   : > { %2158 = vst.msk [vmem:[#allocation4 + $0x14] sm:$0x3] %vm4864_vm1, %v2146_v47  ;;  %vm4387_vm1 = vmor %vm2176_vm15, %vm2154_vm5  ;;  %vm3652_vm5 = vmmov 0   ;;  %v2490_v47 = vld [vmem:[%s4855_s6] sm:$0xff]  ;;  %vm2208_vm15 = vcmask 257026  }
 0x458   : > { %v4354_v12 = vld [vmem:[#allocation4] sm:$0xff]  ;;  %3554 = vmatprep.mubr.msk.bf16.mxu1 %vm3652_vm5, %v3651_v28  ;;  %vm4899_vm5 = vcmask 744448  }
 0x459   : > { %2436 = vrot.lane.b32.xlu0 %v4354_v12, %s3647_s21  ;;  %v4367_v18 = vrot.slane %v4354_v12, 6 }
 0x45a   : > { %v2160_v8 = vld [vmem:[#allocation4 + $0x8] sm:$0xf] }
 0x45b   : > { %v2429_v14 = vld [vmem:[#allocation4 + $0x8] sm:$0xf]  ;;  %2164 = vst.msk [vmem:[#allocation2 + $0x8] sm:$0xf] %vm396_vm0, %v2160_v8  ;;  %v2398_v38 = vrot.slane %v4367_v18, 4  ;;  %v2768_v8 = vld [vmem:[%s4856_s7] sm:$0xff] }
 0x45c   : > { %2438 = vrot.lane.b32.xlu1 %v2429_v14, %s3647_s21  ;;  %v2161_v6 = vld [vmem:[#allocation4 + $0xc] sm:$0x33]  ;;  %v2357_v58 = vld [vmem:[#allocation4 + $0x8] sm:$0xf]  ;;  %v2769_v14 = vld [vmem:[%s4856_s7 + $0x8] sm:$0xf] }
 0x45d   : > { %2165 = vst [vmem:[#allocation2 + $0xc] sm:$0x33] %v2161_v6  ;;  %2364 = vrot.lane.b32.xlu0 %v4354_v12, %s3649_s23  ;;  %v2285_v60 = vld [vmem:[#allocation4 + $0x8] sm:$0xf]  ;;  %v2430_v27 = vld [vmem:[#allocation4 + $0xc] sm:$0x33] }
 0x45e   : > { %v2389_v16 = vld [vmem:[#allocation4 + $0x8] sm:$0xf]  ;;  %v2162_v61 = vld [vmem:[#allocation4 + $0x14] sm:$0x3]  ;;  %v2358_v30 = vld [vmem:[#allocation4 + $0xc] sm:$0x33] }
 0x45f   : > { %v2397_v15 = vrot.slane %v2389_v16, 6  ;;  %v2317_v43 = vld [vmem:[#allocation4 + $0x8] sm:$0xf]  ;;  %2167 = vst.msk [vmem:[#allocation2 + $0x14] sm:$0x3] %vm2166_vm14, %v2162_v61  ;;  %v3502_v16 = vld [vmem:[%s4856_s7 + $0x20] sm:$0xff] }
 0x460   : > { %2366 = vrot.lane.b32.xlu1 %v2357_v58, %s3649_s23  ;;  %v2325_v19 = vrot.slane %v2317_v43, 6  ;;  %v2245_v22 = vld [vmem:[#allocation4 + $0x8] sm:$0xf]  ;;  %v2431_v24 = vld [vmem:[#allocation4 + $0x14] sm:$0x3]  ;;  %v3506_v43 = vld [vmem:[%s4856_s7 + $0x40] sm:$0xff] }
 0x461   : > { %2292 = vrot.lane.b32.xlu0 %v4354_v12, %s3643_s17  ;;  %v2253_v25 = vrot.slane %v2245_v22, 6  ;;  %v2359_v21 = vld [vmem:[#allocation4 + $0x14] sm:$0x3]  ;;  %v2286_v34 = vld [vmem:[#allocation4 + $0xc] sm:$0x33]  ;;  %v2401_v29 = vrot.slane %v2397_v15, 4 }
 0x462   : > { %v2390_v63 = vld [vmem:[#allocation4 + $0xc] sm:$0x33]  ;;  %v2287_v31 = vld [vmem:[#allocation4 + $0x14] sm:$0x3]  ;;  %v2329_v46 = vrot.slane %v2325_v19, 4 }
 0x463   : > { %v2391_v32 = vld [vmem:[#allocation4 + $0x14] sm:$0x3]  ;;  %v2214_v33 = vld [vmem:[#allocation4 + $0xc] sm:$0x33]  ;;  %v2399_v1 = vrot.slane %v2390_v63, 6  ;;  %v2257_v54 = vrot.slane %v2253_v25, 4 }
 0x464   : > { %2294 = vrot.lane.b32.xlu1 %v2285_v60, %s3643_s17  ;;  %v2318_v36 = vld [vmem:[#allocation4 + $0xc] sm:$0x33]  ;;  %v2215_v37 = vld [vmem:[#allocation4 + $0x14] sm:$0x3]  ;;  %v2402_v39 = vrot.slane %v2391_v32, 6 }
 0x465   : > { %2404 = vrot.lane.b32.xlu0 %v4367_v18, %s3648_s22  ;;  %v2319_v17 = vld [vmem:[#allocation4 + $0x14] sm:$0x3]  ;;  %v2400_v23 = vsel %vm4387_vm1, %v2398_v38, %v2399_v1  ;;  %v2327_v40 = vrot.slane %v2318_v36, 6  ;;  %v2246_v62 = vld [vmem:[#allocation4 + $0xc] sm:$0x33] }
 0x466   : > { %v2403_v41 = vsel %vm4387_vm1, %v2401_v29, %v2402_v39  ;;  %v2330_v44 = vrot.slane %v2319_v17, 6  ;;  %v2247_v48 = vld [vmem:[#allocation4 + $0x14] sm:$0x3]  ;;  %v2255_v49 = vrot.slane %v2246_v62, 6  ;;  %v2170_v50 = vld [vmem:[#allocation4 + $0xc] sm:$0x33] }
 0x467   : > { %v2328_v45 = vsel %vm4387_vm1, %v2398_v38, %v2327_v40  ;;  %v2169_v51 = vld [vmem:[#allocation4 + $0x8] sm:$0xf]  ;;  %v2258_v0 = vrot.slane %v2247_v48, 6  ;;  %v2171_v53 = vld [vmem:[#allocation4 + $0x14] sm:$0x3]  ;;  %v2182_v55 = vrot.slane %v2170_v50, 6 }
 0x468   : > { %2406 = vrot.lane.b32.xlu1 %v2397_v15, %s3648_s22  ;;  %v2331_v5 = vsel %vm4387_vm1, %v2329_v46, %v2330_v44  ;;  %v2213_v52 = vld [vmem:[#allocation4 + $0x8] sm:$0xf]  ;;  %v2256_v3 = vsel %vm4387_vm1, %v2398_v38, %v2255_v49  ;;  %v2180_v13 = vrot.slane %v2169_v51, 6  ;;  %v2185_v56 = vrot.slane %v2171_v53, 6  ;;  %v3501_v6 = vld [vmem:[%s4856_s7 + $0x18] sm:$0xf] }
 0x469   : > { %2332 = vrot.lane.b32.xlu0 %v4367_v18, %s3642_s16  ;;  %v2259_v11 = vsel %vm4387_vm1, %v2257_v54, %v2258_v0  ;;  %v2183_v59 = vsel %vm4387_vm1, %v2398_v38, %v2182_v55  ;;  %v3500_v58 = vld [vmem:[%s4856_s7 + $0x10] sm:$0xff]  ;;  %v3503_v60 = vld [vmem:[%s4856_s7 + $0x28] sm:$0xf] }
 0x46a   : > { %v2184_v7 = vrot.slane %v2180_v13, 4  ;;  %v3504_v15 = vld [vmem:[%s4856_s7 + $0x30] sm:$0xff]  ;;  %v3507_v61 = vld [vmem:[%s4856_s7 + $0x48] sm:$0xf] }
 0x46b   : > { %v3508_v22 = vld [vmem:[%s4856_s7 + $0x50] sm:$0xff] }
 0x46c   : > { %2334 = vrot.lane.b32.xlu1 %v2325_v19, %s3642_s16  ;;  %v2186_v9 = vsel %vm4387_vm1, %v2184_v7, %v2185_v56  ;;  %v3509_v19 = vld [vmem:[%s4856_s7 + $0x58] sm:$0xf]  ;;  %vm4898_vm1 = vcmask 752640  }
 0x46d   : > { %2260 = vrot.lane.b32.xlu0 %v4367_v18, %s3644_s18 }
 0x470   : > { %2262 = vrot.lane.b32.xlu1 %v2253_v25, %s3644_s18  ;;  %v3511_v25 = vld [vmem:[%s4856_s7 + $0x68] sm:$0xf] }
 0x471   : > { %2440 = vrot.lane.b32.xlu0 %v2430_v27, %s3647_s21  ;;  %v3510_v27 = vld [vmem:[%s4856_s7 + $0x60] sm:$0xff] }
 0x474   : > { %2442 = vrot.lane.b32.xlu1 %v2431_v24, %s3647_s21  ;;  %v3513_v24 = vld [vmem:[%s4856_s7 + $0x78] sm:$0xf] }
 0x475   : > { %2368 = vrot.lane.b32.xlu0 %v2358_v30, %s3649_s23  ;;  %v3512_v30 = vld [vmem:[%s4856_s7 + $0x70] sm:$0xff] }
 0x478   : > { %2370 = vrot.lane.b32.xlu1 %v2359_v21, %s3649_s23  ;;  %v3515_v21 = vld [vmem:[%s4856_s7 + $0x88] sm:$0xf] }
 0x479   : > { %2296 = vrot.lane.b32.xlu0 %v2286_v34, %s3643_s17  ;;  %v3514_v34 = vld [vmem:[%s4856_s7 + $0x80] sm:$0xff] }
 0x47c   : > { %2298 = vrot.lane.b32.xlu1 %v2287_v31, %s3643_s17 }
 0x47d   : > { %2224 = vrot.lane.b32.xlu0 %v2214_v33, %s3645_s19 }
 0x480   : > { %2226 = vrot.lane.b32.xlu1 %v2215_v37, %s3645_s19 }
 0x481   : > { %2408 = vrot.lane.b32.xlu0 %v2400_v23, %s3648_s22 }
 0x484   : > { %2410 = vrot.lane.b32.xlu1 %v2403_v41, %s3648_s22 }
 0x485   : > { %2336 = vrot.lane.b32.xlu0 %v2328_v45, %s3642_s16 }
 0x488   : > { %2338 = vrot.lane.b32.xlu1 %v2331_v5, %s3642_s16 }
 0x489   : > { %2220 = vrot.lane.b32.xlu0 %v4354_v12, %s3645_s19 }
 0x48c   : > { %2222 = vrot.lane.b32.xlu1 %v2213_v52, %s3645_s19 }
 0x48d   : > { %2264 = vrot.lane.b32.xlu0 %v2256_v3, %s3644_s18 }
 0x490   : > { %2266 = vrot.lane.b32.xlu1 %v2259_v11, %s3644_s18 }
 0x491   : > { %2191 = vrot.lane.b32.xlu0 %v2183_v59, %s3646_s20 }
 0x494   : > { %2193 = vrot.lane.b32.xlu1 %v2186_v9, %s3646_s20 }
 0x495   : > { %2187 = vrot.lane.b32.xlu0 %v4367_v18, %s3646_s20  ;;  %v3505_v18 = vld [vmem:[%s4856_s7 + $0x38] sm:$0xf] }
 0x498   : > { %2189 = vrot.lane.b32.xlu1 %v2180_v13, %s3646_s20 }
 0x499   : > { %2499 = vperm.xlu0 %3587, %v2491_v10  }
 0x49c   : > { %2494 = vperm.xlu1 %3588, %v2490_v47  }
 0x49d   : > { %2782 = vperm.xlu0 %3587, %v2768_v8  }
 0x4a0   : > { %2787 = vperm.xlu1 %3588, %v2769_v14  }
 0x4a1   : > { %2812 = vperm.xlu0 %3587, %v3501_v6  }
 0x4a4   : > { %2807 = vperm.xlu1 %3588, %v3500_v58  }
 0x4a5   : > { %2866 = vperm.xlu0 %3587, %v3503_v60  }
 0x4a8   : > { %2861 = vperm.xlu1 %3588, %v3502_v16  }
 0x4a9   : > { %2920 = vperm.xlu0 %3587, %v3505_v18  }
 0x4ac   : > { %2915 = vperm.xlu1 %3588, %v3504_v15  }
 0x4ad   : > { %2974 = vperm.xlu0 %3587, %v3507_v61  }
 0x4b0   : > { %2969 = vperm.xlu1 %3588, %v3506_v43  }
 0x4b1   : > { %3028 = vperm.xlu0 %3587, %v3509_v19  }
 0x4b4   : > { %3023 = vperm.xlu1 %3588, %v3508_v22  }
 0x4b5   : > { %3081 = vperm.xlu0 %3587, %v3511_v25  }
 0x4b8   : > { %3076 = vperm.xlu1 %3588, %v3510_v27  }
 0x4b9   : > { %3135 = vperm.xlu0 %3587, %v3513_v24  }
 0x4bc   : > { %3130 = vperm.xlu1 %3588, %v3512_v30  }
 0x4bd   : > { %3189 = vperm.xlu0 %3587, %v3515_v21  }
 0x4c0   : > { %3184 = vperm.xlu1 %3588, %v3514_v34  }
 0x4cb   : > { %v2437_v63 = vpop.permute.xlu0 %2436 }
 0x4cc   : > { %v2444_v32 = vrot.slane %v2437_v63, 4 }
 0x4ce   : > { %v2439_v31 = vpop.permute.xlu1 %2438 }
 0x4cf   : > { %v2445_v33 = vrot.slane %v2439_v31, 4  ;;  %2457 = vst.msk [vmem:[#allocation2 + $0x98] sm:$0xf] %vm396_vm0, %v2439_v31  ;;  %v2365_v1 = vpop.permute.xlu0 %2364 }
 0x4d0   : > { %v2372_v38 = vrot.slane %v2365_v1, 4 }
 0x4d1   : > { %v2448_v35 = vsel %vm432_vm2, %v2444_v32, %v2445_v33 }
 0x4d2   : > { %v4488_v36 = vsel %vm777_vm8, %v2437_v63, %v2448_v35  ;;  %v2367_v37 = vpop.permute.xlu1 %2366 }
 0x4d3   : > { %v2373_v39 = vrot.slane %v2367_v37, 4  ;;  %2385 = vst.msk [vmem:[#allocation2 + $0x74] sm:$0xf] %vm396_vm0, %v2367_v37  ;;  %v2293_v17 = vpop.permute.xlu0 %2292 }
 0x4d4   : > { %v2300_v41 = vrot.slane %v2293_v17, 4 }
 0x4d5   : > { %v2376_v23 = vsel %vm432_vm2, %v2372_v38, %v2373_v39 }
 0x4d6   : > { %v4493_v29 = vsel %vm4898_vm1, %v2365_v1, %v2376_v23  ;;  %v2295_v40 = vpop.permute.xlu1 %2294  ;;  %vm4900_vm1 = vcmask 900096  }
 0x4d7   : > { %v2301_v44 = vrot.slane %v2295_v40, 4  ;;  %2313 = vst.msk [vmem:[#allocation2 + $0x50] sm:$0xf] %vm396_vm0, %v2295_v40  ;;  %v2405_v45 = vpop.permute.xlu0 %2404 }
 0x4d8   : > { %v2412_v48 = vrot.slane %v2405_v45, 4 }
 0x4d9   : > { %v2304_v46 = vsel %vm432_vm2, %v2300_v41, %v2301_v44 }
 0x4da   : > { %v4498_v62 = vsel %vm581_vm4, %v2293_v17, %v2304_v46  ;;  %v2407_v5 = vpop.permute.xlu1 %2406 }
 0x4db   : > { %v2413_v49 = vrot.slane %v2407_v5, 4  ;;  %2425 = vst.msk [vmem:[#allocation2 + $0x80] sm:$0xc] %vm2208_vm15, %v2407_v5  ;;  %v2333_v50 = vpop.permute.xlu0 %2332 }
 0x4dc   : > { %v2340_v53 = vrot.slane %v2333_v50, 4 }
 0x4dd   : > { %v2416_v51 = vsel %vm432_vm2, %v2412_v48, %v2413_v49 }
 0x4de   : > { %v2417_v52 = vsel %vm4899_vm5, %v2405_v45, %v2416_v51  ;;  %v2335_v0 = vpop.permute.xlu1 %2334  ;;  %vm2620_vm5 = vcmask 1045504  }
 0x4df   : > { %2424 = vst [vmem:[#allocation2 + $0x78] sm:$0xcc] %v2417_v52  ;;  %v2341_v3 = vrot.slane %v2335_v0, 4  ;;  %2353 = vst.msk [vmem:[#allocation2 + $0x5c] sm:$0xc] %vm2208_vm15, %v2335_v0  ;;  %v2261_v54 = vpop.permute.xlu0 %2260 }
 0x4e0   : > { %v2268_v56 = vrot.slane %v2261_v54, 4 }
 0x4e1   : > { %v2344_v55 = vsel %vm432_vm2, %v2340_v53, %v2341_v3 }
 0x4e2   : > { %v2345_v13 = vsel %vm630_vm3, %v2333_v50, %v2344_v55  ;;  %v2263_v11 = vpop.permute.xlu1 %2262 }
 0x4e3   : > { %2352 = vst [vmem:[#allocation2 + $0x54] sm:$0xcc] %v2345_v13  ;;  %v2269_v59 = vrot.slane %v2263_v11, 4  ;;  %2281 = vst.msk [vmem:[#allocation2 + $0x38] sm:$0xc] %vm2208_vm15, %v2263_v11  ;;  %v2441_v7 = vpop.permute.xlu0 %2440 }
 0x4e4   : > { %v2446_v8 = vrot.slane %v2441_v7, 4 }
 0x4e5   : > { %v2272_v9 = vsel %vm432_vm2, %v2268_v56, %v2269_v59 }
 0x4e6   : > { %v2273_v10 = vsel %vm4900_vm1, %v2261_v54, %v2272_v9  ;;  %v2443_v47 = vpop.permute.xlu1 %2442  ;;  %vm4901_vm1 = vcmask 752640  }
 0x4e7   : > { %2280 = vst [vmem:[#allocation2 + $0x30] sm:$0xcc] %v2273_v10  ;;  %v2447_v14 = vrot.slane %v2443_v47, 4  ;;  %2459 = vst.msk [vmem:[#allocation2 + $0xa4] sm:$0x3] %vm2166_vm14, %v2443_v47  ;;  %v2369_v6 = vpop.permute.xlu0 %2368 }
 0x4e8   : > { %v2374_v18 = vrot.slane %v2369_v6, 4 }
 0x4e9   : > { %v2450_v58 = vsel %vm432_vm2, %v2446_v8, %v2447_v14 }
 0x4ea   : > { %v2451_v60 = vsel %vm777_vm8, %v2441_v7, %v2450_v58  ;;  %v2371_v16 = vpop.permute.xlu1 %2370 }
 0x4eb   : > { %2458 = vst [vmem:[#allocation2 + $0x9c] sm:$0x33] %v2451_v60  ;;  %v2375_v15 = vrot.slane %v2371_v16, 4  ;;  %2387 = vst.msk [vmem:[#allocation2 + $0x80] sm:$0x3] %vm2166_vm14, %v2371_v16  ;;  %v2297_v61 = vpop.permute.xlu0 %2296 }
 0x4ec   : > { %v2302_v27 = vrot.slane %v2297_v61, 4 }
 0x4ed   : > { %v2378_v43 = vsel %vm432_vm2, %v2374_v18, %v2375_v15 }
 0x4ee   : > { %v2379_v19 = vsel %vm4901_vm1, %v2369_v6, %v2378_v43  ;;  %v2299_v22 = vpop.permute.xlu1 %2298  ;;  %v3625_v25 = vld [vmem:[#allocation2 + $0x98] ss:$12 sps:$4 sm:$0x3f]   ;;  %vm4902_vm1 = vcmask 1031168  }
 0x4ef   : > { %2386 = vst [vmem:[#allocation2 + $0x78] sm:$0x33] %v2379_v19  ;;  %v2303_v24 = vrot.slane %v2299_v22, 4  ;;  %2315 = vst.msk [vmem:[#allocation2 + $0x5c] sm:$0x3] %vm2166_vm14, %v2299_v22  ;;  %v2225_v30 = vpop.permute.xlu0 %2224  ;;  %v2628_v21 = vsel %vm2620_vm5, %v3625_v25, 0 }
 0x4f0   : > { %3541 = vmatpush3.bf16.msra.mxu1 %v2628_v21  ;;  %v2230_v33 = vrot.slane %v2225_v30, 4 }
 0x4f1   : > { %v2306_v34 = vsel %vm432_vm2, %v2302_v27, %v2303_v24  ;;  %3542 = vmatprep.subr.bf16.mxu1 %v3651_v28 }
 0x4f2   : > { %v2307_v63 = vsel %vm581_vm4, %v2297_v61, %v2306_v34  ;;  %v2227_v31 = vpop.permute.xlu1 %2226  ;;  %v2488_v32 = vld [vmem:[#allocation2 + $0x9c] sm:$0x33] }
 0x4f3   : > { %2314 = vst [vmem:[#allocation2 + $0x54] sm:$0x33] %v2307_v63  ;;  %v2231_v1 = vrot.slane %v2227_v31, 4  ;;  %2243 = vst.msk [vmem:[#allocation2 + $0x38] sm:$0x3] %vm2166_vm14, %v2227_v31  ;;  %v3491_v35 = vcombine.high %v4488_v36, %v2488_v32  ;;  %v3490_v37 = vcombine.low %v4488_v36, %v2488_v32  ;;  %v2409_v38 = vpop.permute.xlu0 %2408  ;;  %vm4903_vm14 = vcmask 744448  }
 0x4f4   : > { %v2414_v41 = vrot.slane %v2409_v38, 4 }
 0x4f5   : > { %v2234_v39 = vsel %vm432_vm2, %v2230_v33, %v2231_v1  ;;  %3493 = vmatprep.subr.msk.bf16.mxu0 %vm2620_vm5, %v3491_v35  ;;  %v2622_v17 = vsel %vm2620_vm5, %v3490_v37, 0  ;;  %vm4904_vm5 = vmmov %vm4902_vm1 }
 0x4f6   : > { %v2235_v23 = vsel %vm4902_vm1, %v2225_v30, %v2234_v39  ;;  %v2411_v40 = vpop.permute.xlu1 %2410  ;;  %2633 = vmatpush1.bf16.msra.mxu0 %v2622_v17  ;;  %v2482_v48 = vld [vmem:[#allocation2 + $0x78] sm:$0xff]  ;;  %vm4905_vm1 = vcmask 900096   ;;  %v3632_v17 = vld [vmem:[%s4854_s5] sm:$0x3f]  }
 0x4f7   : > { %2242 = vst [vmem:[#allocation2 + $0x30] sm:$0x33] %v2235_v23  ;;  %v2415_v44 = vrot.slane %v2411_v40, 4  ;;  %2427 = vst.msk [vmem:[#allocation2 + $0x8c] sm:$0xf] %vm396_vm0, %v2411_v40  ;;  %v2337_v45 = vpop.permute.xlu0 %2336 }
 0x4f8   : > { %v2342_v49 = vrot.slane %v2337_v45, 4  ;;  %v3628_v43 = vld [vmem:[#allocation2 + $0x50] ss:$12 sps:$4 sm:$0xff]  }
 0x4f9   : > { %v2418_v46 = vsel %vm432_vm2, %v2414_v41, %v2415_v44 }
 0x4fa   : > { %v2419_v36 = vsel %vm4903_vm14, %v2409_v38, %v2418_v46  ;;  %v2339_v5 = vpop.permute.xlu1 %2338  ;;  %v2476_v13 = vld [vmem:[#allocation2 + $0x54] sm:$0xff]  ;;  %vm4906_vm14 = vcmask 1039360  }
 0x4fb   : > { %v2343_v50 = vrot.slane %v2339_v5, 4  ;;  %2355 = vst.msk [vmem:[#allocation2 + $0x68] sm:$0xf] %vm396_vm0, %v2339_v5  ;;  %v3487_v51 = vcombine.low %v2482_v48, %v2419_v36  ;;  %v3488_v52 = vcombine.high %v2482_v48, %v2419_v36  ;;  %v2221_v0 = vpop.permute.xlu0 %2220  ;;  %v3482_v47 = vcombine.high %v4498_v62, %v2476_v13 }
 0x4fc   : > { %v2228_v11 = vrot.slane %v2221_v0, 4  ;;  %v3481_v16 = vcombine.low %v4498_v62, %v2476_v13 }
 0x4fd   : > { %v2346_v53 = vsel %vm432_vm2, %v2342_v49, %v2343_v50  ;;  %2634 = vmatprep.subr.bf16.mxu0 %v3488_v52 }
 0x4fe   : > { %v2347_v3 = vsel %vm630_vm3, %v2337_v45, %v2346_v53  ;;  %v2223_v54 = vpop.permute.xlu1 %2222  ;;  %v3626_v55 = vld [vmem:[#allocation2 + $0x80] ss:$12 sps:$4 sm:$0xff]   ;;  %2635 = vmatpush1.bf16.msra.mxu0 %v3487_v51  ;;  %v2470_v19 = vld [vmem:[#allocation2 + $0x30] sm:$0xff] }
 0x4ff   : > { %v2229_v56 = vrot.slane %v2223_v54, 4  ;;  %2241 = vst.msk [vmem:[#allocation2 + $0x2c] sm:$0xf] %vm396_vm0, %v2223_v54  ;;  %v3484_v59 = vcombine.low %v2347_v3, %v4493_v29  ;;  %v3485_v7 = vcombine.high %v2347_v3, %v4493_v29  ;;  %v2265_v9 = vpop.permute.xlu0 %2264  ;;  %3543 = vmatpush3.bf16.msra.mxu1 %v3626_v55 }
 0x500   : > { %3544 = vmatprep.subr.bf16.mxu1 %v3651_v28  ;;  %v2270_v58 = vrot.slane %v2265_v9, 4 }
 0x501   : > { %v2232_v10 = vsel %vm432_vm2, %v2228_v11, %v2229_v56  ;;  %2636 = vmatprep.subr.bf16.mxu0 %v3485_v7 }
 0x502   : > { %v2233_v8 = vsel %vm4904_vm5, %v2221_v0, %v2232_v10  ;;  %v2267_v14 = vpop.permute.xlu1 %2266  ;;  %v3627_v6 = vld [vmem:[#allocation2 + $0x68] ss:$12 sps:$4 sm:$0xff]   ;;  %2637 = vmatpush1.bf16.msra.mxu0 %v3484_v59  ;;  %vm4907_vm5 = vmmov %vm4906_vm14 }
 0x503   : > { %v2271_v60 = vrot.slane %v2267_v14, 4  ;;  %2283 = vst.msk [vmem:[#allocation2 + $0x44] sm:$0xf] %vm396_vm0, %v2267_v14  ;;  %2638 = vmatprep.subr.bf16.mxu0 %v3482_v47  ;;  %v2192_v29 = vpop.permute.xlu0 %2191  ;;  %3545 = vmatpush3.bf16.msra.mxu1 %v3627_v6 }
 0x504   : > { %3546 = vmatprep.subr.bf16.mxu1 %v3651_v28  ;;  %v2197_v22 = vrot.slane %v2192_v29, 4 }
 0x505   : > { %v2274_v18 = vsel %vm432_vm2, %v2270_v58, %v2271_v60 }
 0x506   : > { %v2275_v15 = vsel %vm4905_vm1, %v2265_v9, %v2274_v18  ;;  %v2194_v61 = vpop.permute.xlu1 %2193  ;;  %2639 = vmatpush1.bf16.msra.mxu0 %v3481_v16 }
 0x507   : > { %v2198_v25 = vrot.slane %v2194_v61, 4  ;;  %2211 = vst.msk [vmem:[#allocation2 + $0x20] sm:$0xf] %vm396_vm0, %v2194_v61  ;;  %v3478_v27 = vcombine.low %v2470_v19, %v2275_v15  ;;  %v3479_v24 = vcombine.high %v2470_v19, %v2275_v15  ;;  %v2188_v30 = vpop.permute.xlu0 %2187  ;;  %3547 = vmatpush3.bf16.msra.mxu1 %v3628_v43 }
 0x508   : > { %3548 = vmatprep.subr.bf16.mxu1 %v3651_v28  ;;  %v2195_v31 = vrot.slane %v2188_v30, 4 }
 0x509   : > { %v2201_v62 = vsel %vm432_vm2, %v2197_v22, %v2198_v25  ;;  %2640 = vmatprep.subr.bf16.mxu0 %v3479_v24 }
 0x50a   : > { %v2202_v21 = vsel %vm4906_vm14, %v2192_v29, %v2201_v62  ;;  %v2190_v34 = vpop.permute.xlu1 %2189  ;;  %v3629_v63 = vld [vmem:[#allocation2 + $0x38] ss:$12 sps:$4 sm:$0xff]   ;;  %2641 = vmatpush1.bf16.msra.mxu0 %v3478_v27  ;;  %vm4917_vm14 = vcmask 744448  }
 0x50b   : > { %v2196_v32 = vrot.slane %v2190_v34, 4  ;;  %2209 = vst.msk [vmem:[#allocation2 + $0x14] sm:$0xc] %vm2208_vm15, %v2190_v34  ;;  %v3475_v33 = vcombine.low %v2202_v21, %v2233_v8  ;;  %v3476_v1 = vcombine.high %v2202_v21, %v2233_v8  ;;  %3549 = vmatpush3.bf16.msra.mxu1 %v3629_v63  ;;  %vm4915_vm15 = vcmask 752640  }
 0x50c   : > { %3550 = vmatprep.subr.bf16.mxu1 %v3651_v28 }
 0x50d   : > { %v2199_v35 = vsel %vm432_vm2, %v2195_v31, %v2196_v32  ;;  %2642 = vmatprep.subr.bf16.mxu0 %v3476_v1 }
 0x50e   : > { %v2200_v37 = vsel %vm4907_vm5, %v2188_v30, %v2199_v35  ;;  %v3630_v38 = vld [vmem:[#allocation2 + $0x20] ss:$12 sps:$4 sm:$0xff]   ;;  %2643 = vmatpush1.bf16.msra.mxu0 %v3475_v33 }
 0x50f   : > { %2207 = vst [vmem:[#allocation2 + $0xc] sm:$0xcc] %v2200_v37  ;;  %3551 = vmatpush3.bf16.msra.mxu1 %v3630_v38 }
 0x510   : > { %3552 = vmatprep.subr.bf16.mxu1 %v3651_v28 }
 0x512   : > { %v3631_v39 = vld [vmem:[#allocation2 + $0x8] ss:$12 sps:$4 sm:$0xff]  }
 0x513   : > { %3553 = vmatpush3.bf16.msra.mxu1 %v3631_v39 }
 0x514   : > { %v2500_v5 = vpop.permute.xlu0 %2499 }
 0x516   : > { %v2464_v23 = vld [vmem:[#allocation2 + $0xc] sm:$0xff]  ;;  %3555 = vmatmul.mubr.msk.bf16.vlgmr.msra.gmra.mxu1 %vm630_vm3, %v3632_v17 }
 0x517   : > { %v3472_v40 = vcombine.low %v4354_v12, %v2464_v23  ;;  %v3473_v41 = vcombine.high %v4354_v12, %v2464_v23  ;;  %v2495_v44 = vpop.permute.xlu1 %2494 }
 0x518   : > { %v4577_v16 = vpop.permute.xlu0 %2782 }
 0x519   : > { %2644 = vmatprep.subr.bf16.mxu0 %v3473_v41 }
 0x51a   : > { %2645 = vmatpush1.bf16.msra.mxu0 %v3472_v40 }
 0x51b   : > { %v4579_v18 = vpop.permute.xlu1 %2787 }
 0x51c   : > { %v4581_v15 = vpop.permute.xlu0 %2812 }
 0x51d   : > { %3494 = vmatmul.mubr.msk.bf16.vlgmr.msra.gmra.mxu0 %vm630_vm3, %v3632_v17 }
 0x51f   : > { %v2808_v61 = vpop.permute.xlu1 %2807 }
 0x520   : > { %v4583_v43 = vpop.permute.xlu0 %2866 }
 0x523   : > { %v2862_v19 = vpop.permute.xlu1 %2861 }
 0x524   : > { %v4585_v22 = vpop.permute.xlu0 %2920 }
 0x527   : > { %v2916_v26 = vpop.permute.xlu1 %2915 }
 0x528   : > { %v4587_v25 = vpop.permute.xlu0 %2974 }
 0x52b   : > { %v2970_v2 = vpop.permute.xlu1 %2969 }
 0x52c   : > { %v4589_v27 = vpop.permute.xlu0 %3028 }
 0x52f   : > { %v4591_v24 = vpop.permute.xlu1 %3023 }
 0x530   : > { %v4593_v30 = vpop.permute.xlu0 %3081 }
 0x533   : > { %v4595_v62 = vpop.permute.xlu1 %3076 }
 0x534   : > { %v4597_v21 = vpop.permute.xlu0 %3135 }
 0x537   : > { %v4599_v34 = vpop.permute.xlu1 %3130 }
 0x538   : > { %v4601_v63 = vpop.permute.xlu0 %3189 }
 0x53b   : > { %v4603_v31 = vpop.permute.xlu1 %3184 }
 0x5d6   : > { %v2707_v45 = vpop.f32.mrf.mxu1 }
 0x5d7   : > { %v2708_v28 = vadd.f32 %v2707_v45, %v2495_v44 }
 0x5d8   : > { %v3556_v46 = vpop.f32.mrf.mxu1 }
 0x5d9   : > { %v2716_v36 = vmax.f32 %v2708_v28, 0.0 }
 0x5da   : > { %v2710_v48 = vpop.f32.mrf.mxu1 }
 0x5db   : > { %v2722_v49 = vsel %vm4001_vm7, %v2716_v36, 0.0  ;;  %v2711_v50 = vadd.f32 %v2710_v48, %v2500_v5 }
 0x5dc   : > { %v3529_v51 = vpack.c.bf16 %v2722_v49, %v2722_v49  ;;  %v3557_v0 = vpop.f32.mrf.mxu1 }
 0x5dd   : > { %v2664_v52 = vpop.f32.mrf.mxu0  ;;  %v2719_v53 = vmax.f32 %v2711_v50, 0.0 }
 0x5de   : > { %v2665_v12 = vadd.f32 %v2664_v52, %v2495_v44  ;;  %2748 = vrot.lane.b32.xlu1 %v3529_v51, %s3650_s24 }
 0x5df   : > { %v2666_v3 = vpop.f32.mrf.mxu0  ;;  %v2725_v54 = vsel %vm4001_vm7, %v2719_v53, 0.0  ;;  %vm4908_vm7 = vcmask 410624  }
 0x5e0   : > { %v2714_v55 = vmax.f32 %v2665_v12, 0.0  ;;  %v2667_v13 = vadd.f32 %v2666_v3, %v2495_v44  ;;  %v3531_v11 = vpack.c.bf16 %v2725_v54, %v2725_v54 }
 0x5e1   : > { %v2668_v56 = vpop.f32.mrf.mxu0 }
 0x5e2   : > { %v2715_v59 = vmax.f32 %v2667_v13, 0.0  ;;  %v2669_v7 = vadd.f32 %v2668_v56, %v2500_v5  ;;  %2752 = vrot.lane.b32.xlu1 %v3531_v11, %s3650_s24  ;;  %v2720_v10 = vsel %vm4005_vm6, %v2714_v55, 0.0 }
 0x5e3   : > { %v2670_v9 = vpop.f32.mrf.mxu0 }
 0x5e4   : > { %v2721_v47 = vsel %vm4009_vm9, %v2715_v59, 0.0  ;;  %v2717_v8 = vmax.f32 %v2669_v7, 0.0  ;;  %v2671_v14 = vadd.f32 %v2670_v9, %v2500_v5 }
 0x5e5   : > { %v3528_v6 = vpack.c.bf16 %v2721_v47, %v2720_v10 }
 0x5e6   : > { %v2718_v20 = vmax.f32 %v2671_v14, 0.0  ;;  %v2723_v58 = vsel %vm4005_vm6, %v2717_v8, 0.0  ;;  %vm4909_vm6 = vmmov %vm4907_vm5 }
 0x5e7   : > { %2746 = vrot.lane.b32.xlu0 %v3528_v6, %s3650_s24 }
 0x5e8   : > { %v2724_v60 = vsel %vm4009_vm9, %v2718_v20, 0.0  ;;  %vm4910_vm9 = vmmov %vm4907_vm5 }
 0x5e9   : > { %v3530_v29 = vpack.c.bf16 %v2724_v60, %v2723_v58  ;;  %vm4918_vm5 = vmmov %vm4917_vm14 }
 0x5eb   : > { %2750 = vrot.lane.b32.xlu0 %v3530_v29, %s3650_s24 }
 0x650   : > { %v2749_v32 = vpop.permute.xlu1 %2748 }
 0x654   : > { %v2753_v17 = vpop.permute.xlu1 %2752 }
 0x659   : > { %v2747_v33 = vpop.permute.xlu0 %2746 }
 0x65a   : > { %v2754_v1 = vrot.slane %v2747_v33, 4 }
 0x65c   : > { %v2756_v35 = vsel %vm1291_vm11, %v2754_v1, %v2747_v33  ;;  %v2757_v37 = vsel %vm1291_vm11, %v2754_v1, %v2749_v32 }
 0x65d   : > { %2764 = vst.msk [vmem:[#allocation5] sm:$0xff] %vm4037_vm12, %v2756_v35  ;;  %v2751_v38 = vpop.permute.xlu0 %2750 }
 0x65e   : > { %2765 = vst.msk [vmem:[#allocation5 + $0x8] sm:$0xf] %vm1308_vm13, %v2757_v37  ;;  %v2755_v39 = vrot.slane %v2751_v38, 4  ;;  %vm4913_vm13 = vmmov %vm4905_vm1 }
 0x660   : > { %v2758_v23 = vsel %vm1291_vm11, %v2755_v39, %v2751_v38  ;;  %v2759_v40 = vsel %vm1291_vm11, %v2755_v39, %v2753_v17  ;;  %vm4911_vm11 = vcmask 1031168  }
 0x661   : > { %2766 = vst.msk [vmem:[#allocation5 + $0xc] sm:$0x33] %vm4343_vm10, %v2758_v23  ;;  %vm4912_vm12 = vmmov %vm4911_vm11 }
 0x662   : > { %2767 = vst.msk [vmem:[#allocation5 + $0x14] sm:$0x3] %vm4908_vm7, %v2759_v40  ;;  %vm4914_vm10 = vmmov %vm4905_vm1 }
 0x663   : > { %vm4916_vm1 = vmmov %vm4915_vm15 }
 0x664   : > { %v2770_v41 = vld [vmem:[#allocation5] sm:$0xff]  ;;  %vm4919_vm7 = vmmov %vm4909_vm6 }
 0x665   : > { %v2771_v44 = vld [vmem:[#allocation5 + $0x8] sm:$0xf]  ;;  %v4615_v45 = vunpack.c.l.bf16 %v2770_v41  ;;  %v4617_v4 = vunpack.c.h.bf16 %v2770_v41 }
 0x666   : > { %v4619_v28 = vunpack.c.l.bf16 %v2771_v44 }
 0x667   : > { %v2816_v46 = vmul.f32 %v2808_v61, %v4617_v4  ;;  %v2815_v36 = vmul.f32 %v2808_v61, %v4615_v45  ;;  %v2870_v57 = vmul.f32 %v2862_v19, %v4617_v4  ;;  %v2924_v48 = vmul.f32 %v2916_v26, %v4617_v4 }
 0x668   : > { %v2817_v5 = vmul.f32 %v2808_v61, %v4619_v28  ;;  %v2869_v49 = vmul.f32 %v2862_v19, %v4615_v45  ;;  %v2978_v50 = vmul.f32 %v2970_v2, %v4617_v4  ;;  %v2871_v51 = vmul.f32 %v2862_v19, %v4619_v28  ;;  %v2772_v55 = vld [vmem:[#allocation5 + $0xc] sm:$0x33] }
 0x669   : > { %2829 = vrot.lane.b32.xlu0 %v2816_v46, %s3646_s20  ;;  %2827 = vrot.lane.b32.xlu1 %v2815_v36, %s3646_s20  ;;  %v4637_v52 = vmul.f32 %v4603_v31, %v4619_v28  ;;  %v4641_v0 = vmul.f32 %v4603_v31, %v4617_v4  ;;  %v3032_v53 = vmul.f32 %v4591_v24, %v4617_v4  ;;  %v4655_v13 = vunpack.c.l.bf16 %v2772_v55  ;;  %v2773_v59 = vld [vmem:[#allocation5 + $0x14] sm:$0x3] }
 0x66a   : > { %v2923_v12 = vmul.f32 %v2916_v26, %v4615_v45  ;;  %v3085_v3 = vmul.f32 %v4595_v62, %v4617_v4  ;;  %v2925_v54 = vmul.f32 %v2916_v26, %v4619_v28  ;;  %v3139_v11 = vmul.f32 %v4599_v34, %v4617_v4 }
 0x66b   : > { %v2977_v56 = vmul.f32 %v2970_v2, %v4615_v45  ;;  %v4662_v7 = vunpack.c.l.bf16 %v2773_v59  ;;  %v2979_v9 = vmul.f32 %v2970_v2, %v4619_v28  ;;  %v2818_v10 = vmul.f32 %v4581_v15, %v4655_v13 }
 0x66c   : > { %v3031_v47 = vmul.f32 %v4591_v24, %v4615_v45  ;;  %v3033_v14 = vmul.f32 %v4591_v24, %v4619_v28  ;;  %v2872_v6 = vmul.f32 %v4583_v43, %v4655_v13  ;;  %v3084_v20 = vmul.f32 %v4595_v62, %v4615_v45 }
 0x66d   : > { %2883 = vrot.lane.b32.xlu0 %v2870_v57, %s3645_s19  ;;  %2831 = vrot.lane.b32.xlu1 %v2817_v5, %s3646_s20  ;;  %v2820_v8 = vmul.f32 %v4581_v15, %v4662_v7  ;;  %v2874_v58 = vmul.f32 %v4583_v43, %v4662_v7  ;;  %v3086_v60 = vmul.f32 %v4595_v62, %v4619_v28  ;;  %v4705_v24 = vunpack.c.h.bf16 %v2772_v55 }
 0x66e   : > { %v2926_v29 = vmul.f32 %v4585_v22, %v4655_v13  ;;  %v3138_v61 = vmul.f32 %v4599_v34, %v4615_v45  ;;  %v2928_v19 = vmul.f32 %v4585_v22, %v4662_v7  ;;  %v3140_v26 = vmul.f32 %v4599_v34, %v4619_v28 }
 0x66f   : > { %v2980_v2 = vmul.f32 %v4587_v25, %v4655_v13  ;;  %v3192_v62 = vmul.f32 %v4603_v31, %v4615_v45  ;;  %v2982_v32 = vmul.f32 %v4587_v25, %v4662_v7  ;;  %v2819_v34 = vmul.f32 %v4581_v15, %v4705_v24 }
 0x670   : > { %v3034_v33 = vmul.f32 %v4589_v27, %v4655_v13  ;;  %v2873_v31 = vmul.f32 %v4583_v43, %v4705_v24  ;;  %v3036_v1 = vmul.f32 %v4589_v27, %v4662_v7  ;;  %v2927_v15 = vmul.f32 %v4585_v22, %v4705_v24 }
 0x671   : > { %2937 = vrot.lane.b32.xlu0 %v2924_v48, %s3644_s18  ;;  %2881 = vrot.lane.b32.xlu1 %v2869_v49, %s3645_s19  ;;  %v3087_v35 = vmul.f32 %v4593_v30, %v4655_v13  ;;  %v2981_v43 = vmul.f32 %v4587_v25, %v4705_v24  ;;  %v3089_v37 = vmul.f32 %v4593_v30, %v4662_v7 }
 0x672   : > { %v3035_v22 = vmul.f32 %v4589_v27, %v4705_v24  ;;  %v3141_v38 = vmul.f32 %v4597_v21, %v4655_v13  ;;  %v3088_v25 = vmul.f32 %v4593_v30, %v4705_v24  ;;  %v3143_v39 = vmul.f32 %v4597_v21, %v4662_v7 }
 0x673   : > { %v3142_v27 = vmul.f32 %v4597_v21, %v4705_v24  ;;  %v3195_v17 = vmul.f32 %v4601_v63, %v4655_v13  ;;  %v3196_v30 = vmul.f32 %v4601_v63, %v4705_v24  ;;  %v3197_v23 = vmul.f32 %v4601_v63, %v4662_v7  ;;  %v3259_v21 = vld [vmem:[#allocation6] sm:$0x1] }
 0x674   : > { %v2790_v41 = vmul.f32 %v4577_v16, %v4615_v45  ;;  %v2792_v36 = vmul.f32 %v4577_v16, %v4619_v28  ;;  %v2791_v57 = vmul.f32 %v4577_v16, %v4617_v4 }
 0x675   : > { %2991 = vrot.lane.b32.xlu0 %v2978_v50, %s3643_s17  ;;  %2885 = vrot.lane.b32.xlu1 %v2871_v51, %s3645_s19 }
 0x679   : > { %3045 = vrot.lane.b32.xlu0 %v3032_v53, %s3642_s16  ;;  %2935 = vrot.lane.b32.xlu1 %v2923_v12, %s3644_s18 }
 0x67d   : > { %3098 = vrot.lane.b32.xlu0 %v3085_v3, %s3649_s23  ;;  %2939 = vrot.lane.b32.xlu1 %v2925_v54, %s3644_s18 }
 0x681   : > { %3152 = vrot.lane.b32.xlu0 %v3139_v11, %s3648_s22  ;;  %2989 = vrot.lane.b32.xlu1 %v2977_v56, %s3643_s17 }
 0x685   : > { %2993 = vrot.lane.b32.xlu1 %v2979_v9, %s3643_s17  ;;  %2833 = vrot.lane.b32.xlu0 %v2818_v10, %s3646_s20 }
 0x689   : > { %3043 = vrot.lane.b32.xlu1 %v3031_v47, %s3642_s16  ;;  %2837 = vrot.lane.b32.xlu0 %v2820_v8, %s3646_s20 }
 0x68d   : > { %3047 = vrot.lane.b32.xlu1 %v3033_v14, %s3642_s16  ;;  %2887 = vrot.lane.b32.xlu0 %v2872_v6, %s3645_s19 }
 0x691   : > { %3096 = vrot.lane.b32.xlu1 %v3084_v20, %s3649_s23  ;;  %2891 = vrot.lane.b32.xlu0 %v2874_v58, %s3645_s19 }
 0x695   : > { %3100 = vrot.lane.b32.xlu1 %v3086_v60, %s3649_s23  ;;  %2941 = vrot.lane.b32.xlu0 %v2926_v29, %s3644_s18 }
 0x699   : > { %3150 = vrot.lane.b32.xlu1 %v3138_v61, %s3648_s22  ;;  %2945 = vrot.lane.b32.xlu0 %v2928_v19, %s3644_s18 }
 0x69d   : > { %3154 = vrot.lane.b32.xlu1 %v3140_v26, %s3648_s22  ;;  %2995 = vrot.lane.b32.xlu0 %v2980_v2, %s3643_s17 }
 0x6a1   : > { %3204 = vrot.lane.b32.xlu1 %v3192_v62, %s3647_s21  ;;  %2999 = vrot.lane.b32.xlu0 %v2982_v32, %s3643_s17 }
 0x6a5   : > { %2835 = vrot.lane.b32.xlu1 %v2819_v34, %s3646_s20  ;;  %3049 = vrot.lane.b32.xlu0 %v3034_v33, %s3642_s16 }
 0x6a9   : > { %2889 = vrot.lane.b32.xlu1 %v2873_v31, %s3645_s19  ;;  %3053 = vrot.lane.b32.xlu0 %v3036_v1, %s3642_s16 }
 0x6ad   : > { %2943 = vrot.lane.b32.xlu1 %v2927_v15, %s3644_s18  ;;  %3102 = vrot.lane.b32.xlu0 %v3087_v35, %s3649_s23 }
 0x6b1   : > { %2997 = vrot.lane.b32.xlu1 %v2981_v43, %s3643_s17  ;;  %3106 = vrot.lane.b32.xlu0 %v3089_v37, %s3649_s23 }
 0x6b5   : > { %3051 = vrot.lane.b32.xlu1 %v3035_v22, %s3642_s16  ;;  %3156 = vrot.lane.b32.xlu0 %v3141_v38, %s3648_s22  ;;  %s3559_s16 = smul.u32 3, %s4929_s12 }
 0x6b7   : > { %s332_s19 = scalar_lea.vmem %s4858_s9, %s3559_s16 }
 0x6b9   : > { %3104 = vrot.lane.b32.xlu1 %v3088_v25, %s3649_s23  ;;  %3160 = vrot.lane.b32.xlu0 %v3143_v39, %s3648_s22 }
 0x6bd   : > { %3158 = vrot.lane.b32.xlu1 %v3142_v27, %s3648_s22  ;;  %3210 = vrot.lane.b32.xlu0 %v3195_v17, %s3647_s21 }
 0x6c1   : > { %3212 = vrot.lane.b32.xlu1 %v3196_v30, %s3647_s21  ;;  %3214 = vrot.lane.b32.xlu0 %v3197_v23, %s3647_s21 }
 0x6c5   : > { %3208 = vrot.lane.b32.xlu1 %v4637_v52, %s3647_s21  ;;  %3206 = vrot.lane.b32.xlu0 %v4641_v0, %s3647_s21 }
 0x6c9   : > { %3262 = vperm.xlu0 %3587, %v3259_v21  }
 0x6db   : > { %v2828_v40 = vpop.permute.xlu1 %2827  ;;  %v2830_v44 = vpop.permute.xlu0 %2829 }
 0x6dc   : > { %v2840_v46 = vsel %vm4909_vm6, %v2828_v40, %v2830_v44 }
 0x6dd   : > { %v2850_v63 = vadd.f32 %v2840_v46, %v2790_v41 }
 0x6df   : > { %v2832_v5 = vpop.permute.xlu1 %2831  ;;  %v2884_v48 = vpop.permute.xlu0 %2883 }
 0x6e0   : > { %v2841_v49 = vsel %vm4910_vm9, %v2830_v44, %v2832_v5  ;;  %v2852_v50 = vadd.f32 %v2832_v5, %v2792_v36  ;;  %vm4920_vm9 = vmmov %vm4911_vm11 }
 0x6e1   : > { %v2851_v51 = vadd.f32 %v2841_v49, %v2791_v57 }
 0x6e3   : > { %v2882_v52 = vpop.permute.xlu1 %2881  ;;  %v2938_v0 = vpop.permute.xlu0 %2937 }
 0x6e4   : > { %v2894_v45 = vsel %vm4911_vm11, %v2882_v52, %v2884_v48  ;;  %vm4921_vm11 = vmmov %vm4920_vm9 }
 0x6e5   : > { %v2904_v53 = vadd.f32 %v2894_v45, %v2850_v63 }
 0x6e7   : > { %v2886_v12 = vpop.permute.xlu1 %2885  ;;  %v2992_v3 = vpop.permute.xlu0 %2991 }
 0x6e8   : > { %v2895_v54 = vsel %vm4912_vm12, %v2884_v48, %v2886_v12  ;;  %v2906_v55 = vadd.f32 %v2886_v12, %v2852_v50  ;;  %v2793_v12 = vmul.f32 %v4579_v18, %v4655_v13  ;;  %vm4922_vm12 = vmmov %vm4914_vm10 }
 0x6e9   : > { %v2905_v28 = vadd.f32 %v2895_v54, %v2851_v51 }
 0x6eb   : > { %v2936_v11 = vpop.permute.xlu1 %2935  ;;  %v3046_v56 = vpop.permute.xlu0 %3045 }
 0x6ec   : > { %v2948_v16 = vsel %vm4913_vm13, %v2936_v11, %v2938_v0  ;;  %vm4923_vm13 = vmmov %vm4914_vm10 }
 0x6ed   : > { %v2958_v4 = vadd.f32 %v2948_v16, %v2904_v53 }
 0x6ef   : > { %v2940_v59 = vpop.permute.xlu1 %2939  ;;  %v3099_v9 = vpop.permute.xlu0 %3098 }
 0x6f0   : > { %v2949_v10 = vsel %vm4914_vm10, %v2938_v0, %v2940_v59  ;;  %v4777_v47 = vadd.f32 %v2940_v59, %v2906_v55  ;;  %v2795_v0 = vmul.f32 %v4579_v18, %v4662_v7  ;;  %vm4924_vm10 = vmmov %vm4916_vm1 }
 0x6f1   : > { %v2959_v8 = vadd.f32 %v2949_v10, %v2905_v28 }
 0x6f3   : > { %v2990_v14 = vpop.permute.xlu1 %2989  ;;  %v3153_v6 = vpop.permute.xlu0 %3152 }
 0x6f4   : > { %v3002_v20 = vsel %vm581_vm4, %v2990_v14, %v2992_v3 }
 0x6f5   : > { %v3012_v58 = vadd.f32 %v3002_v20, %v2958_v4 }
 0x6f7   : > { %v4780_v60 = vpop.permute.xlu1 %2993  ;;  %v2834_v29 = vpop.permute.xlu0 %2833 }
 0x6f8   : > { %v3003_v61 = vsel %vm581_vm4, %v2992_v3, %v4780_v60  ;;  %v2794_v3 = vmul.f32 %v4579_v18, %v4705_v24 }
 0x6f9   : > { %v3013_v19 = vadd.f32 %v3003_v61, %v2959_v8 }
 0x6fb   : > { %v3044_v26 = vpop.permute.xlu1 %3043  ;;  %v2838_v2 = vpop.permute.xlu0 %2837 }
 0x6fc   : > { %v3055_v62 = vsel %vm630_vm3, %v3044_v26, %v3046_v56  ;;  %v2855_v54 = vadd.f32 %v2838_v2, %v2795_v0 }
 0x6fd   : > { %v3065_v32 = vadd.f32 %v3055_v62, %v3012_v58  ;;  %v3014_v62 = vadd.f32 %v4780_v60, %v4777_v47 }
 0x6ff   : > { %v4785_v34 = vpop.permute.xlu1 %3047  ;;  %v2888_v33 = vpop.permute.xlu0 %2887 }
 0x700   : > { %v3056_v31 = vsel %vm630_vm3, %v3046_v56, %v4785_v34 }
 0x701   : > { %v3066_v1 = vadd.f32 %v3056_v31, %v3013_v19 }
 0x703   : > { %v3097_v15 = vpop.permute.xlu1 %3096  ;;  %v2892_v35 = vpop.permute.xlu0 %2891 }
 0x704   : > { %v3109_v43 = vsel %vm4915_vm15, %v3097_v15, %v3099_v9  ;;  %v2909_v7 = vadd.f32 %v2892_v35, %v2855_v54  ;;  %vm4925_vm15 = vmmov %vm4916_vm1 }
 0x705   : > { %v3119_v37 = vadd.f32 %v3109_v43, %v3065_v32 }
 0x707   : > { %v4790_v22 = vpop.permute.xlu1 %3100  ;;  %v2942_v38 = vpop.permute.xlu0 %2941 }
 0x708   : > { %v3110_v25 = vsel %vm4916_vm1, %v3099_v9, %v4790_v22  ;;  %vm3249_vm1 = vcmask 261120  }
 0x709   : > { %v3120_v39 = vadd.f32 %v3110_v25, %v3066_v1 }
 0x70b   : > { %v3151_v27 = vpop.permute.xlu1 %3150  ;;  %v2946_v17 = vpop.permute.xlu0 %2945 }
 0x70c   : > { %v3163_v30 = vsel %vm4917_vm14, %v3151_v27, %v3153_v6  ;;  %v2963_v13 = vadd.f32 %v2946_v17, %v2909_v7 }
 0x70d   : > { %v4795_v23 = vadd.f32 %v3163_v30, %v3119_v37  ;;  %v3067_v37 = vadd.f32 %v4785_v34, %v3014_v62 }
 0x70f   : > { %v4797_v21 = vpop.permute.xlu1 %3154  ;;  %v2996_v40 = vpop.permute.xlu0 %2995  ;;  %v3121_v47 = vadd.f32 %v4790_v22, %v3067_v37 }
 0x710   : > { %v3164_v41 = vsel %vm4918_vm5, %v3153_v6, %v4797_v21 }
 0x711   : > { %v4801_v44 = vadd.f32 %v3164_v41, %v3120_v39  ;;  %v3175_v34 = vadd.f32 %v4797_v21, %v3121_v47 }
 0x713   : > { %v4803_v46 = vpop.permute.xlu1 %3204  ;;  %v3000_v63 = vpop.permute.xlu0 %2999 }
 0x717   : > { %v2836_v36 = vpop.permute.xlu1 %2835  ;;  %v3050_v57 = vpop.permute.xlu0 %3049 }
 0x718   : > { %v2842_v45 = vsel %vm4919_vm7, %v2834_v29, %v2836_v36  ;;  %v2843_v53 = vsel %vm4909_vm6, %v2836_v36, %v2838_v2  ;;  %v3017_v29 = vadd.f32 %v3000_v63, %v2963_v13 }
 0x719   : > { %v2853_v16 = vadd.f32 %v2842_v45, %v2793_v12  ;;  %v2854_v4 = vadd.f32 %v2843_v53, %v2794_v3 }
 0x71b   : > { %v2890_v5 = vpop.permute.xlu1 %2889  ;;  %v3054_v48 = vpop.permute.xlu0 %3053 }
 0x71c   : > { %v2896_v55 = vsel %vm4920_vm9, %v2888_v33, %v2890_v5  ;;  %v2897_v28 = vsel %vm4921_vm11, %v2890_v5, %v2892_v35  ;;  %v3070_v32 = vadd.f32 %v3054_v48, %v3017_v29 }
 0x71d   : > { %v2907_v10 = vadd.f32 %v2896_v55, %v2853_v16  ;;  %v2908_v8 = vadd.f32 %v2897_v28, %v2854_v4 }
 0x71f   : > { %v2944_v49 = vpop.permute.xlu1 %2943  ;;  %v3103_v50 = vpop.permute.xlu0 %3102 }
 0x720   : > { %v2950_v59 = vsel %vm4922_vm12, %v2942_v38, %v2944_v49  ;;  %v2951_v9 = vsel %vm4923_vm13, %v2944_v49, %v2946_v17 }
 0x721   : > { %v2961_v20 = vadd.f32 %v2950_v59, %v2907_v10  ;;  %v2962_v58 = vadd.f32 %v2951_v9, %v2908_v8  ;;  %v3653_v8 = vmov 1966171168  }
 0x722   : > { %v3277_v13 = vunpack.c.l.s4 %v3653_v8 }
 0x723   : > { %v2998_v51 = vpop.permute.xlu1 %2997  ;;  %v3107_v52 = vpop.permute.xlu0 %3106 }
 0x724   : > { %v3004_v14 = vsel %vm581_vm4, %v2996_v40, %v2998_v51  ;;  %v3005_v18 = vsel %vm581_vm4, %v2998_v51, %v3000_v63  ;;  %v3124_v38 = vadd.f32 %v3107_v52, %v3070_v32  ;;  %vm4926_vm4 = vmmov %vm4918_vm5 }
 0x725   : > { %v3015_v26 = vadd.f32 %v3004_v14, %v2961_v20  ;;  %v3016_v2 = vadd.f32 %v3005_v18, %v2962_v58 }
 0x727   : > { %v3052_v11 = vpop.permute.xlu1 %3051  ;;  %v3157_v56 = vpop.permute.xlu0 %3156 }
 0x728   : > { %v3057_v61 = vsel %vm630_vm3, %v3050_v57, %v3052_v11  ;;  %v3058_v19 = vsel %vm630_vm3, %v3052_v11, %v3054_v48  ;;  %vm4927_vm3 = vmmov %vm4926_vm4 }
 0x729   : > { %v3068_v35 = vadd.f32 %v3057_v61, %v3015_v26  ;;  %v3069_v43 = vadd.f32 %v3058_v19, %v3016_v2  ;;  %v3278_v19 = vunpack.c.0.s8 %v3277_v13 }
 0x72b   : > { %v3105_v24 = vpop.permute.xlu1 %3104  ;;  %v3161_v6 = vpop.permute.xlu0 %3160 }
 0x72c   : > { %v3111_v33 = vsel %vm4924_vm10, %v3103_v50, %v3105_v24  ;;  %v3112_v31 = vsel %vm4925_vm15, %v3105_v24, %v3107_v52  ;;  %v3178_v60 = vadd.f32 %v3161_v6, %v3124_v38 }
 0x72d   : > { %v3122_v27 = vadd.f32 %v3111_v33, %v3068_v35  ;;  %v3123_v17 = vadd.f32 %v3112_v31, %v3069_v43 }
 0x72f   : > { %v3159_v1 = vpop.permute.xlu1 %3158  ;;  %v3211_v15 = vpop.permute.xlu0 %3210 }
 0x730   : > { %v3165_v25 = vsel %vm4926_vm4, %v3157_v56, %v3159_v1  ;;  %v3166_v39 = vsel %vm4927_vm3, %v3159_v1, %v3161_v6 }
 0x731   : > { %v3176_v41 = vadd.f32 %v3165_v25, %v3122_v27  ;;  %v3177_v63 = vadd.f32 %v3166_v39, %v3123_v17 }
 0x733   : > { %v3213_v30 = vpop.permute.xlu1 %3212  ;;  %v3215_v40 = vpop.permute.xlu0 %3214 }
 0x734   : > { %v3219_v36 = vsel %vm777_vm8, %v3211_v15, %v3213_v30  ;;  %v3220_v57 = vsel %vm777_vm8, %v3213_v30, %v3215_v40  ;;  %v3232_v49 = vadd.f32 %v3215_v40, %v3178_v60 }
 0x735   : > { %v3230_v5 = vadd.f32 %v3219_v36, %v3176_v41  ;;  %v3231_v48 = vadd.f32 %v3220_v57, %v3177_v63 }
 0x736   : > { %v3251_v3 = vsel %vm396_vm0, %v3232_v49, 0.0  ;;  %vm3301_vm0 = vcmp.lt.s32.totalorder %v334_v42, 288 }
 0x737   : > { %v3209_v50 = vpop.permute.xlu1 %3208  ;;  %v3207_v51 = vpop.permute.xlu0 %3206  ;;  %v3233_v12 = vsel %vm432_vm2, %v3230_v5, 0.0  ;;  %v3241_v21 = vsel %vm432_vm2, %v3231_v48, 0.0 }
 0x738   : > { %v3229_v52 = vadd.f32 %v3209_v50, %v3175_v34  ;;  %v3217_v22 = vsel %vm777_vm8, %v4803_v46, %v3207_v51  ;;  %v3218_v0 = vsel %vm777_vm8, %v3207_v51, %v3209_v50 }
 0x739   : > { %v3227_v45 = vadd.f32 %v3217_v22, %v4795_v23  ;;  %v3228_v53 = vadd.f32 %v3218_v0, %v4801_v44  ;;  %v3266_v23 = vshrl.u32 %v334_v42, 7 }
 0x73a   : > { %v3250_v54 = vsel %vm3249_vm1, %v3229_v52, 0.0 }
 0x73b   : > { %v3252_v55 = vadd.f32 %v3251_v3, %v3250_v54  ;;  %v3234_v28 = vadd.f32 %v3233_v12, %v3227_v45  ;;  %v3242_v11 = vadd.f32 %v3241_v21, %v3228_v53  ;;  %v3267_v6 = vsub.s32 0, %v3266_v23 }
 0x73c   : > { %v3281_v33 = vsub.s32 %v3278_v19, %v3266_v23 }
 0x73d   : > { %v3253_v56 = vrot.slane %v3252_v55, 4  ;;  %v3235_v16 = vrot.slane %v3234_v28, 4  ;;  %v3243_v4 = vrot.slane %v3242_v11, 4 }
 0x73f   : > { %v3254_v46 = vadd.f32 %v3253_v56, %v3252_v55  ;;  %v3236_v7 = vadd.f32 %v3235_v16, %v3234_v28  ;;  %v3244_v59 = vadd.f32 %v3243_v4, %v3242_v11 }
 0x741   : > { %v3255_v9 = vrot.slane %v3254_v46, 2  ;;  %v3237_v44 = vrot.slane %v3236_v7, 2  ;;  %v3245_v10 = vrot.slane %v3244_v59, 2 }
 0x743   : > { %v3256_v14 = vadd.f32 %v3255_v9, %v3254_v46  ;;  %v3238_v18 = vadd.f32 %v3237_v44, %v3236_v7  ;;  %v3246_v24 = vadd.f32 %v3245_v10, %v3244_v59 }
 0x744   : > { %v3263_v20 = vpop.permute.xlu0 %3262 }
 0x745   : > { %v3239_v58 = vrot.slane %v3238_v18, 1  ;;  %v3247_v29 = vrot.slane %v3246_v24, 1  ;;  %v3257_v61 = vrot.slane %v3256_v14, 1  ;;  %v3268_v32 = vrot.slane %v3263_v20, %v3267_v6 }
 0x747   : > { %v3240_v26 = vadd.f32 %v3239_v58, %v3238_v18  ;;  %v3248_v2 = vadd.f32 %v3247_v29, %v3246_v24  ;;  %v3258_v62 = vadd.f32 %v3257_v61, %v3256_v14 }
 0x749   : > { %v3269_v31 = vadd.f32 %v3268_v32, %v3240_v26  ;;  %v3270_v1 = vadd.f32 %v3268_v32, %v3248_v2  ;;  %v3271_v15 = vadd.f32 %v3268_v32, %v3258_v62 }
 0x74b   : > { %v3275_v35 = vcombine.low %v3269_v31, %v3270_v1  ;;  %v3289_v37 = vrot.slane %v3271_v15, %v3281_v33 }
 0x74d   : > { %v3282_v43 = vrot.slane %v3275_v35, %v3281_v33 }
 0x74f   : > { %v3290_v38 = vcombine.low %v3282_v43, %v3289_v37 }
 0x751   : > { %v3297_v25 = vrot.slane %v3290_v38, %v3281_v33 }
 0x753   : > { %3303 = vst.msk [vmem:[%s332_s19] sm:$0x7] %vm3301_vm0, %v3297_v25 }
 0x754 PF: > { %s21_s11 = sadd.s32 1, %s3639_s11  }
 0x755   : > { %p18_p4 = scmp.ge.s32.totalorder %s21_s11, 4  }
 0x757   :  { %20 = sbr.rel (!%p18_p4) target bundleno = 3 (0x3), region = 94 }

</bundles_post_ra>
